<compile_context>
chip_gen: v7x
topology: tpu7x:2x2x1
jax: 0.10.0
libtpu: 0.0.40
codegen_flags: <defaults>
</compile_context>

<pallas_src>
import jax
import jax.numpy as jnp
from jax.experimental import pallas as pl
from jax.experimental.pallas import tpu as pltpu

NEG_SLOPE = 0.01  # torch.nn.LeakyReLU default negative_slope


def _replicate_pad_hw(x):
    """Edge-pad H and W by 1 on each side (value-level, no scratch refs)."""
    x = jnp.concatenate([x[:, :1], x, x[:, -1:]], axis=1)          # pad H
    x = jnp.concatenate([x[:, :, :1], x, x[:, :, -1:]], axis=2)    # pad W
    return x


def _im2col_3x3(xpad, H, W):
    """(Nb, H+2, W+2, C) -> (Nb*H*W, 9*C) with K ordered (kh, kw, c).

    Matches a PyTorch/HWIO weight reshaped to (9*C, Cout).
    """
    Nb, C = xpad.shape[0], xpad.shape[-1]
    taps = [xpad[:, kh:kh + H, kw:kw + W, :]
            for kh in range(3) for kw in range(3)]
    patches = jnp.concatenate(taps, axis=-1)                       # (Nb, H, W, 9C)
    return patches.reshape(Nb * H * W, 9 * C)


def _lrelu(x):
    return jnp.where(x >= 0, x, NEG_SLOPE * x)


def _double_conv_kernel(x_ref, w1_ref, b1_ref, w2_ref, b2_ref, out_ref):
    """Nb images: pad -> conv1+LReLU -> pad -> conv2+LReLU -> 2x2 maxpool."""
    Nb, H, W, Cin = x_ref.shape
    Cmid = w1_ref.shape[1]
    Cout = w2_ref.shape[1]
    Ho, Wo = H // 2, W // 2

    x = x_ref[...].astype(jnp.float32)                             # (Nb, H, W, Cin)

    # ---- conv1: replicate-pad -> im2col -> one MXU dot -> bias -> LeakyReLU
    p1 = _im2col_3x3(_replicate_pad_hw(x), H, W)                   # (Nb*H*W, 9*Cin)
    mid = jnp.dot(p1, w1_ref[...], preferred_element_type=jnp.float32)
    mid = _lrelu(mid + b1_ref[...])                                # (Nb*H*W, Cmid)

    # ---- conv2 (intermediate never leaves registers/VMEM values)
    midpad = _replicate_pad_hw(mid.reshape(Nb, H, W, Cmid))
    p2 = _im2col_3x3(midpad, H, W)                                 # (Nb*H*W, 9*Cmid)
    act2 = jnp.dot(p2, w2_ref[...], preferred_element_type=jnp.float32)
    act2 = _lrelu(act2 + b2_ref[...])                              # (Nb*H*W, Cout)

    # ---- 2x2 max-pool, stride 2, entirely in registers
    a = act2.reshape(Nb, Ho, 2, Wo, 2, Cout)
    hmax = jnp.maximum(a[:, :, 0], a[:, :, 1])                     # (Nb, Ho, Wo, 2, Cout)
    pooled = jnp.maximum(hmax[:, :, :, 0], hmax[:, :, :, 1])       # (Nb, Ho, Wo, Cout)

    # lane-dense store: (Nb, Ho, Wo*Cout)
    out_ref[...] = pooled.reshape(Nb, Ho, Wo * Cout).astype(out_ref.dtype)


def _pick_block_batch(n, max_nb=8):
    """Largest divisor of n that is <= max_nb and keeps >= 2 grid steps (v7x)."""
    best = 1
    for nb in range(1, min(n, max_nb) + 1):
        if n % nb == 0 and (n < 2 or n // nb >= 2):
            best = nb
    return best


def double_conv_block(x_nchw, params, block_batch=None):
    """DoubleConvBlock.forward with default settings (no norm, pooling=True)."""
    # TODO(synk): BatchNorm2d/InstanceNorm2d branches are disabled under the
    # default normalization=False and are not implemented here.
    # TODO(synk): odd H/W (MaxPool2d floor semantics) not supported; H, W even.
    x = jnp.transpose(x_nchw, (0, 2, 3, 1))          # NCHW -> NHWC
    N, H, W, Cin = x.shape
    assert H % 2 == 0 and W % 2 == 0, "H and W must be even for the 2x2 pool"
    Cmid = params["w1"].shape[-1]
    Cout = params["w2"].shape[-1]
    Ho, Wo = H // 2, W // 2

    Nb = block_batch if block_batch is not None else _pick_block_batch(N)
    assert N % Nb == 0

    # im2col weights: HWIO (3,3,Ci,Co) -> (9*Ci, Co), K ordered (kh, kw, ci)
    w1 = params["w1"].reshape(9 * Cin, Cmid).astype(jnp.float32)
    w2 = params["w2"].reshape(9 * Cmid, Cout).astype(jnp.float32)
    b1 = params["b1"].reshape(1, Cmid).astype(jnp.float32)
    b2 = params["b2"].reshape(1, Cout).astype(jnp.float32)

    out_flat = pl.pallas_call(
        _double_conv_kernel,
        out_shape=jax.ShapeDtypeStruct((N, Ho, Wo * Cout), x.dtype),
        grid=(N // Nb,),                              # Nb images per grid step
        in_specs=[
            pl.BlockSpec((Nb, H, W, Cin), lambda n: (n, 0, 0, 0)),
            pl.BlockSpec((9 * Cin, Cmid), lambda n: (0, 0)),
            pl.BlockSpec((1, Cmid), lambda n: (0, 0)),
            pl.BlockSpec((9 * Cmid, Cout), lambda n: (0, 0)),
            pl.BlockSpec((1, Cout), lambda n: (0, 0)),
        ],
        out_specs=pl.BlockSpec((Nb, Ho, Wo * Cout), lambda n: (n, 0, 0)),
        compiler_params=pltpu.CompilerParams(
            dimension_semantics=("parallel",),        # batch axis -> both v7x TCs
            vmem_limit_bytes=32 * 1024 * 1024,        # small usage; safe on v5e/v6e/v7x
        ),
    )(x, w1, b1, w2, b2)

    out = out_flat.reshape(N, Ho, Wo, Cout)
    return jnp.transpose(out, (0, 3, 1, 2))           # back to NCHW


def _reference(x_nchw, params):
    """Plain-JAX reference (lax conv) for a sanity check."""
    def one(x, w, b, pooling):
        xpad = jnp.pad(x, ((0, 0), (1, 1), (1, 1), (0, 0)), mode="edge")
        y = jax.lax.conv_general_dilated(
            xpad, w, window_strides=(1, 1), padding="VALID",
            dimension_numbers=("NHWC", "HWIO", "NHWC"))
        y = y + b.reshape(1, 1, 1, -1)
        y = jnp.where(y >= 0, y, NEG_SLOPE * y)
        if pooling:
            y = jax.lax.reduce_window(y, -jnp.inf, jax.lax.max,
                                      (1, 2, 2, 1), (1, 2, 2, 1), "VALID")
        return y

    x = jnp.transpose(x_nchw, (0, 2, 3, 1))
    x = one(x, params["w1"], params["b1"], False)
    x = one(x, params["w2"], params["b2"], True)
    return jnp.transpose(x, (0, 3, 1, 2))


if __name__ == "__main__":
    # DoubleConvBlock(in_depth=4, out_depth=8) -> mid_depth = out_depth = 8
    N, Cin, H, W = 2, 4, 16, 16
    Cout = 8

    key = jax.random.PRNGKey(0)
    k1, k2, kx = jax.random.split(key, 3)

    # kaiming_normal_ (fan_in, leaky_relu, a=0): std = sqrt(2 / fan_in); bias zeros.
    std1 = (2.0 / (Cin * 3 * 3)) ** 0.5
    std2 = (2.0 / (Cout * 3 * 3)) ** 0.5
    params = {
        "w1": jax.random.normal(k1, (3, 3, Cin, Cout), jnp.float32) * std1,   # HWIO
        "b1": jnp.zeros((Cout,), jnp.float32),
        "w2": jax.random.normal(k2, (3, 3, Cout, Cout), jnp.float32) * std2,  # HWIO
        "b2": jnp.zeros((Cout,), jnp.float32),
    }

    x = jax.random.normal(kx, (N, Cin, H, W), jnp.float32)  # NCHW like PyTorch

    fn = jax.jit(lambda inp: double_conv_block(inp, params))
    out = jax.block_until_ready(fn(x))

    assert out.shape == (N, Cout, H // 2, W // 2), out.shape
    ref = jax.block_until_ready(_reference(x, params))
    assert jnp.allclose(out, ref, rtol=1e-4, atol=1e-4), float(jnp.max(jnp.abs(out - ref)))

    print("KERNEL_OK")
</pallas_src>

<mosaic_0001>
module attributes {stable_mosaic.version = 11 : i64} {
  func.func @_double_conv_kernel(%arg0: i32, %arg1: memref<1x16x16x4xf32, #tpu.memory_space<vmem>>, %arg2: memref<36x8xf32, #tpu.memory_space<vmem>>, %arg3: memref<1x8xf32, #tpu.memory_space<vmem>>, %arg4: memref<72x8xf32, #tpu.memory_space<vmem>>, %arg5: memref<1x8xf32, #tpu.memory_space<vmem>>, %arg6: memref<1x8x64xf32, #tpu.memory_space<vmem>>) attributes {dimension_semantics = [#tpu.dimension_semantics<parallel>], iteration_bounds = array<i64: 2>, scalar_prefetch = 0 : i64, scratch_operands = 0 : i64, tpu.core_type = #tpu.core_type<tc>, window_params = [{transform_indices = @transform_0, window_bounds = array<i64: 1, 16, 16, 4>}, {pipeline_mode = #tpu.pipeline_mode<synchronous>, transform_indices = @transform_1, window_bounds = array<i64: 36, 8>}, {pipeline_mode = #tpu.pipeline_mode<synchronous>, transform_indices = @transform_2, window_bounds = array<i64: 1, 8>}, {pipeline_mode = #tpu.pipeline_mode<synchronous>, transform_indices = @transform_3, window_bounds = array<i64: 72, 8>}, {pipeline_mode = #tpu.pipeline_mode<synchronous>, transform_indices = @transform_4, window_bounds = array<i64: 1, 8>}, {transform_indices = @transform_5, window_bounds = array<i64: 1, 8, 64>}]} {
    %c0 = arith.constant 0 : index
    %c0_0 = arith.constant 0 : index
    %c0_1 = arith.constant 0 : index
    %c0_2 = arith.constant 0 : index
    %0 = vector.load %arg1[%c0, %c0_0, %c0_1, %c0_2] : memref<1x16x16x4xf32, #tpu.memory_space<vmem>>, vector<1x16x16x4xf32>
    %1 = vector.extract_strided_slice %0 {offsets = [0, 0, 0, 0], sizes = [1, 1, 16, 4], strides = [1, 1, 1, 1]} : vector<1x16x16x4xf32> to vector<1x1x16x4xf32>
    %2 = vector.extract_strided_slice %0 {offsets = [0, 15, 0, 0], sizes = [1, 1, 16, 4], strides = [1, 1, 1, 1]} : vector<1x16x16x4xf32> to vector<1x1x16x4xf32>
    %3 = tpu.concatenate %1, %0, %2 in 1 : vector<1x1x16x4xf32>, vector<1x16x16x4xf32>, vector<1x1x16x4xf32> -> vector<1x18x16x4xf32>
    %4 = vector.extract_strided_slice %3 {offsets = [0, 0, 0, 0], sizes = [1, 18, 1, 4], strides = [1, 1, 1, 1]} : vector<1x18x16x4xf32> to vector<1x18x1x4xf32>
    %5 = vector.extract_strided_slice %3 {offsets = [0, 0, 15, 0], sizes = [1, 18, 1, 4], strides = [1, 1, 1, 1]} : vector<1x18x16x4xf32> to vector<1x18x1x4xf32>
    %6 = tpu.concatenate %4, %3, %5 in 2 : vector<1x18x1x4xf32>, vector<1x18x16x4xf32>, vector<1x18x1x4xf32> -> vector<1x18x18x4xf32>
    %7 = vector.extract_strided_slice %6 {offsets = [0, 0, 0, 0], sizes = [1, 16, 16, 4], strides = [1, 1, 1, 1]} : vector<1x18x18x4xf32> to vector<1x16x16x4xf32>
    %8 = vector.extract_strided_slice %6 {offsets = [0, 0, 1, 0], sizes = [1, 16, 16, 4], strides = [1, 1, 1, 1]} : vector<1x18x18x4xf32> to vector<1x16x16x4xf32>
    %9 = vector.extract_strided_slice %6 {offsets = [0, 0, 2, 0], sizes = [1, 16, 16, 4], strides = [1, 1, 1, 1]} : vector<1x18x18x4xf32> to vector<1x16x16x4xf32>
    %10 = vector.extract_strided_slice %6 {offsets = [0, 1, 0, 0], sizes = [1, 16, 16, 4], strides = [1, 1, 1, 1]} : vector<1x18x18x4xf32> to vector<1x16x16x4xf32>
    %11 = vector.extract_strided_slice %6 {offsets = [0, 1, 1, 0], sizes = [1, 16, 16, 4], strides = [1, 1, 1, 1]} : vector<1x18x18x4xf32> to vector<1x16x16x4xf32>
    %12 = vector.extract_strided_slice %6 {offsets = [0, 1, 2, 0], sizes = [1, 16, 16, 4], strides = [1, 1, 1, 1]} : vector<1x18x18x4xf32> to vector<1x16x16x4xf32>
    %13 = vector.extract_strided_slice %6 {offsets = [0, 2, 0, 0], sizes = [1, 16, 16, 4], strides = [1, 1, 1, 1]} : vector<1x18x18x4xf32> to vector<1x16x16x4xf32>
    %14 = vector.extract_strided_slice %6 {offsets = [0, 2, 1, 0], sizes = [1, 16, 16, 4], strides = [1, 1, 1, 1]} : vector<1x18x18x4xf32> to vector<1x16x16x4xf32>
    %15 = vector.extract_strided_slice %6 {offsets = [0, 2, 2, 0], sizes = [1, 16, 16, 4], strides = [1, 1, 1, 1]} : vector<1x18x18x4xf32> to vector<1x16x16x4xf32>
    %16 = tpu.concatenate %7, %8, %9, %10, %11, %12, %13, %14, %15 in 3 : vector<1x16x16x4xf32>, vector<1x16x16x4xf32>, vector<1x16x16x4xf32>, vector<1x16x16x4xf32>, vector<1x16x16x4xf32>, vector<1x16x16x4xf32>, vector<1x16x16x4xf32>, vector<1x16x16x4xf32>, vector<1x16x16x4xf32> -> vector<1x16x16x36xf32>
    %17 = vector.shape_cast %16 : vector<1x16x16x36xf32> to vector<256x36xf32>
    %c0_3 = arith.constant 0 : index
    %c0_4 = arith.constant 0 : index
    %18 = vector.load %arg2[%c0_3, %c0_4] : memref<36x8xf32, #tpu.memory_space<vmem>>, vector<36x8xf32>
    %cst = arith.constant dense<0.000000e+00> : vector<256x8xf32>
    %19 = tpu.matmul %17, %18, %cst {dimension_numbers = #tpu.dot_dimension_numbers<[1], [0], [0], [1], [0, 0, 1, 1], [], []>} : vector<256x36xf32>, vector<36x8xf32>, vector<256x8xf32> -> vector<256x8xf32>
    %c0_5 = arith.constant 0 : index
    %c0_6 = arith.constant 0 : index
    %20 = vector.load %arg3[%c0_5, %c0_6] : memref<1x8xf32, #tpu.memory_space<vmem>>, vector<1x8xf32>
    %21 = vector.broadcast %20 : vector<1x8xf32> to vector<256x8xf32>
    %22 = arith.addf %19, %21 : vector<256x8xf32>
    %cst_7 = arith.constant 0.000000e+00 : f32
    %23 = vector.broadcast %cst_7 : f32 to vector<256x8xf32>
    %24 = arith.cmpf oge, %22, %23 : vector<256x8xf32>
    %cst_8 = arith.constant 0.00999999977 : f32
    %25 = vector.broadcast %cst_8 : f32 to vector<256x8xf32>
    %26 = arith.mulf %25, %22 : vector<256x8xf32>
    %27 = arith.select %24, %22, %26 : vector<256x8xi1>, vector<256x8xf32>
    %28 = vector.shape_cast %27 : vector<256x8xf32> to vector<1x16x16x8xf32>
    %29 = vector.extract_strided_slice %28 {offsets = [0, 0, 0, 0], sizes = [1, 1, 16, 8], strides = [1, 1, 1, 1]} : vector<1x16x16x8xf32> to vector<1x1x16x8xf32>
    %30 = vector.extract_strided_slice %28 {offsets = [0, 15, 0, 0], sizes = [1, 1, 16, 8], strides = [1, 1, 1, 1]} : vector<1x16x16x8xf32> to vector<1x1x16x8xf32>
    %31 = tpu.concatenate %29, %28, %30 in 1 : vector<1x1x16x8xf32>, vector<1x16x16x8xf32>, vector<1x1x16x8xf32> -> vector<1x18x16x8xf32>
    %32 = vector.extract_strided_slice %31 {offsets = [0, 0, 0, 0], sizes = [1, 18, 1, 8], strides = [1, 1, 1, 1]} : vector<1x18x16x8xf32> to vector<1x18x1x8xf32>
    %33 = vector.extract_strided_slice %31 {offsets = [0, 0, 15, 0], sizes = [1, 18, 1, 8], strides = [1, 1, 1, 1]} : vector<1x18x16x8xf32> to vector<1x18x1x8xf32>
    %34 = tpu.concatenate %32, %31, %33 in 2 : vector<1x18x1x8xf32>, vector<1x18x16x8xf32>, vector<1x18x1x8xf32> -> vector<1x18x18x8xf32>
    %35 = vector.extract_strided_slice %34 {offsets = [0, 0, 0, 0], sizes = [1, 16, 16, 8], strides = [1, 1, 1, 1]} : vector<1x18x18x8xf32> to vector<1x16x16x8xf32>
    %36 = vector.extract_strided_slice %34 {offsets = [0, 0, 1, 0], sizes = [1, 16, 16, 8], strides = [1, 1, 1, 1]} : vector<1x18x18x8xf32> to vector<1x16x16x8xf32>
    %37 = vector.extract_strided_slice %34 {offsets = [0, 0, 2, 0], sizes = [1, 16, 16, 8], strides = [1, 1, 1, 1]} : vector<1x18x18x8xf32> to vector<1x16x16x8xf32>
    %38 = vector.extract_strided_slice %34 {offsets = [0, 1, 0, 0], sizes = [1, 16, 16, 8], strides = [1, 1, 1, 1]} : vector<1x18x18x8xf32> to vector<1x16x16x8xf32>
    %39 = vector.extract_strided_slice %34 {offsets = [0, 1, 1, 0], sizes = [1, 16, 16, 8], strides = [1, 1, 1, 1]} : vector<1x18x18x8xf32> to vector<1x16x16x8xf32>
    %40 = vector.extract_strided_slice %34 {offsets = [0, 1, 2, 0], sizes = [1, 16, 16, 8], strides = [1, 1, 1, 1]} : vector<1x18x18x8xf32> to vector<1x16x16x8xf32>
    %41 = vector.extract_strided_slice %34 {offsets = [0, 2, 0, 0], sizes = [1, 16, 16, 8], strides = [1, 1, 1, 1]} : vector<1x18x18x8xf32> to vector<1x16x16x8xf32>
    %42 = vector.extract_strided_slice %34 {offsets = [0, 2, 1, 0], sizes = [1, 16, 16, 8], strides = [1, 1, 1, 1]} : vector<1x18x18x8xf32> to vector<1x16x16x8xf32>
    %43 = vector.extract_strided_slice %34 {offsets = [0, 2, 2, 0], sizes = [1, 16, 16, 8], strides = [1, 1, 1, 1]} : vector<1x18x18x8xf32> to vector<1x16x16x8xf32>
    %44 = tpu.concatenate %35, %36, %37, %38, %39, %40, %41, %42, %43 in 3 : vector<1x16x16x8xf32>, vector<1x16x16x8xf32>, vector<1x16x16x8xf32>, vector<1x16x16x8xf32>, vector<1x16x16x8xf32>, vector<1x16x16x8xf32>, vector<1x16x16x8xf32>, vector<1x16x16x8xf32>, vector<1x16x16x8xf32> -> vector<1x16x16x72xf32>
    %45 = vector.shape_cast %44 : vector<1x16x16x72xf32> to vector<256x72xf32>
    %c0_9 = arith.constant 0 : index
    %c0_10 = arith.constant 0 : index
    %46 = vector.load %arg4[%c0_9, %c0_10] : memref<72x8xf32, #tpu.memory_space<vmem>>, vector<72x8xf32>
    %cst_11 = arith.constant dense<0.000000e+00> : vector<256x8xf32>
    %47 = tpu.matmul %45, %46, %cst_11 {dimension_numbers = #tpu.dot_dimension_numbers<[1], [0], [0], [1], [0, 0, 1, 1], [], []>} : vector<256x72xf32>, vector<72x8xf32>, vector<256x8xf32> -> vector<256x8xf32>
    %c0_12 = arith.constant 0 : index
    %c0_13 = arith.constant 0 : index
    %48 = vector.load %arg5[%c0_12, %c0_13] : memref<1x8xf32, #tpu.memory_space<vmem>>, vector<1x8xf32>
    %49 = vector.broadcast %48 : vector<1x8xf32> to vector<256x8xf32>
    %50 = arith.addf %47, %49 : vector<256x8xf32>
    %cst_14 = arith.constant 0.000000e+00 : f32
    %51 = vector.broadcast %cst_14 : f32 to vector<256x8xf32>
    %52 = arith.cmpf oge, %50, %51 : vector<256x8xf32>
    %cst_15 = arith.constant 0.00999999977 : f32
    %53 = vector.broadcast %cst_15 : f32 to vector<256x8xf32>
    %54 = arith.mulf %53, %50 : vector<256x8xf32>
    %55 = arith.select %52, %50, %54 : vector<256x8xi1>, vector<256x8xf32>
    %56 = vector.shape_cast %55 : vector<256x8xf32> to vector<1x8x2x8x2x8xf32>
    %57 = vector.extract_strided_slice %56 {offsets = [0, 0, 0, 0, 0, 0], sizes = [1, 8, 1, 8, 2, 8], strides = [1, 1, 1, 1, 1, 1]} : vector<1x8x2x8x2x8xf32> to vector<1x8x1x8x2x8xf32>
    %58 = vector.shape_cast %57 : vector<1x8x1x8x2x8xf32> to vector<1x8x8x2x8xf32>
    %59 = vector.extract_strided_slice %56 {offsets = [0, 0, 1, 0, 0, 0], sizes = [1, 8, 1, 8, 2, 8], strides = [1, 1, 1, 1, 1, 1]} : vector<1x8x2x8x2x8xf32> to vector<1x8x1x8x2x8xf32>
    %60 = vector.shape_cast %59 : vector<1x8x1x8x2x8xf32> to vector<1x8x8x2x8xf32>
    %61 = arith.maximumf %58, %60 : vector<1x8x8x2x8xf32>
    %62 = vector.extract_strided_slice %61 {offsets = [0, 0, 0, 0, 0], sizes = [1, 8, 8, 1, 8], strides = [1, 1, 1, 1, 1]} : vector<1x8x8x2x8xf32> to vector<1x8x8x1x8xf32>
    %63 = vector.shape_cast %62 : vector<1x8x8x1x8xf32> to vector<1x8x8x8xf32>
    %64 = vector.extract_strided_slice %61 {offsets = [0, 0, 0, 1, 0], sizes = [1, 8, 8, 1, 8], strides = [1, 1, 1, 1, 1]} : vector<1x8x8x2x8xf32> to vector<1x8x8x1x8xf32>
    %65 = vector.shape_cast %64 : vector<1x8x8x1x8xf32> to vector<1x8x8x8xf32>
    %66 = arith.maximumf %63, %65 : vector<1x8x8x8xf32>
    %67 = vector.shape_cast %66 : vector<1x8x8x8xf32> to vector<1x8x64xf32>
    %c0_16 = arith.constant 0 : index
    %c0_17 = arith.constant 0 : index
    %c0_18 = arith.constant 0 : index
    %68 = vector.load %arg6[%c0_16, %c0_17, %c0_18] : memref<1x8x64xf32, #tpu.memory_space<vmem>>, vector<1x8x64xf32>
    tpu.vector_store %arg6[%c0_16, %c0_17, %c0_18], %67 {strides = array<i32>} : memref<1x8x64xf32, #tpu.memory_space<vmem>>, vector<1x8x64xf32>,
    return
  }
  func.func @transform_0(%arg0: i32) -> (i32, i32, i32, i32) {
    %c0_i32 = arith.constant 0 : i32
    %c0_i32_0 = arith.constant 0 : i32
    %c0_i32_1 = arith.constant 0 : i32
    %c0_i32_2 = arith.constant 0 : i32
    return %arg0, %c0_i32, %c0_i32_0, %c0_i32_1 : i32, i32, i32, i32
  }
  func.func @transform_1(%arg0: i32) -> (i32, i32) {
    %c0_i32 = arith.constant 0 : i32
    %c0_i32_0 = arith.constant 0 : i32
    %c0_i32_1 = arith.constant 0 : i32
    return %c0_i32, %c0_i32_0 : i32, i32
  }
  func.func @transform_2(%arg0: i32) -> (i32, i32) {
    %c0_i32 = arith.constant 0 : i32
    %c0_i32_0 = arith.constant 0 : i32
    %c0_i32_1 = arith.constant 0 : i32
    return %c0_i32, %c0_i32_0 : i32, i32
  }
  func.func @transform_3(%arg0: i32) -> (i32, i32) {
    %c0_i32 = arith.constant 0 : i32
    %c0_i32_0 = arith.constant 0 : i32
    %c0_i32_1 = arith.constant 0 : i32
    return %c0_i32, %c0_i32_0 : i32, i32
  }
  func.func @transform_4(%arg0: i32) -> (i32, i32) {
    %c0_i32 = arith.constant 0 : i32
    %c0_i32_0 = arith.constant 0 : i32
    %c0_i32_1 = arith.constant 0 : i32
    return %c0_i32, %c0_i32_0 : i32, i32
  }
  func.func @transform_5(%arg0: i32) -> (i32, i32, i32) {
    %c0_i32 = arith.constant 0 : i32
    %c0_i32_0 = arith.constant 0 : i32
    %c0_i32_1 = arith.constant 0 : i32
    return %arg0, %c0_i32, %c0_i32_0 : i32, i32, i32
  }
}

</mosaic_0001>

<bundles_post_ra>
// kernel: _lambda_.1
= control target key start
LH: loop header
LB: loop body
LE: loop exit
PB: predicated region body
PF: predicated region fallthrough
CT: control target
= control target key end

     0   :  { %s6154_s18 = smov 0   ;;  %s9835_s0 = inlined_call_operand.vmem [shape: f32[2,16,16,4], index: 0, kind: input, shape index: {}]   ;;  %s9836_s1 = inlined_call_operand.vmem [shape: f32[36,8], index: 1, kind: input, shape index: {}]   ;;  %s9837_s2 = inlined_call_operand.vmem [shape: f32[1,8], index: 2, kind: input, shape index: {}, may-alias: {2,4}]   ;;  %s9838_s3 = inlined_call_operand.vmem [shape: f32[72,8], index: 3, kind: input, shape index: {}]   ;;  %s9839_s4 = inlined_call_operand.vmem [shape: f32[1,8], index: 4, kind: input, shape index: {}, may-alias: {2,4}]   ;;  %s9840_s5 = inlined_call_operand.vmem [shape: f32[2,8,64], index: 5, kind: output, shape index: {}]  }
   0x1 LB: > { %s5693_s19 = sadd.s32 4294967295, %s6108_s18   ;;  %p5697_p0 = scmp.ge.s32.totalorder %s6108_s18, 1  ;;  %s6108_s18 = sphi %s6154_s18, %s15_s18  }
   0x2   : > { %p187_p1 = scmp.lt.s32.totalorder %s6108_s18, 3 }
   0x4   : > { %p188_p2 = pnand %p5697_p0, %p187_p1 }
   0x6   : > { %191 = sbr.rel (%p188_p2) target bundleno = 1781 (0x6f5), region = 40 }
   0xd   : > { %p214_p3 = scmp.lt.s32.totalorder %s5693_s19, 1  ;;  %vm287_vm0 = vcmask 1040384   ;;  %vm477_vm1 = vcmask 1046528   ;;  %s6110_s24 = smov 4   ;;  %vm643_vm2 = vcmask 1045504   ;;  %vm1379_vm3 = vcmask 31744  }
   0xe   : > { %s6111_s25 = smov 8   ;;  %s6112_s26 = smov 12   ;;  %vm1410_vm4 = vcmask 64512   ;;  %vm1441_vm5 = vcmask 97280   ;;  %vm1748_vm6 = vcmask 1043456   ;;  %vm1474_vm7 = vcmask 130048  }
   0xf   : > { %s10486_s19 = smov (!%p214_p3, %s5693_s19), 1  ;;  %s6113_s27 = smov 16   ;;  %vm1507_vm8 = vcmask 162816   ;;  %vm1540_vm9 = vcmask 195584   ;;  %vm1573_vm10 = vcmask 228352   ;;  %vm1606_vm11 = vcmask 261120  }
  0x10   : > { %s5842_s20 = sshll.u32 %s10486_s19, 8  ;;  %s6114_s28 = smov 20   ;;  %vm1651_vm12 = vcmask 293888  }
  0x11   : > { %s6168_s23 = scalar_lea.vmem %s9835_s0, %s5842_s20  ;;  %s6115_s14 = smov 24  }
  0x12   : > { %v225_v0 = vld [vmem:[%s6168_s23 + $0x10] sm:$0xff]  ;;  %v226_v1 = vld [vmem:[%s6168_s23 + $0x18] sm:$0xff]  ;;  %v223_v2 = vld [vmem:[%s6168_s23] sm:$0xff]  ;;  %s6116_s15 = smov 28   ;;  %s6117_s16 = smov 32  }
  0x13   : > { %v291_v3 = vrot.slane %v225_v0, 7  ;;  %v292_v4 = vrot.slane %v226_v1, 7  ;;  %v224_v5 = vld [vmem:[%s6168_s23 + $0x8] sm:$0xff]  ;;  %v288_v6 = vrot.slane %v223_v2, 7  ;;  %v384_v7 = vrot.slane %v226_v1, 6  ;;  %v227_v8 = vld [vmem:[%s6168_s23 + $0x20] sm:$0xff] }
  0x14   : > { %v289_v9 = vrot.slane %v224_v5, 7  ;;  %v383_v10 = vrot.slane %v224_v5, 6  ;;  %v228_v11 = vld [vmem:[%s6168_s23 + $0x28] sm:$0xff]  ;;  %v294_v12 = vrot.slane %v227_v8, 7  ;;  %v229_v25 = vld [vmem:[%s6168_s23 + $0x30] sm:$0xff]  ;;  %v230_v30 = vld [vmem:[%s6168_s23 + $0x38] sm:$0xff] }
  0x15   : > { %v6177_v13 = vsel %vm287_vm0, %v291_v3, %v292_v4  ;;  %v6180_v14 = vsel %vm287_vm0, %v225_v0, %v291_v3  ;;  %v6183_v15 = vsel %vm287_vm0, %v223_v2, %v288_v6  ;;  %v6186_v16 = vsel %vm287_vm0, %v292_v4, %v384_v7  ;;  %v231_v31 = vld [vmem:[%s6168_s23 + $0x40] sm:$0xff]  ;;  %v232_v36 = vld [vmem:[%s6168_s23 + $0x48] sm:$0xff]  ;;  %v233_v48 = vld [vmem:[%s6168_s23 + $0x50] sm:$0xff]  ;;  %s6118_s6 = smov 40   ;;  %s6119_s17 = smov 48  }
  0x16   : > { %10041 = vst [vmem:[#allocation2_spill] sm:$0xff] %v6177_v13  ;;  %10042 = vst [vmem:[#allocation3_spill] sm:$0xff] %v6183_v15  ;;  %v483_v17 = vrot.slane %v6180_v14, 1  ;;  %v484_v18 = vrot.slane %v6177_v13, 1  ;;  %v6191_v19 = vsel %vm287_vm0, %v288_v6, %v289_v9  ;;  %v478_v20 = vrot.slane %v6183_v15, 1  ;;  %v234_v52 = vld [vmem:[%s6168_s23 + $0x58] sm:$0xff] }
  0x17   : > { %10043 = vst [vmem:[#allocation4_spill] sm:$0xff] %v6191_v19  ;;  %v479_v21 = vrot.slane %v6191_v19, 1  ;;  %v486_v22 = vrot.slane %v6186_v16, 1  ;;  %v6197_v23 = vsel %vm287_vm0, %v289_v9, %v383_v10  ;;  %v295_v24 = vrot.slane %v228_v11, 7  ;;  %v235_v60 = vld [vmem:[%s6168_s23 + $0x60] sm:$0xff]  ;;  %v236_v61 = vld [vmem:[%s6168_s23 + $0x68] sm:$0xff] }
  0x18   : > { %v6201_v26 = vsel %vm477_vm1, %v483_v17, %v484_v18  ;;  %v481_v27 = vrot.slane %v6197_v23, 1  ;;  %v385_v28 = vrot.slane %v228_v11, 6  ;;  %v6205_v29 = vsel %vm287_vm0, %v227_v8, %v294_v12  ;;  %v237_v7 = vld [vmem:[%s6168_s23 + $0x70] sm:$0xff]  ;;  %v238_v8 = vld [vmem:[%s6168_s23 + $0x78] sm:$0xff]  ;;  %s6120_s20 = smov 56  }
  0x19   : > { %10044 = vst [vmem:[#allocation5_spill] sm:$0xff] %v6201_v26  ;;  %10045 = vst [vmem:[#allocation6_spill] sm:$0xff] %v6205_v29  ;;  %557 = vrot.lane.b32.xlu1 %v6201_v26, %s6110_s24  ;;  %v6212_v32 = vsel %vm477_vm1, %v478_v20, %v479_v21  ;;  %v6215_v33 = vsel %vm477_vm1, %v484_v18, %v486_v22  ;;  %v6218_v34 = vsel %vm287_vm0, %v294_v12, %v295_v24 }
  0x1a   : > { %10046 = vst [vmem:[#allocation7_spill] sm:$0xff] %v6215_v33  ;;  %10047 = vst [vmem:[#allocation8_spill] sm:$0xff] %v6218_v34  ;;  %v488_v35 = vrot.slane %v6205_v29, 1  ;;  %553 = vrot.lane.b32.xlu0 %v6212_v32, %s6110_s24  ;;  %v6225_v37 = vsel %vm477_vm1, %v479_v21, %v481_v27  ;;  %v6228_v38 = vsel %vm287_vm0, %v295_v24, %v385_v28  ;;  %v489_v39 = vrot.slane %v6218_v34, 1 }
  0x1b   : > { %v297_v40 = vrot.slane %v229_v25, 7  ;;  %v491_v41 = vrot.slane %v6228_v38, 1  ;;  %v298_v42 = vrot.slane %v230_v30, 7  ;;  %v386_v43 = vrot.slane %v230_v30, 6 }
  0x1c   : > { %v300_v44 = vrot.slane %v231_v31, 7  ;;  %v301_v46 = vrot.slane %v232_v36, 7  ;;  %v387_v47 = vrot.slane %v232_v36, 6  ;;  %v6259_v57 = vsel %vm477_vm1, %v488_v35, %v489_v39  ;;  %v239_v35 = vld [vmem:[%s6168_s23 + $0x80] sm:$0xff]  ;;  %v240_v36 = vld [vmem:[%s6168_s23 + $0x88] sm:$0xff] }
  0x1d   : > { %v6233_v45 = vsel %vm287_vm0, %v229_v25, %v297_v40  ;;  %559 = vrot.lane.b32.xlu1 %v6215_v33, %s6110_s24  ;;  %v6239_v49 = vsel %vm477_vm1, %v489_v39, %v491_v41  ;;  %v6242_v50 = vsel %vm287_vm0, %v297_v40, %v298_v42  ;;  %v6245_v51 = vsel %vm287_vm0, %v298_v42, %v386_v43 }
  0x1e   : > { %10048 = vst [vmem:[#allocation9_spill] sm:$0xff] %v6233_v45  ;;  %10049 = vst [vmem:[#allocation10_spill] sm:$0xff] %v6239_v49  ;;  %555 = vrot.lane.b32.xlu0 %v6225_v37, %s6110_s24  ;;  %v494_v53 = vrot.slane %v6242_v50, 1  ;;  %v496_v54 = vrot.slane %v6245_v51, 1  ;;  %v6253_v55 = vsel %vm287_vm0, %v300_v44, %v301_v46  ;;  %v6256_v56 = vsel %vm287_vm0, %v301_v46, %v387_v47 }
  0x1f   : > { %10050 = vst [vmem:[#allocation11_spill] sm:$0xff] %v6242_v50  ;;  %10051 = vst [vmem:[#allocation12_spill] sm:$0xff] %v6259_v57  ;;  %v493_v58 = vrot.slane %v6233_v45, 1  ;;  %v303_v59 = vrot.slane %v233_v48, 7  ;;  %v6265_v62 = vsel %vm287_vm0, %v231_v31, %v300_v44  ;;  %v304_v63 = vrot.slane %v234_v52, 7 }
  0x20   : > { %10052 = vst [vmem:[#allocation13_spill] sm:$0xff] %v6265_v62  ;;  %v499_v0 = vrot.slane %v6253_v55, 1  ;;  %v501_v1 = vrot.slane %v6256_v56, 1  ;;  %v388_v2 = vrot.slane %v234_v52, 6  ;;  %v6274_v3 = vsel %vm477_vm1, %v494_v53, %v496_v54  ;;  %v241_v52 = vld [vmem:[%s6168_s23 + $0x90] sm:$0xff] }
  0x21   : > { %563 = vrot.lane.b32.xlu1 %v6239_v49, %s6110_s24  ;;  %10053 = vst [vmem:[#allocation14_spill] sm:$0xff] %v6274_v3  ;;  %v6277_v4 = vsel %vm287_vm0, %v303_v59, %v304_v63  ;;  %v306_v5 = vrot.slane %v235_v60, 7  ;;  %v307_v6 = vrot.slane %v236_v61, 7  ;;  %v6282_v9 = vsel %vm477_vm1, %v493_v58, %v494_v53  ;;  %v242_v58 = vld [vmem:[%s6168_s23 + $0x98] sm:$0xff] }
  0x22   : > { %561 = vrot.lane.b32.xlu0 %v6259_v57, %s6110_s24  ;;  %10054 = vst [vmem:[#allocation15_spill] sm:$0xff] %v6282_v9  ;;  %v498_v10 = vrot.slane %v6265_v62, 1  ;;  %v6286_v11 = vsel %vm287_vm0, %v304_v63, %v388_v2  ;;  %v389_v12 = vrot.slane %v236_v61, 6  ;;  %v6289_v17 = vsel %vm287_vm0, %v233_v48, %v303_v59 }
  0x23   : > { %v504_v18 = vrot.slane %v6277_v4, 1  ;;  %v506_v20 = vrot.slane %v6286_v11, 1  ;;  %v309_v21 = vrot.slane %v237_v7, 7  ;;  %v310_v22 = vrot.slane %v238_v8, 7 }
  0x24   : > { %v6298_v24 = vsel %vm477_vm1, %v499_v0, %v501_v1  ;;  %v6301_v25 = vsel %vm287_vm0, %v306_v5, %v307_v6  ;;  %v6304_v27 = vsel %vm287_vm0, %v307_v6, %v389_v12  ;;  %v390_v28 = vrot.slane %v238_v8, 6  ;;  %v244_v12 = vld [vmem:[%s6168_s23 + $0xa8] sm:$0xff] }
  0x25   : > { %567 = vrot.lane.b32.xlu1 %v6274_v3, %s6110_s24  ;;  %10055 = vst [vmem:[#allocation16_spill] sm:$0xff] %v6298_v24  ;;  %v6307_v30 = vsel %vm477_vm1, %v498_v10, %v499_v0  ;;  %v503_v31 = vrot.slane %v6289_v17, 1  ;;  %v6313_v39 = vsel %vm287_vm0, %v235_v60, %v306_v5  ;;  %v6318_v40 = vsel %vm477_vm1, %v504_v18, %v506_v20  ;;  %v252_v3 = vld [vmem:[%s6168_s23 + $0xe8] sm:$0xff] }
  0x26   : > { %565 = vrot.lane.b32.xlu0 %v6282_v9, %s6110_s24  ;;  %10056 = vst [vmem:[#allocation17_spill] sm:$0xff] %v6307_v30  ;;  %10057 = vst [vmem:[#allocation18_spill] sm:$0xff] %v6318_v40  ;;  %v509_v41 = vrot.slane %v6301_v25, 1  ;;  %v511_v42 = vrot.slane %v6304_v27, 1  ;;  %v6323_v43 = vsel %vm287_vm0, %v309_v21, %v310_v22  ;;  %v6328_v44 = vsel %vm287_vm0, %v310_v22, %v390_v28  ;;  %v251_v9 = vld [vmem:[%s6168_s23 + $0xe0] sm:$0xff] }
  0x27   : > { %v312_v46 = vrot.slane %v239_v35, 7  ;;  %v313_v47 = vrot.slane %v240_v36, 7  ;;  %v391_v48 = vrot.slane %v240_v36, 6  ;;  %v6332_v53 = vsel %vm477_vm1, %v503_v31, %v504_v18 }
  0x28   : > { %10058 = vst [vmem:[#allocation19_spill] sm:$0xff] %v6332_v53  ;;  %v508_v54 = vrot.slane %v6313_v39, 1  ;;  %v6337_v59 = vsel %vm287_vm0, %v237_v7, %v309_v21  ;;  %v6342_v60 = vsel %vm477_vm1, %v509_v41, %v511_v42  ;;  %v514_v61 = vrot.slane %v6323_v43, 1  ;;  %v243_v7 = vld [vmem:[%s6168_s23 + $0xa0] sm:$0xff] }
  0x29   : > { %571 = vrot.lane.b32.xlu1 %v6298_v24, %s6110_s24  ;;  %10059 = vst [vmem:[#allocation20_spill] sm:$0xff] %v6342_v60  ;;  %v516_v63 = vrot.slane %v6328_v44, 1  ;;  %v315_v0 = vrot.slane %v241_v52, 7  ;;  %v6349_v1 = vsel %vm287_vm0, %v312_v46, %v313_v47  ;;  %v6352_v2 = vsel %vm287_vm0, %v313_v47, %v391_v48  ;;  %v245_v47 = vld [vmem:[%s6168_s23 + $0xb0] sm:$0xff]  ;;  %v246_v48 = vld [vmem:[%s6168_s23 + $0xb8] sm:$0xff] }
  0x2a   : > { %569 = vrot.lane.b32.xlu0 %v6307_v30, %s6110_s24  ;;  %v316_v5 = vrot.slane %v242_v58, 7  ;;  %v392_v6 = vrot.slane %v242_v58, 6  ;;  %v6356_v8 = vsel %vm477_vm1, %v508_v54, %v509_v41  ;;  %v513_v10 = vrot.slane %v6337_v59, 1  ;;  %v250_v30 = vld [vmem:[%s6168_s23 + $0xd8] sm:$0xff] }
  0x2b   : > { %10060 = vst [vmem:[#allocation21_spill] sm:$0xff] %v6356_v8  ;;  %v6361_v18 = vsel %vm287_vm0, %v239_v35, %v312_v46  ;;  %v6366_v20 = vsel %vm477_vm1, %v514_v61, %v516_v63  ;;  %v519_v21 = vrot.slane %v6349_v1, 1  ;;  %v521_v22 = vrot.slane %v6352_v2, 1 }
  0x2c   : > { %10061 = vst [vmem:[#allocation22_spill] sm:$0xff] %v6366_v20  ;;  %v318_v28 = vrot.slane %v243_v7, 7  ;;  %v6373_v31 = vsel %vm287_vm0, %v315_v0, %v316_v5  ;;  %v6376_v35 = vsel %vm287_vm0, %v316_v5, %v392_v6  ;;  %v319_v36 = vrot.slane %v244_v12, 7 }
  0x2d   : > { %575 = vrot.lane.b32.xlu1 %v6318_v40, %s6110_s24  ;;  %v393_v41 = vrot.slane %v244_v12, 6  ;;  %v6379_v42 = vsel %vm477_vm1, %v513_v10, %v514_v61  ;;  %v518_v46 = vrot.slane %v6361_v18, 1  ;;  %v6385_v54 = vsel %vm287_vm0, %v241_v52, %v315_v0  ;;  %v249_v40 = vld [vmem:[%s6168_s23 + $0xd0] sm:$0xff] }
  0x2e   : > { %573 = vrot.lane.b32.xlu0 %v6332_v53, %s6110_s24  ;;  %10062 = vst [vmem:[#allocation23_spill] sm:$0xff] %v6379_v42  ;;  %v6390_v58 = vsel %vm477_vm1, %v519_v21, %v521_v22  ;;  %v524_v63 = vrot.slane %v6373_v31, 1  ;;  %v526_v61 = vrot.slane %v6376_v35, 1  ;;  %v6395_v5 = vsel %vm287_vm0, %v243_v7, %v318_v28  ;;  %v247_v7 = vld [vmem:[%s6168_s23 + $0xc0] sm:$0xff] }
  0x2f   : > { %10063 = vst [vmem:[#allocation24_spill] sm:$0xff] %v6390_v58  ;;  %v6400_v6 = vsel %vm287_vm0, %v318_v28, %v319_v36  ;;  %v6403_v52 = vsel %vm287_vm0, %v319_v36, %v393_v41  ;;  %v321_v0 = vrot.slane %v245_v47, 7  ;;  %v322_v10 = vrot.slane %v246_v48, 7 }
  0x30   : > { %v6406_v12 = vsel %vm477_vm1, %v518_v46, %v519_v21  ;;  %v523_v22 = vrot.slane %v6385_v54, 1  ;;  %v6414_v28 = vsel %vm477_vm1, %v524_v63, %v526_v61  ;;  %v529_v36 = vrot.slane %v6400_v6, 1 }
  0x31   : > { %579 = vrot.lane.b32.xlu1 %v6342_v60, %s6110_s24  ;;  %10064 = vst [vmem:[#allocation25_spill] sm:$0xff] %v6406_v12  ;;  %10065 = vst [vmem:[#allocation26_spill] sm:$0xff] %v6414_v28  ;;  %v531_v41 = vrot.slane %v6403_v52, 1  ;;  %v528_v21 = vrot.slane %v6395_v5, 1  ;;  %v6422_v46 = vsel %vm287_vm0, %v321_v0, %v322_v10  ;;  %v396_v24 = vrot.slane %v250_v30, 6 }
  0x32   : > { %577 = vrot.lane.b32.xlu0 %v6356_v8, %s6110_s24  ;;  %v248_v8 = vld [vmem:[%s6168_s23 + $0xc8] sm:$0xff]  ;;  %10066 = vst [vmem:[#allocation27_spill] sm:$0xff] %v6422_v46  ;;  %v6428_v61 = vsel %vm477_vm1, %v523_v22, %v524_v63 }
  0x33   : > { %10068 = vst [vmem:[#allocation29_spill] sm:$0xff] %v6428_v61  ;;  %v395_v53 = vrot.slane %v248_v8, 6 }
  0x35   : > { %583 = vrot.lane.b32.xlu1 %v6366_v20, %s6110_s24  ;;  %v394_v20 = vrot.slane %v246_v48, 6  ;;  %v6425_v48 = vsel %vm287_vm0, %v245_v47, %v321_v0  ;;  %v534_v47 = vrot.slane %v6422_v46, 1 }
  0x36   : > { %581 = vrot.lane.b32.xlu0 %v6379_v42, %s6110_s24  ;;  %10067 = vst [vmem:[#allocation28_spill] sm:$0xff] %v6425_v48  ;;  %v324_v42 = vrot.slane %v247_v7, 7  ;;  %v533_v0 = vrot.slane %v6425_v48, 1 }
  0x37   : > { %v6431_v60 = vsel %vm287_vm0, %v322_v10, %v394_v20  ;;  %v6445_v20 = vsel %vm477_vm1, %v528_v21, %v529_v36 }
  0x38   : > { %10070 = vst [vmem:[#allocation31_spill] sm:$0xff] %v6445_v20  ;;  %v6452_v10 = vsel %vm287_vm0, %v247_v7, %v324_v42 }
  0x39   : > { %587 = vrot.lane.b32.xlu1 %v6390_v58, %s6110_s24  ;;  %v325_v58 = vrot.slane %v248_v8, 7  ;;  %v536_v8 = vrot.slane %v6431_v60, 1  ;;  %10072 = vst [vmem:[#allocation33_spill] sm:$0xff] %v6452_v10 }
  0x3a   : > { %585 = vrot.lane.b32.xlu0 %v6406_v12, %s6110_s24  ;;  %v6438_v12 = vsel %vm477_vm1, %v529_v36, %v531_v41  ;;  %v327_v41 = vrot.slane %v249_v40, 7  ;;  %v6462_v36 = vsel %vm477_vm1, %v533_v0, %v534_v47  ;;  %v331_v0 = vrot.slane %v252_v3, 7 }
  0x3b   : > { %10069 = vst [vmem:[#allocation30_spill] sm:$0xff] %v6438_v12  ;;  %v6449_v63 = vsel %vm287_vm0, %v324_v42, %v325_v58  ;;  %v6455_v22 = vsel %vm287_vm0, %v325_v58, %v395_v53  ;;  %10073 = vst [vmem:[#allocation34_spill] sm:$0xff] %v6462_v36  ;;  %v6468_v42 = vsel %vm477_vm1, %v534_v47, %v536_v8  ;;  %v330_v58 = vrot.slane %v251_v9, 7 }
  0x3c   : > { %10071 = vst [vmem:[#allocation32_spill] sm:$0xff] %v6449_v63  ;;  %v539_v21 = vrot.slane %v6449_v63, 1  ;;  %10074 = vst [vmem:[#allocation35_spill] sm:$0xff] %v6468_v42  ;;  %v541_v53 = vrot.slane %v6455_v22, 1  ;;  %v6479_v57 = vsel %vm287_vm0, %v249_v40, %v327_v41 }
  0x3d   : > { %591 = vrot.lane.b32.xlu1 %v6414_v28, %s6110_s24  ;;  %v328_v28 = vrot.slane %v250_v30, 7  ;;  %v538_v30 = vrot.slane %v6452_v10, 1  ;;  %10076 = vst [vmem:[#allocation37_spill] sm:$0xff] %v6479_v57  ;;  %v6495_v40 = vsel %vm287_vm0, %v330_v58, %v331_v0 }
  0x3e   : > { %589 = vrot.lane.b32.xlu0 %v6428_v61, %s6110_s24  ;;  %v397_v61 = vrot.slane %v252_v3, 6  ;;  %v6486_v47 = vsel %vm477_vm1, %v539_v21, %v541_v53  ;;  %v543_v3 = vrot.slane %v6479_v57, 1  ;;  %10079 = vst [vmem:[#allocation40_spill] sm:$0xff] %v6495_v40  ;;  %v549_v53 = vrot.slane %v6495_v40, 1 }
  0x3f   : > { %v6473_v7 = vsel %vm287_vm0, %v327_v41, %v328_v28  ;;  %10077 = vst [vmem:[#allocation38_spill] sm:$0xff] %v6486_v47  ;;  %v6501_v41 = vsel %vm287_vm0, %v251_v9, %v330_v58  ;;  %v647_v58 = vrot.slane %v6197_v23, 2 }
  0x40   : > { %10075 = vst [vmem:[#allocation36_spill] sm:$0xff] %v6473_v7  ;;  %v544_v8 = vrot.slane %v6473_v7, 1  ;;  %10080 = vst [vmem:[#allocation41_spill] sm:$0xff] %v6501_v41 }
  0x41   : > { %595 = vrot.lane.b32.xlu1 %v6438_v12, %s6110_s24  ;;  %v6476_v12 = vsel %vm287_vm0, %v328_v28, %v396_v24  ;;  %v6491_v24 = vsel %vm477_vm1, %v538_v30, %v539_v21  ;;  %v6498_v28 = vsel %vm287_vm0, %v331_v0, %v397_v61  ;;  %v548_v61 = vrot.slane %v6501_v41, 1 }
  0x42   : > { %593 = vrot.lane.b32.xlu0 %v6445_v20, %s6110_s24  ;;  %v546_v20 = vrot.slane %v6476_v12, 1  ;;  %10078 = vst [vmem:[#allocation39_spill] sm:$0xff] %v6491_v24  ;;  %v551_v30 = vrot.slane %v6498_v28, 1 }
  0x43   : > { %v6526_v0 = vsel %vm477_vm1, %v548_v61, %v549_v53 }
  0x44   : > { %v6508_v21 = vsel %vm477_vm1, %v544_v8, %v546_v20  ;;  %v6521_v9 = vsel %vm477_vm1, %v549_v53, %v551_v30  ;;  %v645_v20 = vrot.slane %v6191_v19, 2  ;;  %10084 = vst [vmem:[#allocation45_spill] sm:$0xff] %v6526_v0  ;;  %v650_v30 = vrot.slane %v6177_v13, 2 }
  0x45   : > { %599 = vrot.lane.b32.xlu1 %v6468_v42, %s6110_s24  ;;  %10081 = vst [vmem:[#allocation42_spill] sm:$0xff] %v6508_v21  ;;  %10083 = vst [vmem:[#allocation44_spill] sm:$0xff] %v6521_v9  ;;  %v649_v53 = vrot.slane %v6180_v14, 2 }
  0x46   : > { %597 = vrot.lane.b32.xlu0 %v6462_v36, %s6110_s24  ;;  %v6513_v36 = vsel %vm477_vm1, %v543_v3, %v544_v8  ;;  %v644_v8 = vrot.slane %v6183_v15, 2  ;;  %v6534_v3 = vsel %vm643_vm2, %v645_v20, %v647_v58  ;;  %v655_v58 = vrot.slane %v6218_v34, 2 }
  0x47   : > { %10082 = vst [vmem:[#allocation43_spill] sm:$0xff] %v6513_v36 }
  0x48   : > { %v6539_v23 = vsel %vm643_vm2, %v644_v8, %v645_v20  ;;  %v654_v20 = vrot.slane %v6205_v29, 2 }
  0x49   : > { %603 = vrot.lane.b32.xlu1 %v6486_v47, %s6110_s24  ;;  %10085 = vst [vmem:[#allocation46_spill] sm:$0xff] %v6539_v23 }
  0x4a   : > { %601 = vrot.lane.b32.xlu0 %v6491_v24, %s6110_s24 }
  0x4d   : > { %607 = vrot.lane.b32.xlu1 %v6508_v21, %s6110_s24 }
  0x4e   : > { %605 = vrot.lane.b32.xlu0 %v6513_v36, %s6110_s24  ;;  %v652_v36 = vrot.slane %v6186_v16, 2  ;;  %v6552_v16 = vsel %vm643_vm2, %v649_v53, %v650_v30 }
  0x4f   : > { %10086 = vst [vmem:[#allocation47_spill] sm:$0xff] %v6552_v16 }
  0x50   : > { %v6547_v61 = vsel %vm643_vm2, %v650_v30, %v652_v36  ;;  %v660_v36 = vrot.slane %v6242_v50, 2  ;;  %v659_v30 = vrot.slane %v6233_v45, 2 }
  0x51   : > { %611 = vrot.lane.b32.xlu1 %v6521_v9, %s6110_s24 }
  0x52   : > { %609 = vrot.lane.b32.xlu0 %v6526_v0, %s6110_s24  ;;  %v657_v0 = vrot.slane %v6228_v38, 2  ;;  %v6565_v38 = vsel %vm643_vm2, %v654_v20, %v655_v58 }
  0x53   : > { %10087 = vst [vmem:[#allocation48_spill] sm:$0xff] %v6565_v38 }
  0x54   : > { %v6560_v8 = vsel %vm643_vm2, %v655_v58, %v657_v0  ;;  %v665_v0 = vrot.slane %v6253_v55, 2  ;;  %v664_v58 = vrot.slane %v6265_v62, 2 }
  0x55   : > { %721 = vrot.lane.b32.xlu1 %v6534_v3, %s6111_s25 }
  0x56   : > { %719 = vrot.lane.b32.xlu0 %v6539_v23, %s6111_s25  ;;  %v662_v23 = vrot.slane %v6245_v51, 2  ;;  %v6578_v51 = vsel %vm643_vm2, %v659_v30, %v660_v36 }
  0x57   : > { %10088 = vst [vmem:[#allocation49_spill] sm:$0xff] %v6578_v51 }
  0x58   : > { %v6573_v53 = vsel %vm643_vm2, %v660_v36, %v662_v23  ;;  %v670_v23 = vrot.slane %v6277_v4, 2  ;;  %v669_v36 = vrot.slane %v6289_v17, 2 }
  0x59   : > { %725 = vrot.lane.b32.xlu1 %v6547_v61, %s6111_s25 }
  0x5a   : > { %723 = vrot.lane.b32.xlu0 %v6552_v16, %s6111_s25  ;;  %v667_v16 = vrot.slane %v6256_v56, 2  ;;  %v6591_v56 = vsel %vm643_vm2, %v664_v58, %v665_v0 }
  0x5b   : > { %10089 = vst [vmem:[#allocation50_spill] sm:$0xff] %v6591_v56 }
  0x5c   : > { %v6586_v20 = vsel %vm643_vm2, %v665_v0, %v667_v16  ;;  %v675_v16 = vrot.slane %v6301_v25, 2  ;;  %v674_v0 = vrot.slane %v6313_v39, 2 }
  0x5d   : > { %729 = vrot.lane.b32.xlu1 %v6560_v8, %s6111_s25 }
  0x5e   : > { %727 = vrot.lane.b32.xlu0 %v6565_v38, %s6111_s25  ;;  %v672_v38 = vrot.slane %v6286_v11, 2  ;;  %v6604_v11 = vsel %vm643_vm2, %v669_v36, %v670_v23 }
  0x5f   : > { %10090 = vst [vmem:[#allocation51_spill] sm:$0xff] %v6604_v11 }
  0x60   : > { %v6599_v30 = vsel %vm643_vm2, %v670_v23, %v672_v38  ;;  %v680_v38 = vrot.slane %v6323_v43, 2  ;;  %v679_v23 = vrot.slane %v6337_v59, 2 }
  0x61   : > { %733 = vrot.lane.b32.xlu1 %v6573_v53, %s6111_s25 }
  0x62   : > { %731 = vrot.lane.b32.xlu0 %v6578_v51, %s6111_s25  ;;  %v677_v51 = vrot.slane %v6304_v27, 2  ;;  %v6617_v27 = vsel %vm643_vm2, %v674_v0, %v675_v16 }
  0x63   : > { %10091 = vst [vmem:[#allocation52_spill] sm:$0xff] %v6617_v27 }
  0x64   : > { %v6612_v58 = vsel %vm643_vm2, %v675_v16, %v677_v51  ;;  %v685_v51 = vrot.slane %v6349_v1, 2  ;;  %v684_v16 = vrot.slane %v6361_v18, 2 }
  0x65   : > { %737 = vrot.lane.b32.xlu1 %v6586_v20, %s6111_s25 }
  0x66   : > { %735 = vrot.lane.b32.xlu0 %v6591_v56, %s6111_s25  ;;  %v682_v56 = vrot.slane %v6328_v44, 2  ;;  %v6630_v44 = vsel %vm643_vm2, %v679_v23, %v680_v38 }
  0x68   : > { %v6625_v36 = vsel %vm643_vm2, %v680_v38, %v682_v56  ;;  %v690_v56 = vrot.slane %v6373_v31, 2  ;;  %v689_v38 = vrot.slane %v6385_v54, 2 }
  0x69   : > { %741 = vrot.lane.b32.xlu1 %v6599_v30, %s6111_s25  ;;  %10092 = vst [vmem:[#allocation53_spill] sm:$0xff] %v6625_v36 }
  0x6a   : > { %739 = vrot.lane.b32.xlu0 %v6604_v11, %s6111_s25  ;;  %v687_v11 = vrot.slane %v6352_v2, 2  ;;  %v6643_v2 = vsel %vm643_vm2, %v684_v16, %v685_v51 }
  0x6b   : > { %10094 = vst [vmem:[#allocation55_spill] sm:$0xff] %v6643_v2 }
  0x6c   : > { %v6638_v0 = vsel %vm643_vm2, %v685_v51, %v687_v11  ;;  %v695_v11 = vrot.slane %v6400_v6, 2  ;;  %v694_v51 = vrot.slane %v6395_v5, 2 }
  0x6d   : > { %745 = vrot.lane.b32.xlu1 %v6612_v58, %s6111_s25  ;;  %10093 = vst [vmem:[#allocation54_spill] sm:$0xff] %v6638_v0 }
  0x6e   : > { %743 = vrot.lane.b32.xlu0 %v6617_v27, %s6111_s25  ;;  %v692_v27 = vrot.slane %v6376_v35, 2  ;;  %v6656_v35 = vsel %vm643_vm2, %v689_v38, %v690_v56 }
  0x6f   : > { %10096 = vst [vmem:[#allocation57_spill] sm:$0xff] %v6656_v35 }
  0x70   : > { %v6651_v23 = vsel %vm643_vm2, %v690_v56, %v692_v27  ;;  %v700_v27 = vrot.slane %v6422_v46, 2  ;;  %v699_v56 = vrot.slane %v6425_v48, 2 }
  0x71   : > { %749 = vrot.lane.b32.xlu1 %v6625_v36, %s6111_s25  ;;  %10095 = vst [vmem:[#allocation56_spill] sm:$0xff] %v6651_v23  ;;  %v697_v36 = vrot.slane %v6403_v52, 2  ;;  %v6669_v52 = vsel %vm643_vm2, %v694_v51, %v695_v11 }
  0x72   : > { %747 = vrot.lane.b32.xlu0 %v6630_v44, %s6111_s25  ;;  %10098 = vst [vmem:[#allocation59_spill] sm:$0xff] %v6669_v52 }
  0x73   : > { %v6664_v16 = vsel %vm643_vm2, %v695_v11, %v697_v36  ;;  %v705_v36 = vrot.slane %v6449_v63, 2  ;;  %v704_v11 = vrot.slane %v6452_v10, 2 }
  0x74   : > { %10097 = vst [vmem:[#allocation58_spill] sm:$0xff] %v6664_v16 }
  0x75   : > { %753 = vrot.lane.b32.xlu1 %v6638_v0, %s6111_s25  ;;  %v702_v0 = vrot.slane %v6431_v60, 2  ;;  %v6682_v60 = vsel %vm643_vm2, %v699_v56, %v700_v27 }
  0x76   : > { %751 = vrot.lane.b32.xlu0 %v6643_v2, %s6111_s25  ;;  %10100 = vst [vmem:[#allocation61_spill] sm:$0xff] %v6682_v60 }
  0x77   : > { %v6677_v38 = vsel %vm643_vm2, %v700_v27, %v702_v0  ;;  %v710_v0 = vrot.slane %v6473_v7, 2  ;;  %v709_v27 = vrot.slane %v6479_v57, 2 }
  0x78   : > { %10099 = vst [vmem:[#allocation60_spill] sm:$0xff] %v6677_v38 }
  0x79   : > { %757 = vrot.lane.b32.xlu1 %v6651_v23, %s6111_s25  ;;  %v707_v23 = vrot.slane %v6455_v22, 2  ;;  %v6695_v22 = vsel %vm643_vm2, %v704_v11, %v705_v36 }
  0x7a   : > { %755 = vrot.lane.b32.xlu0 %v6656_v35, %s6111_s25  ;;  %10102 = vst [vmem:[#allocation63_spill] sm:$0xff] %v6695_v22 }
  0x7b   : > { %v6690_v51 = vsel %vm643_vm2, %v705_v36, %v707_v23  ;;  %v715_v23 = vrot.slane %v6495_v40, 2  ;;  %v714_v36 = vrot.slane %v6501_v41, 2 }
  0x7c   : > { %10101 = vst [vmem:[#allocation62_spill] sm:$0xff] %v6690_v51 }
  0x7d   : > { %761 = vrot.lane.b32.xlu1 %v6664_v16, %s6111_s25  ;;  %v712_v16 = vrot.slane %v6476_v12, 2  ;;  %v6708_v12 = vsel %vm643_vm2, %v709_v27, %v710_v0 }
  0x7e   : > { %759 = vrot.lane.b32.xlu0 %v6669_v52, %s6111_s25  ;;  %10104 = vst [vmem:[#allocation65_spill] sm:$0xff] %v6708_v12 }
  0x7f   : > { %v6703_v56 = vsel %vm643_vm2, %v710_v0, %v712_v16 }
  0x80   : > { %10103 = vst [vmem:[#allocation64_spill] sm:$0xff] %v6703_v56 }
  0x81   : > { %765 = vrot.lane.b32.xlu1 %v6677_v38, %s6111_s25  ;;  %v717_v38 = vrot.slane %v6498_v28, 2 }
  0x82   : > { %763 = vrot.lane.b32.xlu0 %v6682_v60, %s6111_s25 }
  0x83   : > { %v6716_v11 = vsel %vm643_vm2, %v715_v23, %v717_v38 }
  0x84   : > { %10105 = vst [vmem:[#allocation66_spill] sm:$0xff] %v6716_v11 }
  0x85   : > { %769 = vrot.lane.b32.xlu1 %v6690_v51, %s6111_s25  ;;  %v6721_v51 = vsel %vm643_vm2, %v714_v36, %v715_v23 }
  0x86   : > { %767 = vrot.lane.b32.xlu0 %v6695_v22, %s6111_s25  ;;  %10107 = vst [vmem:[#allocation68_spill] sm:$0xff] %v6721_v51 }
  0x89   : > { %773 = vrot.lane.b32.xlu1 %v6703_v56, %s6111_s25 }
  0x8a   : > { %771 = vrot.lane.b32.xlu0 %v6708_v12, %s6111_s25 }
  0x8b   : > { %v6718_v16 = vpop.permute.xlu1 %557 }
  0x8c   : > { %10106 = vst [vmem:[#allocation67_spill] sm:$0xff] %v6718_v16  ;;  %v6723_v28 = vpop.permute.xlu0 %553 }
  0x8d   : > { %10108 = vst [vmem:[#allocation69_spill] sm:$0xff] %v6723_v28  ;;  %777 = vrot.lane.b32.xlu1 %v6716_v11, %s6111_s25 }
  0x8e   : > { %775 = vrot.lane.b32.xlu0 %v6721_v51, %s6111_s25 }
  0x8f   : > { %v6729_v0 = vpop.permute.xlu1 %559 }
  0x90   : > { %10109 = vst [vmem:[#allocation70_spill] sm:$0xff] %v6729_v0  ;;  %v6731_v27 = vpop.permute.xlu0 %555 }
  0x91   : > { %10110 = vst [vmem:[#allocation71_spill] sm:$0xff] %v6731_v27  ;;  %812 = vrot.lane.b32.xlu1 %v6191_v19, %s6112_s26 }
  0x92   : > { %810 = vrot.lane.b32.xlu0 %v6183_v15, %s6112_s26 }
  0x93   : > { %v6737_v38 = vpop.permute.xlu1 %563 }
  0x94   : > { %10111 = vst [vmem:[#allocation72_spill] sm:$0xff] %v6737_v38  ;;  %v6739_v23 = vpop.permute.xlu0 %561 }
  0x95   : > { %10112 = vst [vmem:[#allocation73_spill] sm:$0xff] %v6739_v23  ;;  %816 = vrot.lane.b32.xlu1 %v6177_v13, %s6112_s26  ;;  %v10147_v13 = vld [vmem:[#allocation24_spill] sm:$0xff] }
  0x96   : > { %814 = vrot.lane.b32.xlu0 %v6180_v14, %s6112_s26 }
  0x97   : > { %v6745_v36 = vpop.permute.xlu1 %567 }
  0x98   : > { %10113 = vst [vmem:[#allocation74_spill] sm:$0xff] %v6745_v36  ;;  %v6747_v11 = vpop.permute.xlu0 %565 }
  0x99   : > { %10114 = vst [vmem:[#allocation75_spill] sm:$0xff] %v6747_v11  ;;  %820 = vrot.lane.b32.xlu1 %v6218_v34, %s6112_s26  ;;  %v6837_v34 = vld [vmem:[%s6168_s23 + $0xf8] sm:$0xff] }
  0x9a   : > { %818 = vrot.lane.b32.xlu0 %v6205_v29, %s6112_s26 }
  0x9b   : > { %v6753_v51 = vpop.permute.xlu1 %571 }
  0x9c   : > { %v6755_v56 = vpop.permute.xlu0 %569 }
  0x9d   : > { %10115 = vst [vmem:[#allocation76_spill] sm:$0xff] %v6755_v56  ;;  %824 = vrot.lane.b32.xlu1 %v6242_v50, %s6112_s26 }
  0x9e   : > { %822 = vrot.lane.b32.xlu0 %v6233_v45, %s6112_s26  ;;  %v253_v45 = vld [vmem:[%s6168_s23 + $0xf0] sm:$0xff]  ;;  %s6121_s23 = smov 64  }
  0x9f   : > { %v6761_v12 = vpop.permute.xlu1 %575 }
  0xa0   : > { %v6763_v36 = vpop.permute.xlu0 %573 }
  0xa1   : > { %828 = vrot.lane.b32.xlu1 %v6253_v55, %s6112_s26 }
  0xa2   : > { %826 = vrot.lane.b32.xlu0 %v6265_v62, %s6112_s26 }
  0xa3   : > { %v6769_v11 = vpop.permute.xlu1 %579 }
  0xa4   : > { %v6771_v22 = vpop.permute.xlu0 %577 }
  0xa5   : > { %832 = vrot.lane.b32.xlu1 %v6277_v4, %s6112_s26 }
  0xa6   : > { %830 = vrot.lane.b32.xlu0 %v6289_v17, %s6112_s26 }
  0xa7   : > { %v6777_v56 = vpop.permute.xlu1 %583 }
  0xa8   : > { %v6779_v38 = vpop.permute.xlu0 %581 }
  0xa9   : > { %836 = vrot.lane.b32.xlu1 %v6301_v25, %s6112_s26 }
  0xaa   : > { %834 = vrot.lane.b32.xlu0 %v6313_v39, %s6112_s26 }
  0xab   : > { %v6785_v23 = vpop.permute.xlu1 %587 }
  0xac   : > { %v6787_v0 = vpop.permute.xlu0 %585 }
  0xad   : > { %840 = vrot.lane.b32.xlu1 %v6323_v43, %s6112_s26 }
  0xae   : > { %838 = vrot.lane.b32.xlu0 %v6337_v59, %s6112_s26 }
  0xaf   : > { %v6793_v60 = vpop.permute.xlu1 %591 }
  0xb0   : > { %v6795_v16 = vpop.permute.xlu0 %589 }
  0xb1   : > { %844 = vrot.lane.b32.xlu1 %v6349_v1, %s6112_s26 }
  0xb2   : > { %842 = vrot.lane.b32.xlu0 %v6361_v18, %s6112_s26 }
  0xb3   : > { %v6801_v52 = vpop.permute.xlu1 %595 }
  0xb4   : > { %v6803_v19 = vpop.permute.xlu0 %593 }
  0xb5   : > { %848 = vrot.lane.b32.xlu1 %v6373_v31, %s6112_s26 }
  0xb6   : > { %846 = vrot.lane.b32.xlu0 %v6385_v54, %s6112_s26 }
  0xb7   : > { %v6809_v27 = vpop.permute.xlu1 %599 }
  0xb8   : > { %10116 = vst [vmem:[#allocation77_spill] sm:$0xff] %v6809_v27  ;;  %v6811_v15 = vpop.permute.xlu0 %597  ;;  %v10150_v27 = vld [vmem:[#allocation26_spill] sm:$0xff] }
  0xb9   : > { %10117 = vst [vmem:[#allocation78_spill] sm:$0xff] %v6811_v15  ;;  %852 = vrot.lane.b32.xlu1 %v6400_v6, %s6112_s26 }
  0xba   : > { %850 = vrot.lane.b32.xlu0 %v6395_v5, %s6112_s26 }
  0xbb   : > { %v6817_v28 = vpop.permute.xlu1 %603 }
  0xbc   : > { %10118 = vst [vmem:[#allocation79_spill] sm:$0xff] %v6817_v28  ;;  %v6819_v35 = vpop.permute.xlu0 %601 }
  0xbd   : > { %10119 = vst [vmem:[#allocation80_spill] sm:$0xff] %v6819_v35  ;;  %856 = vrot.lane.b32.xlu1 %v6422_v46, %s6112_s26 }
  0xbe   : > { %854 = vrot.lane.b32.xlu0 %v6425_v48, %s6112_s26  ;;  %v10144_v48 = vld [vmem:[#allocation22_spill] sm:$0xff] }
  0xbf   : > { %v6825_v2 = vpop.permute.xlu1 %607 }
  0xc0   : > { %10120 = vst [vmem:[#allocation81_spill] sm:$0xff] %v6825_v2  ;;  %v6827_v62 = vpop.permute.xlu0 %605  ;;  %v9942_v2 = vrot.slane %v6837_v34, 7 }
  0xc1   : > { %10121 = vst [vmem:[#allocation82_spill] sm:$0xff] %v6827_v62  ;;  %860 = vrot.lane.b32.xlu1 %v6449_v63, %s6112_s26  ;;  %v333_v62 = vrot.slane %v253_v45, 7 }
  0xc2   : > { %858 = vrot.lane.b32.xlu0 %v6452_v10, %s6112_s26 }
  0xc3   : > { %v6833_v50 = vpop.permute.xlu1 %611 }
  0xc4   : > { %10122 = vst [vmem:[#allocation83_spill] sm:$0xff] %v6833_v50  ;;  %v6839_v29 = vpop.permute.xlu0 %609 }
  0xc5   : > { %10123 = vst [vmem:[#allocation84_spill] sm:$0xff] %v6839_v29  ;;  %864 = vrot.lane.b32.xlu1 %v6473_v7, %s6112_s26  ;;  %v6857_v29 = vsel %vm287_vm0, %v333_v62, %v9942_v2 }
  0xc6   : > { %862 = vrot.lane.b32.xlu0 %v6479_v57, %s6112_s26  ;;  %10126 = vst [vmem:[#allocation87_spill] sm:$0xff] %v6857_v29  ;;  %v6862_v57 = vsel %vm287_vm0, %v253_v45, %v333_v62 }
  0xc7   : > { %v6846_v35 = vpop.permute.xlu1 %721  ;;  %10128 = vst [vmem:[#allocation89_spill] sm:$0xff] %v6862_v57 }
  0xc8   : > { %10124 = vst [vmem:[#allocation85_spill] sm:$0xff] %v6846_v35  ;;  %v6848_v63 = vpop.permute.xlu0 %719 }
  0xc9   : > { %10125 = vst [vmem:[#allocation86_spill] sm:$0xff] %v6848_v63  ;;  %868 = vrot.lane.b32.xlu1 %v6495_v40, %s6112_s26 }
  0xca   : > { %866 = vrot.lane.b32.xlu0 %v6501_v41, %s6112_s26 }
  0xcb   : > { %v6859_v50 = vpop.permute.xlu1 %725 }
  0xcc   : > { %10127 = vst [vmem:[#allocation88_spill] sm:$0xff] %v6859_v50  ;;  %v6864_v7 = vpop.permute.xlu0 %723 }
  0xcd   : > { %10129 = vst [vmem:[#allocation90_spill] sm:$0xff] %v6864_v7  ;;  %872 = vrot.lane.b32.xlu1 %v6857_v29, %s6112_s26 }
  0xce   : > { %870 = vrot.lane.b32.xlu0 %v6862_v57, %s6112_s26 }
  0xcf   : > { %v6870_v35 = vpop.permute.xlu1 %729 }
  0xd0   : > { %10130 = vst [vmem:[#allocation91_spill] sm:$0xff] %v6870_v35  ;;  %v6872_v63 = vpop.permute.xlu0 %727 }
  0xd1   : > { %10131 = vst [vmem:[#allocation92_spill] sm:$0xff] %v6872_v63  ;;  %914 = vrot.lane.b32.xlu1 %v6225_v37, %s6113_s27  ;;  %v10135_v37 = vld [vmem:[#allocation12_spill] sm:$0xff]  ;;  %v10137_v63 = vld [vmem:[#allocation15_spill] sm:$0xff] }
  0xd2   : > { %912 = vrot.lane.b32.xlu0 %v6212_v32, %s6113_s27 }
  0xd3   : > { %v6878_v45 = vpop.permute.xlu1 %733 }
  0xd4   : > { %10132 = vst [vmem:[#allocation93_spill] sm:$0xff] %v6878_v45  ;;  %v6880_v62 = vpop.permute.xlu0 %731 }
  0xd5   : > { %10133 = vst [vmem:[#allocation94_spill] sm:$0xff] %v6880_v62  ;;  %918 = vrot.lane.b32.xlu1 %v6215_v33, %s6113_s27  ;;  %v10136_v62 = vld [vmem:[#allocation14_spill] sm:$0xff]  ;;  %v10142_v33 = vld [vmem:[#allocation20_spill] sm:$0xff] }
  0xd6   : > { %916 = vrot.lane.b32.xlu0 %v6201_v26, %s6113_s27 }
  0xd7   : > { %v6886_v2 = vpop.permute.xlu1 %737 }
  0xd8   : > { %v6888_v35 = vpop.permute.xlu0 %735 }
  0xd9   : > { %10134 = vst [vmem:[#allocation95_spill] sm:$0xff] %v6888_v35  ;;  %922 = vrot.lane.b32.xlu1 %v6239_v49, %s6113_s27  ;;  %v10138_v35 = vld [vmem:[#allocation16_spill] sm:$0xff]  ;;  %v10139_v49 = vld [vmem:[#allocation17_spill] sm:$0xff] }
  0xda   : > { %920 = vrot.lane.b32.xlu0 %v10135_v37, %s6113_s27  ;;  %v10140_v37 = vld [vmem:[#allocation18_spill] sm:$0xff] }
  0xdb   : > { %v6894_v32 = vpop.permute.xlu1 %741 }
  0xdc   : > { %v6896_v45 = vpop.permute.xlu0 %739 }
  0xdd   : > { %926 = vrot.lane.b32.xlu1 %v10136_v62, %s6113_s27  ;;  %v10141_v62 = vld [vmem:[#allocation19_spill] sm:$0xff] }
  0xde   : > { %924 = vrot.lane.b32.xlu0 %v10137_v63, %s6113_s27 }
  0xdf   : > { %v6902_v50 = vpop.permute.xlu1 %745 }
  0xe0   : > { %v6904_v7 = vpop.permute.xlu0 %743 }
  0xe1   : > { %930 = vrot.lane.b32.xlu1 %v10138_v35, %s6113_s27  ;;  %v10143_v35 = vld [vmem:[#allocation21_spill] sm:$0xff] }
  0xe2   : > { %928 = vrot.lane.b32.xlu0 %v10139_v49, %s6113_s27 }
  0xe3   : > { %v6910_v41 = vpop.permute.xlu1 %749 }
  0xe4   : > { %v6912_v40 = vpop.permute.xlu0 %747 }
  0xe5   : > { %934 = vrot.lane.b32.xlu1 %v10140_v37, %s6113_s27  ;;  %v10145_v37 = vld [vmem:[#allocation23_spill] sm:$0xff] }
  0xe6   : > { %932 = vrot.lane.b32.xlu0 %v10141_v62, %s6113_s27 }
  0xe7   : > { %v6918_v63 = vpop.permute.xlu1 %753 }
  0xe8   : > { %v6920_v10 = vpop.permute.xlu0 %751 }
  0xe9   : > { %938 = vrot.lane.b32.xlu1 %v10142_v33, %s6113_s27  ;;  %v10148_v33 = vld [vmem:[#allocation25_spill] sm:$0xff] }
  0xea   : > { %936 = vrot.lane.b32.xlu0 %v10143_v35, %s6113_s27 }
  0xeb   : > { %v6926_v49 = vpop.permute.xlu1 %757 }
  0xec   : > { %v6928_v28 = vpop.permute.xlu0 %755 }
  0xed   : > { %942 = vrot.lane.b32.xlu1 %v10144_v48, %s6113_s27  ;;  %v10151_v48 = vld [vmem:[#allocation29_spill] sm:$0xff] }
  0xee   : > { %940 = vrot.lane.b32.xlu0 %v10145_v37, %s6113_s27 }
  0xef   : > { %v6934_v62 = vpop.permute.xlu1 %761 }
  0xf0   : > { %v6936_v15 = vpop.permute.xlu0 %759 }
  0xf1   : > { %10146 = vst [vmem:[#allocation96_spill] sm:$0xff] %v6936_v15  ;;  %946 = vrot.lane.b32.xlu1 %v10147_v13, %s6113_s27  ;;  %v10154_v15 = vld [vmem:[#allocation30_spill] sm:$0xff]  ;;  %v10155_v13 = vld [vmem:[#allocation31_spill] sm:$0xff] }
  0xf2   : > { %944 = vrot.lane.b32.xlu0 %v10148_v33, %s6113_s27 }
  0xf3   : > { %v6942_v35 = vpop.permute.xlu1 %765 }
  0xf4   : > { %10149 = vst [vmem:[#allocation97_spill] sm:$0xff] %v6942_v35  ;;  %v6944_v46 = vpop.permute.xlu0 %763 }
  0xf5   : > { %950 = vrot.lane.b32.xlu1 %v10150_v27, %s6113_s27  ;;  %v10156_v27 = vld [vmem:[#allocation34_spill] sm:$0xff] }
  0xf6   : > { %948 = vrot.lane.b32.xlu0 %v10151_v48, %s6113_s27  ;;  %v398_v48 = vrot.slane %v6837_v34, 6 }
  0xf7   : > { %v6950_v37 = vpop.permute.xlu1 %769 }
  0xf8   : > { %10152 = vst [vmem:[#allocation98_spill] sm:$0xff] %v6950_v37  ;;  %v6952_v26 = vpop.permute.xlu0 %767 }
  0xf9   : > { %10153 = vst [vmem:[#allocation99_spill] sm:$0xff] %v6952_v26  ;;  %954 = vrot.lane.b32.xlu1 %v10154_v15, %s6113_s27  ;;  %v10160_v15 = vrot.slane %v6837_v34, 7 }
  0xfa   : > { %952 = vrot.lane.b32.xlu0 %v10155_v13, %s6113_s27 }
  0xfb   : > { %v6958_v33 = vpop.permute.xlu1 %773 }
  0xfc   : > { %v6960_v35 = vpop.permute.xlu0 %771 }
  0xfd   : > { %958 = vrot.lane.b32.xlu1 %v6468_v42, %s6113_s27  ;;  %v6980_v42 = vsel %vm287_vm0, %v10160_v15, %v398_v48  ;;  %v10163_v15 = vld [vmem:[#allocation45_spill] sm:$0xff] }
  0xfe   : > { %956 = vrot.lane.b32.xlu0 %v10156_v27, %s6113_s27  ;;  %10161 = vst [vmem:[#allocation103_spill] sm:$0xff] %v6980_v42 }
  0xff   : > { %v6967_v37 = vpop.permute.xlu1 %777 }
 0x100   : > { %10157 = vst [vmem:[#allocation100_spill] sm:$0xff] %v6967_v37  ;;  %v6969_v26 = vpop.permute.xlu0 %775  ;;  %v10162_v37 = vld [vmem:[#allocation43_spill] sm:$0xff] }
 0x101   : > { %10158 = vst [vmem:[#allocation101_spill] sm:$0xff] %v6969_v26  ;;  %962 = vrot.lane.b32.xlu1 %v6486_v47, %s6113_s27  ;;  %v908_v26 = vrot.slane %v6857_v29, 1  ;;  %v910_v47 = vrot.slane %v6980_v42, 1 }
 0x102   : > { %960 = vrot.lane.b32.xlu0 %v6491_v24, %s6113_s27  ;;  %v907_v24 = vrot.slane %v6862_v57, 1 }
 0x103   : > { %v6975_v13 = vpop.permute.xlu1 %812  ;;  %v7000_v48 = vsel %vm477_vm1, %v908_v26, %v910_v47  ;;  %v10166_v47 = vld [vmem:[#allocation46_spill] sm:$0xff] }
 0x104   : > { %10159 = vst [vmem:[#allocation102_spill] sm:$0xff] %v6975_v13  ;;  %v6982_v27 = vpop.permute.xlu0 %810  ;;  %10164 = vst [vmem:[#allocation104_spill] sm:$0xff] %v7000_v48 }
 0x105   : > { %966 = vrot.lane.b32.xlu1 %v6508_v21, %s6113_s27 }
 0x106   : > { %964 = vrot.lane.b32.xlu0 %v10162_v37, %s6113_s27  ;;  %v7005_v37 = vsel %vm477_vm1, %v907_v24, %v908_v26 }
 0x107   : > { %v6991_v13 = vpop.permute.xlu1 %816  ;;  %10165 = vst [vmem:[#allocation105_spill] sm:$0xff] %v7005_v37 }
 0x108   : > { %v6993_v34 = vpop.permute.xlu0 %814 }
 0x109   : > { %970 = vrot.lane.b32.xlu1 %v6521_v9, %s6113_s27 }
 0x10a   : > { %968 = vrot.lane.b32.xlu0 %v10163_v15, %s6113_s27 }
 0x10b   : > { %v7002_v29 = vpop.permute.xlu1 %820 }
 0x10c   : > { %v7007_v42 = vpop.permute.xlu0 %818 }
 0x10d   : > { %974 = vrot.lane.b32.xlu1 %v7000_v48, %s6113_s27  ;;  %v10168_v48 = vld [vmem:[#allocation47_spill] sm:$0xff] }
 0x10e   : > { %972 = vrot.lane.b32.xlu0 %v7005_v37, %s6113_s27  ;;  %v1389_v37 = vsel %vm1379_vm3, %v6253_v55, %v6753_v51  ;;  %v1391_v51 = vsel %vm1379_vm3, %v6277_v4, %v6761_v12 }
 0x10f   : > { %v7013_v57 = vpop.permute.xlu1 %824 }
 0x110   : > { %v7015_v9 = vpop.permute.xlu0 %822 }
 0x111   : > { %1015 = vrot.lane.b32.xlu1 %v6534_v3, %s6114_s28  ;;  %v1420_v3 = vsel %vm1410_vm4, %v1389_v37, %v6886_v2  ;;  %v1390_v2 = vsel %vm1379_vm3, %v6289_v17, %v6763_v36  ;;  %v1422_v37 = vsel %vm1410_vm4, %v1391_v51, %v6894_v32  ;;  %v1393_v36 = vsel %vm1379_vm3, %v6301_v25, %v6769_v11  ;;  %v10173_v32 = vld [vmem:[#allocation49_spill] sm:$0xff] }
 0x112   : > { %1013 = vrot.lane.b32.xlu0 %v10166_v47, %s6114_s28  ;;  %v1424_v51 = vsel %vm1410_vm4, %v1393_v36, %v6902_v50  ;;  %v1640_v50 = vld [vmem:[%s9836_s1 + $0x8] sm:$0xff] }
 0x113   : > { %v7021_v26 = vpop.permute.xlu1 %828 }
 0x114   : > { %10167 = vst [vmem:[#allocation46_spill] sm:$0xff] %v7021_v26  ;;  %v7023_v24 = vpop.permute.xlu0 %826  ;;  %v10171_v26 = vld [vmem:[#allocation48_spill] sm:$0xff] }
 0x115   : > { %1019 = vrot.lane.b32.xlu1 %v6547_v61, %s6114_s28 }
 0x116   : > { %1017 = vrot.lane.b32.xlu0 %v10168_v48, %s6114_s28 }
 0x117   : > { %v833_v47 = vpop.permute.xlu1 %832 }
 0x118   : > { %v7035_v15 = vsel %vm1441_vm5, %v1420_v3, %v833_v47  ;;  %v7037_v21 = vpop.permute.xlu0 %830  ;;  %v1421_v47 = vsel %vm1410_vm4, %v1390_v2, %v6896_v45  ;;  %v1392_v45 = vsel %vm1379_vm3, %v6313_v39, %v6771_v22  ;;  %v1639_v22 = vld [vmem:[%s9836_s1] sm:$0xff] }
 0x119   : > { %10169 = vst [vmem:[#allocation47_spill] sm:$0xff] %v7035_v15  ;;  %10170 = vst [vmem:[#allocation106_spill] sm:$0xff] %v7037_v21  ;;  %1023 = vrot.lane.b32.xlu1 %v6560_v8, %s6114_s28  ;;  %v6045_v36 = vpack.c.bf16 %v1640_v50, %v1639_v22  ;;  %v10179_v22 = vld [vmem:[#allocation51_spill] sm:$0xff]  ;;  %v1396_v50 = vsel %vm1379_vm3, %v6361_v18, %v6787_v0  ;;  %v10182_v0 = vld [vmem:[#allocation52_spill] sm:$0xff] }
 0x11a   : > { %1021 = vrot.lane.b32.xlu0 %v10171_v26, %s6114_s28 }
 0x11b   : > { %v837_v3 = vpop.permute.xlu1 %836  ;;  %6046 = vmatprep.subr.bf16.mxu0 %v6045_v36 }
 0x11c   : > { %v7054_v15 = vsel %vm1441_vm5, %v1422_v37, %v837_v3  ;;  %v835_v21 = vpop.permute.xlu0 %834  ;;  %6048 = vmatpush3.bf16.msra.mxu0 %v6045_v36 }
 0x11d   : > { %10172 = vst [vmem:[#allocation48_spill] sm:$0xff] %v7054_v15  ;;  %v7057_v12 = vsel %vm1441_vm5, %v1421_v47, %v835_v21  ;;  %1027 = vrot.lane.b32.xlu1 %v6573_v53, %s6114_s28  ;;  %v1423_v21 = vsel %vm1410_vm4, %v1392_v45, %v6904_v7  ;;  %v1395_v7 = vsel %vm1379_vm3, %v6323_v43, %v6777_v56  ;;  %v10176_v47 = vld [vmem:[#allocation50_spill] sm:$0xff] }
 0x11e   : > { %1025 = vrot.lane.b32.xlu0 %v10173_v32, %s6114_s28  ;;  %v1394_v45 = vsel %vm1379_vm3, %v6337_v59, %v6779_v38  ;;  %v1397_v38 = vsel %vm1379_vm3, %v6349_v1, %v6785_v23 }
 0x11f   : > { %v841_v2 = vpop.permute.xlu1 %840 }
 0x120   : > { %v7074_v37 = vsel %vm1441_vm5, %v1424_v51, %v841_v2  ;;  %v839_v3 = vpop.permute.xlu0 %838  ;;  %v1426_v51 = vsel %vm1410_vm4, %v1395_v7, %v6910_v41  ;;  %v1641_v41 = vld [vmem:[%s9836_s1 + $0x10] sm:$0xff]  ;;  %v1428_v7 = vsel %vm1410_vm4, %v1397_v38, %v6918_v63  ;;  %v1399_v63 = vsel %vm1379_vm3, %v6373_v31, %v6793_v60 }
 0x121   : > { %10174 = vst [vmem:[#allocation49_spill] sm:$0xff] %v7074_v37  ;;  %v7077_v11 = vsel %vm1441_vm5, %v1423_v21, %v839_v3  ;;  %1031 = vrot.lane.b32.xlu1 %v6586_v20, %s6114_s28  ;;  %v1425_v21 = vsel %vm1410_vm4, %v1394_v45, %v6912_v40  ;;  %v1642_v40 = vld [vmem:[%s9836_s1 + $0x18] sm:$0xff]  ;;  %v1427_v45 = vsel %vm1410_vm4, %v1396_v50, %v6920_v10  ;;  %v1643_v10 = vld [vmem:[%s9836_s1 + $0x20] sm:$0xf] }
 0x122   : > { %10175 = vst [vmem:[#allocation107_spill] sm:$0xff] %v7077_v11  ;;  %1029 = vrot.lane.b32.xlu0 %v10176_v47, %s6114_s28  ;;  %v10270_v11 = vld [vmem:[#allocation86_spill] sm:$0xff] }
 0x123   : > { %v845_v2 = vpop.permute.xlu1 %844 }
 0x124   : > { %v7100_v3 = vsel %vm1441_vm5, %v1426_v51, %v845_v2  ;;  %v843_v37 = vpop.permute.xlu0 %842 }
 0x125   : > { %10177 = vst [vmem:[#allocation50_spill] sm:$0xff] %v7100_v3  ;;  %v7103_v56 = vsel %vm1441_vm5, %v1425_v21, %v843_v37  ;;  %1035 = vrot.lane.b32.xlu1 %v6599_v30, %s6114_s28  ;;  %v6049_v37 = vpack.c.bf16 %v1642_v40, %v1641_v41  ;;  %v1398_v21 = vsel %vm1379_vm3, %v6385_v54, %v6795_v16  ;;  %v10234_v3 = vld [vmem:[#allocation19_spill] sm:$0xff] }
 0x126   : > { %10178 = vst [vmem:[#allocation108_spill] sm:$0xff] %v7103_v56  ;;  %1033 = vrot.lane.b32.xlu0 %v10179_v22, %s6114_s28  ;;  %v1430_v41 = vsel %vm1410_vm4, %v1399_v63, %v6926_v49  ;;  %v1429_v60 = vsel %vm1410_vm4, %v1398_v21, %v6928_v28  ;;  %v1401_v49 = vsel %vm1379_vm3, %v6400_v6, %v6801_v52  ;;  %v10189_v21 = vld [vmem:[#allocation77_spill] sm:$0xff] }
 0x127   : > { %v849_v36 = vpop.permute.xlu1 %848  ;;  %6050 = vmatprep.subr.bf16.mxu0 %v6049_v37  ;;  %v1400_v16 = vsel %vm1379_vm3, %v6395_v5, %v6803_v19  ;;  %v1432_v28 = vsel %vm1410_vm4, %v1401_v49, %v6934_v62  ;;  %v10190_v19 = vld [vmem:[#allocation27_spill] sm:$0xff]  ;;  %v10191_v62 = vld [vmem:[#allocation2_spill] sm:$0xff]  ;;  %v10194_v49 = vld [vmem:[#allocation97_spill] sm:$0xff] }
 0x128   : > { %v7126_v51 = vsel %vm1441_vm5, %v1428_v7, %v849_v36  ;;  %v847_v2 = vpop.permute.xlu0 %846  ;;  %6052 = vmatpush3.bf16.msra.mxu0 %v6049_v37  ;;  %v10185_v36 = vld [vmem:[#allocation96_spill] sm:$0xff] }
 0x129   : > { %10180 = vst [vmem:[#allocation51_spill] sm:$0xff] %v7126_v51  ;;  %v7129_v23 = vsel %vm1441_vm5, %v1427_v45, %v847_v2  ;;  %1039 = vrot.lane.b32.xlu1 %v6612_v58, %s6114_s28  ;;  %5929 = vmatprep.subr.msk.mxu0 %vm1748_vm6, %v1643_v10  ;;  %v1431_v45 = vsel %vm1410_vm4, %v1400_v16, %v10185_v36  ;;  %v10230_v51 = vld [vmem:[#allocation16_spill] sm:$0xff] }
 0x12a   : > { %10181 = vst [vmem:[#allocation109_spill] sm:$0xff] %v7129_v23  ;;  %1037 = vrot.lane.b32.xlu0 %v10182_v0, %s6114_s28 }
 0x12b   : > { %v853_v40 = vpop.permute.xlu1 %852 }
 0x12c   : > { %v7149_v38 = vsel %vm1441_vm5, %v1430_v41, %v853_v40  ;;  %v851_v37 = vpop.permute.xlu0 %850  ;;  %5930 = vmatpush3.msk.msra.mxu0 %vm1748_vm6, %v1643_v10  ;;  %v10188_v10 = vld [vmem:[#allocation5_spill] sm:$0xff]  ;;  %v1403_v41 = vsel %vm1379_vm3, %v10190_v19, %v10189_v21  ;;  %v10192_v40 = vld [vmem:[#allocation78_spill] sm:$0xff]  ;;  %v10198_v21 = vld [vmem:[#allocation32_spill] sm:$0xff] }
 0x12d   : > { %10183 = vst [vmem:[#allocation52_spill] sm:$0xff] %v7149_v38  ;;  %v7152_v50 = vsel %vm1441_vm5, %v1429_v60, %v851_v37  ;;  %1109 = vrot.lane.b32.xlu1 %v6180_v14, %s6115_s14  ;;  %v10193_v60 = vld [vmem:[#allocation28_spill] sm:$0xff]  ;;  %v1434_v16 = vsel %vm1410_vm4, %v1403_v41, %v10194_v49  ;;  %v10199_v41 = vld [vmem:[#allocation7_spill] sm:$0xff]  ;;  %v10218_v38 = vld [vmem:[#allocation41_spill] sm:$0xff] }
 0x12e   : > { %10184 = vst [vmem:[#allocation110_spill] sm:$0xff] %v7152_v50  ;;  %1041 = vrot.lane.b32.xlu0 %v6630_v44, %s6114_s28  ;;  %v1402_v37 = vsel %vm1379_vm3, %v10193_v60, %v10192_v40  ;;  %v10200_v49 = vld [vmem:[#allocation80_spill] sm:$0xff]  ;;  %v10229_v50 = vld [vmem:[#allocation17_spill] sm:$0xff] }
 0x12f   : > { %v857_v7 = vpop.permute.xlu1 %856 }
 0x130   : > { %v7169_v2 = vsel %vm1441_vm5, %v1432_v28, %v857_v7  ;;  %v855_v63 = vpop.permute.xlu0 %854  ;;  %v1433_v7 = vsel %vm1410_vm4, %v1402_v37, %v6944_v46  ;;  %v10201_v46 = vld [vmem:[#allocation33_spill] sm:$0xff] }
 0x131   : > { %10186 = vst [vmem:[#allocation96_spill] sm:$0xff] %v7169_v2  ;;  %v7172_v52 = vsel %vm1441_vm5, %v1431_v45, %v855_v63  ;;  %1199 = vrot.lane.b32.xlu1 %v10188_v10, %s6116_s15  ;;  %v10197_v10 = vld [vmem:[#allocation79_spill] sm:$0xff]  ;;  %v1404_v37 = vsel %vm1379_vm3, %v10201_v46, %v10200_v49  ;;  %v10207_v2 = vld [vmem:[#allocation81_spill] sm:$0xff] }
 0x132   : > { %10187 = vst [vmem:[#allocation111_spill] sm:$0xff] %v7172_v52  ;;  %1111 = vrot.lane.b32.xlu0 %v10191_v62, %s6115_s14  ;;  %v1405_v40 = vsel %vm1379_vm3, %v10198_v21, %v10197_v10  ;;  %v10208_v52 = vld [vmem:[#allocation36_spill] sm:$0xff] }
 0x133   : > { %v861_v28 = vpop.permute.xlu1 %860  ;;  %v1407_v49 = vsel %vm1379_vm3, %v10208_v52, %v10207_v2 }
 0x134   : > { %v7189_v36 = vsel %vm1441_vm5, %v1434_v16, %v861_v28  ;;  %v859_v45 = vpop.permute.xlu0 %858  ;;  %v10202_v16 = vld [vmem:[#allocation98_spill] sm:$0xff] }
 0x135   : > { %10195 = vst [vmem:[#allocation5_spill] sm:$0xff] %v7189_v36  ;;  %v7192_v63 = vsel %vm1441_vm5, %v1433_v7, %v859_v45  ;;  %1289 = vrot.lane.b32.xlu1 %v10168_v48, %s6117_s16  ;;  %v1436_v28 = vsel %vm1410_vm4, %v1405_v40, %v10202_v16  ;;  %v10203_v45 = vld [vmem:[#allocation99_spill] sm:$0xff]  ;;  %v10209_v40 = vld [vmem:[#allocation82_spill] sm:$0xff]  ;;  %v10210_v16 = vld [vmem:[#allocation37_spill] sm:$0xff] }
 0x136   : > { %10196 = vst [vmem:[#allocation77_spill] sm:$0xff] %v7192_v63  ;;  %1201 = vrot.lane.b32.xlu0 %v10199_v41, %s6116_s15  ;;  %v1435_v36 = vsel %vm1410_vm4, %v1404_v37, %v10203_v45  ;;  %v10206_v41 = vld [vmem:[#allocation6_spill] sm:$0xff]  ;;  %v1406_v37 = vsel %vm1379_vm3, %v10210_v16, %v10209_v40 }
 0x137   : > { %v865_v7 = vpop.permute.xlu1 %864 }
 0x138   : > { %v7209_v48 = vsel %vm1441_vm5, %v1436_v28, %v865_v7  ;;  %v863_v63 = vpop.permute.xlu0 %862  ;;  %v1438_v28 = vsel %vm1410_vm4, %v1407_v49, %v6958_v33  ;;  %v10216_v33 = vld [vmem:[#allocation8_spill] sm:$0xff] }
 0x139   : > { %10204 = vst [vmem:[#allocation27_spill] sm:$0xff] %v7209_v48  ;;  %v7212_v10 = vsel %vm1441_vm5, %v1435_v36, %v863_v63  ;;  %1113 = vrot.lane.b32.xlu1 %v10206_v41, %s6115_s14  ;;  %v1437_v36 = vsel %vm1410_vm4, %v1406_v37, %v6960_v35  ;;  %v10214_v48 = vld [vmem:[#allocation83_spill] sm:$0xff]  ;;  %v10217_v49 = vld [vmem:[#allocation84_spill] sm:$0xff] }
 0x13a   : > { %10205 = vst [vmem:[#allocation2_spill] sm:$0xff] %v7212_v10  ;;  %1291 = vrot.lane.b32.xlu0 %v6547_v61, %s6117_s16  ;;  %v10213_v61 = vld [vmem:[#allocation12_spill] sm:$0xff]  ;;  %v1408_v35 = vsel %vm1379_vm3, %v10218_v38, %v10217_v49 }
 0x13b   : > { %v869_v7 = vpop.permute.xlu1 %868  ;;  %v10215_v10 = vld [vmem:[#allocation40_spill] sm:$0xff] }
 0x13c   : > { %v7229_v63 = vsel %vm1441_vm5, %v1438_v28, %v869_v7  ;;  %v867_v45 = vpop.permute.xlu0 %866  ;;  %v1409_v40 = vsel %vm1379_vm3, %v10215_v10, %v10214_v48  ;;  %v10219_v37 = vld [vmem:[#allocation100_spill] sm:$0xff] }
 0x13d   : > { %10211 = vst [vmem:[#allocation78_spill] sm:$0xff] %v7229_v63  ;;  %v7232_v2 = vsel %vm1441_vm5, %v1437_v36, %v867_v45  ;;  %1203 = vrot.lane.b32.xlu1 %v10213_v61, %s6116_s15  ;;  %v1440_v28 = vsel %vm1410_vm4, %v1409_v40, %v10219_v37  ;;  %v10220_v36 = vld [vmem:[#allocation101_spill] sm:$0xff] }
 0x13e   : > { %10212 = vst [vmem:[#allocation28_spill] sm:$0xff] %v7232_v2  ;;  %1115 = vrot.lane.b32.xlu0 %v10216_v33, %s6115_s14  ;;  %v1439_v45 = vsel %vm1410_vm4, %v1408_v35, %v10220_v36  ;;  %v10223_v2 = vld [vmem:[#allocation10_spill] sm:$0xff]  ;;  %v10224_v37 = vld [vmem:[#allocation9_spill] sm:$0xff] }
 0x13f   : > { %v873_v7 = vpop.permute.xlu1 %872  ;;  %v10227_v36 = vld [vmem:[#allocation14_spill] sm:$0xff] }
 0x140   : > { %v7249_v61 = vsel %vm1441_vm5, %v1440_v28, %v873_v7  ;;  %v871_v63 = vpop.permute.xlu0 %870  ;;  %v10225_v28 = vld [vmem:[#allocation15_spill] sm:$0xff] }
 0x141   : > { %10221 = vst [vmem:[#allocation97_spill] sm:$0xff] %v7249_v61  ;;  %v7252_v48 = vsel %vm1441_vm5, %v1439_v45, %v871_v63  ;;  %1293 = vrot.lane.b32.xlu1 %v10171_v26, %s6117_s16  ;;  %v10226_v26 = vld [vmem:[#allocation11_spill] sm:$0xff]  ;;  %v10228_v61 = vld [vmem:[#allocation13_spill] sm:$0xff] }
 0x142   : > { %10222 = vst [vmem:[#allocation79_spill] sm:$0xff] %v7252_v48  ;;  %1205 = vrot.lane.b32.xlu0 %v10223_v2, %s6116_s15 }
 0x143   : > { %v7258_v49 = vpop.permute.xlu1 %914 }
 0x144   : > { %v7260_v40 = vpop.permute.xlu0 %912 }
 0x145   : > { %1117 = vrot.lane.b32.xlu1 %v10224_v37, %s6115_s14 }
 0x146   : > { %1295 = vrot.lane.b32.xlu0 %v6560_v8, %s6117_s16 }
 0x147   : > { %v7266_v35 = vpop.permute.xlu1 %918 }
 0x148   : > { %v7268_v63 = vpop.permute.xlu0 %916 }
 0x149   : > { %1207 = vrot.lane.b32.xlu1 %v10225_v28, %s6116_s15 }
 0x14a   : > { %1119 = vrot.lane.b32.xlu0 %v10226_v26, %s6115_s14 }
 0x14b   : > { %v7274_v2 = vpop.permute.xlu1 %922 }
 0x14c   : > { %v7276_v7 = vpop.permute.xlu0 %920 }
 0x14d   : > { %1297 = vrot.lane.b32.xlu1 %v10173_v32, %s6117_s16 }
 0x14e   : > { %1209 = vrot.lane.b32.xlu0 %v10227_v36, %s6116_s15 }
 0x14f   : > { %v7282_v8 = vpop.permute.xlu1 %926 }
 0x150   : > { %v7284_v45 = vpop.permute.xlu0 %924 }
 0x151   : > { %1121 = vrot.lane.b32.xlu1 %v10228_v61, %s6115_s14 }
 0x152   : > { %1299 = vrot.lane.b32.xlu0 %v6573_v53, %s6117_s16 }
 0x153   : > { %v7290_v28 = vpop.permute.xlu1 %930 }
 0x154   : > { %v7292_v48 = vpop.permute.xlu0 %928 }
 0x155   : > { %1211 = vrot.lane.b32.xlu1 %v10229_v50, %s6116_s15 }
 0x156   : > { %1123 = vrot.lane.b32.xlu0 %v6253_v55, %s6115_s14 }
 0x157   : > { %v7298_v32 = vpop.permute.xlu1 %934 }
 0x158   : > { %v7300_v36 = vpop.permute.xlu0 %932 }
 0x159   : > { %1301 = vrot.lane.b32.xlu1 %v10176_v47, %s6117_s16 }
 0x15a   : > { %1213 = vrot.lane.b32.xlu0 %v10230_v51, %s6116_s15 }
 0x15b   : > { %v7306_v53 = vpop.permute.xlu1 %938 }
 0x15c   : > { %10231 = vst [vmem:[#allocation32_spill] sm:$0xff] %v7306_v53  ;;  %v7308_v23 = vpop.permute.xlu0 %936 }
 0x15d   : > { %1125 = vrot.lane.b32.xlu1 %v6289_v17, %s6115_s14  ;;  %v10237_v17 = vld [vmem:[#allocation18_spill] sm:$0xff] }
 0x15e   : > { %1303 = vrot.lane.b32.xlu0 %v6586_v20, %s6117_s16 }
 0x15f   : > { %v7314_v55 = vpop.permute.xlu1 %942 }
 0x160   : > { %10232 = vst [vmem:[#allocation7_spill] sm:$0xff] %v7314_v55  ;;  %v7316_v50 = vpop.permute.xlu0 %940  ;;  %v10268_v55 = vld [vmem:[#allocation3_spill] sm:$0xff] }
 0x161   : > { %10233 = vst [vmem:[#allocation80_spill] sm:$0xff] %v7316_v50  ;;  %1215 = vrot.lane.b32.xlu1 %v10234_v3, %s6116_s15 }
 0x162   : > { %1127 = vrot.lane.b32.xlu0 %v6277_v4, %s6115_s14 }
 0x163   : > { %v7322_v47 = vpop.permute.xlu1 %946 }
 0x164   : > { %10235 = vst [vmem:[#allocation33_spill] sm:$0xff] %v7322_v47  ;;  %v7324_v51 = vpop.permute.xlu0 %944  ;;  %v10242_v47 = vld [vmem:[#allocation21_spill] sm:$0xff] }
 0x165   : > { %10236 = vst [vmem:[#allocation98_spill] sm:$0xff] %v7324_v51  ;;  %1305 = vrot.lane.b32.xlu1 %v10179_v22, %s6117_s16  ;;  %v10267_v51 = vld [vmem:[#allocation69_spill] sm:$0xff] }
 0x166   : > { %1217 = vrot.lane.b32.xlu0 %v10237_v17, %s6116_s15 }
 0x167   : > { %v7330_v20 = vpop.permute.xlu1 %950 }
 0x168   : > { %10238 = vst [vmem:[#allocation99_spill] sm:$0xff] %v7330_v20  ;;  %v7332_v56 = vpop.permute.xlu0 %948 }
 0x169   : > { %10239 = vst [vmem:[#allocation6_spill] sm:$0xff] %v7332_v56  ;;  %1129 = vrot.lane.b32.xlu1 %v6313_v39, %s6115_s14  ;;  %v10245_v39 = vld [vmem:[#allocation20_spill] sm:$0xff]  ;;  %v10265_v56 = vld [vmem:[#allocation57_spill] sm:$0xff] }
 0x16a   : > { %1307 = vrot.lane.b32.xlu0 %v6599_v30, %s6117_s16 }
 0x16b   : > { %v7338_v4 = vpop.permute.xlu1 %954 }
 0x16c   : > { %10240 = vst [vmem:[#allocation81_spill] sm:$0xff] %v7338_v4  ;;  %v7340_v3 = vpop.permute.xlu0 %952 }
 0x16d   : > { %10241 = vst [vmem:[#allocation36_spill] sm:$0xff] %v7340_v3  ;;  %1219 = vrot.lane.b32.xlu1 %v10242_v47, %s6116_s15  ;;  %v10262_v3 = vld [vmem:[#allocation29_spill] sm:$0xff] }
 0x16e   : > { %1131 = vrot.lane.b32.xlu0 %v6301_v25, %s6115_s14 }
 0x16f   : > { %v7346_v22 = vpop.permute.xlu1 %958 }
 0x170   : > { %10243 = vst [vmem:[#allocation82_spill] sm:$0xff] %v7346_v22  ;;  %v7348_v17 = vpop.permute.xlu0 %956  ;;  %v10250_v22 = vld [vmem:[#allocation23_spill] sm:$0xff] }
 0x171   : > { %10244 = vst [vmem:[#allocation37_spill] sm:$0xff] %v7348_v17  ;;  %1309 = vrot.lane.b32.xlu1 %v10182_v0, %s6117_s16  ;;  %v10261_v17 = vld [vmem:[#allocation26_spill] sm:$0xff] }
 0x172   : > { %1221 = vrot.lane.b32.xlu0 %v10245_v39, %s6116_s15 }
 0x173   : > { %v7354_v30 = vpop.permute.xlu1 %962 }
 0x174   : > { %10246 = vst [vmem:[#allocation12_spill] sm:$0xff] %v7354_v30  ;;  %v7356_v4 = vpop.permute.xlu0 %960  ;;  %v10260_v30 = vld [vmem:[#allocation54_spill] sm:$0xff] }
 0x175   : > { %10247 = vst [vmem:[#allocation83_spill] sm:$0xff] %v7356_v4  ;;  %1133 = vrot.lane.b32.xlu1 %v6337_v59, %s6115_s14  ;;  %v10253_v59 = vld [vmem:[#allocation22_spill] sm:$0xff] }
 0x176   : > { %1311 = vrot.lane.b32.xlu0 %v6612_v58, %s6117_s16 }
 0x177   : > { %v7362_v25 = vpop.permute.xlu1 %966 }
 0x178   : > { %10248 = vst [vmem:[#allocation40_spill] sm:$0xff] %v7362_v25  ;;  %v7364_v47 = vpop.permute.xlu0 %964 }
 0x179   : > { %10249 = vst [vmem:[#allocation8_spill] sm:$0xff] %v7364_v47  ;;  %1223 = vrot.lane.b32.xlu1 %v10250_v22, %s6116_s15  ;;  %v10256_v47 = vld [vmem:[#allocation53_spill] sm:$0xff] }
 0x17a   : > { %1135 = vrot.lane.b32.xlu0 %v6323_v43, %s6115_s14 }
 0x17b   : > { %v7370_v0 = vpop.permute.xlu1 %970 }
 0x17c   : > { %10251 = vst [vmem:[#allocation84_spill] sm:$0xff] %v7370_v0  ;;  %v7372_v39 = vpop.permute.xlu0 %968  ;;  %v10258_v0 = vld [vmem:[#allocation25_spill] sm:$0xff] }
 0x17d   : > { %10252 = vst [vmem:[#allocation41_spill] sm:$0xff] %v7372_v39  ;;  %1313 = vrot.lane.b32.xlu1 %v6630_v44, %s6117_s16  ;;  %v10259_v39 = vld [vmem:[#allocation55_spill] sm:$0xff] }
 0x17e   : > { %1225 = vrot.lane.b32.xlu0 %v10253_v59, %s6116_s15 }
 0x17f   : > { %v7378_v58 = vpop.permute.xlu1 %974 }
 0x180   : > { %10254 = vst [vmem:[#allocation100_spill] sm:$0xff] %v7378_v58  ;;  %v7380_v25 = vpop.permute.xlu0 %972  ;;  %v10257_v58 = vld [vmem:[#allocation24_spill] sm:$0xff] }
 0x181   : > { %10255 = vst [vmem:[#allocation101_spill] sm:$0xff] %v7380_v25  ;;  %1043 = vrot.lane.b32.xlu1 %v10256_v47, %s6114_s28 }
 0x182   : > { %1315 = vrot.lane.b32.xlu0 %v10256_v47, %s6117_s16 }
 0x183   : > { %v1016_v43 = vpop.permute.xlu1 %1015 }
 0x184   : > { %v1014_v22 = vpop.permute.xlu0 %1013 }
 0x185   : > { %1139 = vrot.lane.b32.xlu1 %v6349_v1, %s6115_s14 }
 0x186   : > { %1137 = vrot.lane.b32.xlu0 %v6361_v18, %s6115_s14 }
 0x187   : > { %v7390_v44 = vpop.permute.xlu1 %1019 }
 0x188   : > { %v7392_v59 = vpop.permute.xlu0 %1017 }
 0x189   : > { %1229 = vrot.lane.b32.xlu1 %v10257_v58, %s6116_s15 }
 0x18a   : > { %1227 = vrot.lane.b32.xlu0 %v10258_v0, %s6116_s15 }
 0x18b   : > { %v7398_v25 = vpop.permute.xlu1 %1023 }
 0x18c   : > { %v7400_v47 = vpop.permute.xlu0 %1021 }
 0x18d   : > { %1045 = vrot.lane.b32.xlu1 %v10259_v39, %s6114_s28 }
 0x18e   : > { %1317 = vrot.lane.b32.xlu0 %v10259_v39, %s6117_s16 }
 0x18f   : > { %v7406_v1 = vpop.permute.xlu1 %1027 }
 0x190   : > { %v7408_v18 = vpop.permute.xlu0 %1025 }
 0x191   : > { %1047 = vrot.lane.b32.xlu1 %v10260_v30, %s6114_s28 }
 0x192   : > { %1319 = vrot.lane.b32.xlu0 %v10260_v30, %s6117_s16 }
 0x193   : > { %v7414_v0 = vpop.permute.xlu1 %1031 }
 0x194   : > { %v7416_v58 = vpop.permute.xlu0 %1029 }
 0x195   : > { %1143 = vrot.lane.b32.xlu1 %v6373_v31, %s6115_s14 }
 0x196   : > { %1141 = vrot.lane.b32.xlu0 %v6385_v54, %s6115_s14 }
 0x197   : > { %v7422_v39 = vpop.permute.xlu1 %1035 }
 0x198   : > { %v7424_v4 = vpop.permute.xlu0 %1033 }
 0x199   : > { %1233 = vrot.lane.b32.xlu1 %v10261_v17, %s6116_s15  ;;  %v1380_v17 = vsel %vm1379_vm3, %v10268_v55, %v10267_v51 }
 0x19a   : > { %1231 = vrot.lane.b32.xlu0 %v10262_v3, %s6116_s15  ;;  %v10269_v3 = vld [vmem:[#allocation56_spill] sm:$0xff]  ;;  %v1411_v50 = vsel %vm1410_vm4, %v1380_v17, %v10270_v11  ;;  %v10271_v11 = vld [vmem:[#allocation71_spill] sm:$0xff] }
 0x19b   : > { %v7430_v30 = vpop.permute.xlu1 %1039  ;;  %v10272_v17 = vld [vmem:[#allocation4_spill] sm:$0xff] }
 0x19c   : > { %10263 = vst [vmem:[#allocation10_spill] sm:$0xff] %v7430_v30  ;;  %v7432_v20 = vpop.permute.xlu0 %1037 }
 0x19d   : > { %10264 = vst [vmem:[#allocation9_spill] sm:$0xff] %v7432_v20  ;;  %1049 = vrot.lane.b32.xlu1 %v10265_v56, %s6114_s28 }
 0x19e   : > { %1321 = vrot.lane.b32.xlu0 %v10265_v56, %s6117_s16  ;;  %v1442_v56 = vsel %vm1441_vm5, %v1411_v50, %v6982_v27  ;;  %v10273_v27 = vld [vmem:[#allocation85_spill] sm:$0xff] }
 0x19f   : > { %v1110_v31 = vpop.permute.xlu1 %1109  ;;  %v1475_v30 = vsel %vm1474_vm7, %v1442_v56, %v7260_v40 }
 0x1a0   : > { %v7438_v54 = vpop.permute.xlu0 %1041  ;;  %v1508_v51 = vsel %vm1507_vm8, %v1475_v30, %v1014_v22  ;;  %v10274_v30 = vld [vmem:[#allocation102_spill] sm:$0xff] }
 0x1a1   : > { %10266 = vst [vmem:[#allocation15_spill] sm:$0xff] %v7438_v54  ;;  %1051 = vrot.lane.b32.xlu1 %v10269_v3, %s6114_s28  ;;  %v1541_v15 = vsel %vm1540_vm9, %v1508_v51, %v1110_v31  ;;  %v10275_v31 = vld [vmem:[#allocation30_spill] sm:$0xff]  ;;  %v10276_v51 = vld [vmem:[#allocation31_spill] sm:$0xff] }
 0x1a2   : > { %1323 = vrot.lane.b32.xlu0 %v10269_v3, %s6117_s16  ;;  %v1381_v3 = vsel %vm1379_vm3, %v10272_v17, %v10271_v11 }
 0x1a3   : > { %v1200_v54 = vpop.permute.xlu1 %1199  ;;  %v1412_v40 = vsel %vm1410_vm4, %v1381_v3, %v10273_v27 }
 0x1a4   : > { %v1112_v55 = vpop.permute.xlu0 %1111  ;;  %v1574_v56 = vsel %vm1573_vm10, %v1541_v15, %v1200_v54 }
 0x1a5   : > { %1147 = vrot.lane.b32.xlu1 %v6400_v6, %s6115_s14  ;;  %v1443_v6 = vsel %vm1441_vm5, %v1412_v40, %v10274_v30 }
 0x1a6   : > { %1145 = vrot.lane.b32.xlu0 %v6395_v5, %s6115_s14  ;;  %v1476_v11 = vsel %vm1474_vm7, %v1443_v6, %v7258_v49  ;;  %v10277_v49 = vld [vmem:[#allocation59_spill] sm:$0xff] }
 0x1a7   : > { %v1290_v22 = vpop.permute.xlu1 %1289  ;;  %v1509_v5 = vsel %vm1507_vm8, %v1476_v11, %v1016_v43 }
 0x1a8   : > { %v1202_v53 = vpop.permute.xlu0 %1201  ;;  %v1607_v20 = vsel %vm1606_vm11, %v1574_v56, %v1290_v22  ;;  %v1542_v15 = vsel %vm1540_vm9, %v1509_v5, %v1112_v55  ;;  %v10278_v22 = vld [vmem:[#allocation58_spill] sm:$0xff] }
 0x1a9   : > { %1237 = vrot.lane.b32.xlu1 %v10275_v31, %s6116_s15  ;;  %5931 = vmatprep.mubr.msk.f32.mxu0 %vm1651_vm12, %v1607_v20  ;;  %v1575_v17 = vsel %vm1573_vm10, %v1542_v15, %v1202_v53  ;;  %v1444_v20 = vsel %vm1441_vm5, %v1411_v50, %v6993_v34  ;;  %v1445_v34 = vsel %vm1441_vm5, %v1412_v40, %v6991_v13  ;;  %v10279_v15 = vld [vmem:[#allocation67_spill] sm:$0xff] }
 0x1aa   : > { %1235 = vrot.lane.b32.xlu0 %v10276_v51, %s6116_s15  ;;  %v1477_v55 = vsel %vm1474_vm7, %v1444_v20, %v7268_v63 }
 0x1ab   : > { %v1114_v54 = vpop.permute.xlu1 %1113  ;;  %v1510_v53 = vsel %vm1507_vm8, %v1477_v55, %v7392_v59  ;;  %v1478_v59 = vsel %vm1474_vm7, %v1445_v34, %v7266_v35  ;;  %v1382_v35 = vsel %vm1379_vm3, %v6180_v14, %v10279_v15  ;;  %v10284_v55 = vld [vmem:[#allocation70_spill] sm:$0xff]  ;;  %v10286_v34 = vld [vmem:[#allocation60_spill] sm:$0xff] }
 0x1ac   : > { %v1292_v3 = vpop.permute.xlu0 %1291  ;;  %v1543_v30 = vsel %vm1540_vm9, %v1510_v53, %v1114_v54  ;;  %v1511_v31 = vsel %vm1507_vm8, %v1478_v59, %v7390_v44  ;;  %v10280_v54 = vld [vmem:[#allocation35_spill] sm:$0xff] }
 0x1ad   : > { %v1608_v27 = vsel %vm1606_vm11, %v1575_v17, %v1292_v3  ;;  %1053 = vrot.lane.b32.xlu1 %v10277_v49, %s6114_s28  ;;  %v10281_v17 = vld [vmem:[#allocation90_spill] sm:$0xff] }
 0x1ae   : > { %1325 = vrot.lane.b32.xlu0 %v10277_v49, %s6117_s16  ;;  %5932 = vmatmul.mubr.msk.f32.vlgmr.msra.gmra.mrb[0].mxu0 %vm1651_vm12, %v1608_v27  ;;  %v1413_v44 = vsel %vm1410_vm4, %v1382_v35, %v10281_v17 }
 0x1af   : > { %v1204_v43 = vpop.permute.xlu1 %1203  ;;  %v1446_v3 = vsel %vm1441_vm5, %v1413_v44, %v7007_v42  ;;  %v10285_v42 = vld [vmem:[#allocation88_spill] sm:$0xff]  ;;  %v10291_v44 = vld [vmem:[#allocation39_spill] sm:$0xff] }
 0x1b0   : > { %v1116_v56 = vpop.permute.xlu0 %1115  ;;  %v1576_v6 = vsel %vm1573_vm10, %v1543_v30, %v1204_v43  ;;  %v1479_v14 = vsel %vm1474_vm7, %v1446_v3, %v7276_v7  ;;  %v10283_v43 = vld [vmem:[#allocation61_spill] sm:$0xff] }
 0x1b1   : > { %1055 = vrot.lane.b32.xlu1 %v10278_v22, %s6114_s28  ;;  %v1544_v5 = vsel %vm1540_vm9, %v1511_v31, %v1116_v56  ;;  %v1512_v20 = vsel %vm1507_vm8, %v1479_v14, %v7400_v47  ;;  %v1383_v56 = vsel %vm1379_vm3, %v10191_v62, %v10284_v55 }
 0x1b2   : > { %1327 = vrot.lane.b32.xlu0 %v10278_v22, %s6117_s16  ;;  %v1414_v22 = vsel %vm1410_vm4, %v1383_v56, %v10285_v42 }
 0x1b3   : > { %v1294_v11 = vpop.permute.xlu1 %1293  ;;  %v1447_v47 = vsel %vm1441_vm5, %v1414_v22, %v7002_v29  ;;  %v10295_v22 = vld [vmem:[#allocation62_spill] sm:$0xff] }
 0x1b4   : > { %v1609_v63 = vsel %vm1606_vm11, %v1576_v6, %v1294_v11  ;;  %v1206_v50 = vpop.permute.xlu0 %1205  ;;  %v1480_v62 = vsel %vm1474_vm7, %v1447_v47, %v7274_v2 }
 0x1b5   : > { %1151 = vrot.lane.b32.xlu1 %v10190_v19, %s6115_s14  ;;  %5934 = vmatprep.mubr.msk.f32.mxu0 %vm1651_vm12, %v1609_v63  ;;  %v1577_v40 = vsel %vm1573_vm10, %v1544_v5, %v1206_v50  ;;  %v1513_v63 = vsel %vm1507_vm8, %v1480_v62, %v7398_v25  ;;  %v10287_v5 = vld [vmem:[#allocation73_spill] sm:$0xff]  ;;  %v10297_v62 = vld [vmem:[#allocation74_spill] sm:$0xff] }
 0x1b6   : > { %1149 = vrot.lane.b32.xlu0 %v10193_v60, %s6115_s14  ;;  %v10282_v60 = vld [vmem:[#allocation34_spill] sm:$0xff]  ;;  %v1384_v2 = vsel %vm1379_vm3, %v10206_v41, %v10287_v5 }
 0x1b7   : > { %v1118_v13 = vpop.permute.xlu1 %1117  ;;  %v10300_v5 = vld [vmem:[#allocation42_spill] sm:$0xff] }
 0x1b8   : > { %v1296_v51 = vpop.permute.xlu0 %1295  ;;  %v1545_v53 = vsel %vm1540_vm9, %v1512_v20, %v1118_v13 }
 0x1b9   : > { %v1610_v19 = vsel %vm1606_vm11, %v1577_v40, %v1296_v51  ;;  %1241 = vrot.lane.b32.xlu1 %v10280_v54, %s6116_s15  ;;  %v10288_v40 = vld [vmem:[#allocation92_spill] sm:$0xff] }
 0x1ba   : > { %1239 = vrot.lane.b32.xlu0 %v10282_v60, %s6116_s15  ;;  %5935 = vmatmul.mubr.msk.f32.gmra.mrb[2].mxu0 %vm1651_vm12, %v1610_v19  ;;  %v1415_v25 = vsel %vm1410_vm4, %v1384_v2, %v10288_v40  ;;  %v10290_v54 = vld [vmem:[#allocation72_spill] sm:$0xff]  ;;  %v10301_v2 = vld [vmem:[#allocation43_spill] sm:$0xff] }
 0x1bb   : > { %v1208_v27 = vpop.permute.xlu1 %1207  ;;  %v1448_v51 = vsel %vm1441_vm5, %v1415_v25, %v7015_v9  ;;  %v10292_v9 = vld [vmem:[#allocation91_spill] sm:$0xff] }
 0x1bc   : > { %v1120_v49 = vpop.permute.xlu0 %1119  ;;  %v1578_v7 = vsel %vm1573_vm10, %v1545_v53, %v1208_v27  ;;  %v1481_v41 = vsel %vm1474_vm7, %v1448_v51, %v7284_v45  ;;  %v10294_v53 = vld [vmem:[#allocation75_spill] sm:$0xff] }
 0x1bd   : > { %1057 = vrot.lane.b32.xlu1 %v10283_v43, %s6114_s28  ;;  %v1546_v50 = vsel %vm1540_vm9, %v1513_v63, %v1120_v49  ;;  %v1514_v19 = vsel %vm1507_vm8, %v1481_v41, %v7408_v18  ;;  %v10293_v49 = vld [vmem:[#allocation63_spill] sm:$0xff] }
 0x1be   : > { %1329 = vrot.lane.b32.xlu0 %v10283_v43, %s6117_s16 }
 0x1bf   : > { %v1298_v30 = vpop.permute.xlu1 %1297 }
 0x1c0   : > { %v1611_v6 = vsel %vm1606_vm11, %v1578_v7, %v1298_v30  ;;  %v1210_v11 = vpop.permute.xlu0 %1209  ;;  %v10296_v7 = vld [vmem:[#allocation94_spill] sm:$0xff] }
 0x1c1   : > { %1059 = vrot.lane.b32.xlu1 %v10286_v34, %s6114_s28  ;;  %5937 = vmatprep.mubr.msk.f32.mxu0 %vm1651_vm12, %v1611_v6  ;;  %v1579_v59 = vsel %vm1573_vm10, %v1546_v50, %v1210_v11 }
 0x1c2   : > { %1331 = vrot.lane.b32.xlu0 %v10286_v34, %s6117_s16  ;;  %v1387_v34 = vsel %vm1379_vm3, %v10226_v26, %v10297_v62 }
 0x1c3   : > { %v1122_v29 = vpop.permute.xlu1 %1121 }
 0x1c4   : > { %v1300_v31 = vpop.permute.xlu0 %1299  ;;  %v1547_v17 = vsel %vm1540_vm9, %v1514_v19, %v1122_v29  ;;  %v10304_v19 = vld [vmem:[#allocation95_spill] sm:$0xff] }
 0x1c5   : > { %v1612_v13 = vsel %vm1606_vm11, %v1579_v59, %v1300_v31  ;;  %1155 = vrot.lane.b32.xlu1 %v10198_v21, %s6115_s14  ;;  %v10289_v21 = vld [vmem:[#allocation38_spill] sm:$0xff] }
 0x1c6   : > { %1153 = vrot.lane.b32.xlu0 %v10201_v46, %s6115_s14  ;;  %5938 = vmatmul.mubr.msk.f32.gmra.mrb[4].mxu0 %vm1651_vm12, %v1612_v13  ;;  %v1385_v46 = vsel %vm1379_vm3, %v10216_v33, %v10290_v54  ;;  %v10299_v59 = vld [vmem:[#allocation46_spill] sm:$0xff] }
 0x1c7   : > { %v1212_v15 = vpop.permute.xlu1 %1211  ;;  %v1416_v60 = vsel %vm1410_vm4, %v1385_v46, %v10292_v9  ;;  %v10306_v9 = vld [vmem:[#allocation64_spill] sm:$0xff] }
 0x1c8   : > { %v1124_v35 = vpop.permute.xlu0 %1123  ;;  %v1580_v45 = vsel %vm1573_vm10, %v1547_v17, %v1212_v15  ;;  %v1449_v18 = vsel %vm1441_vm5, %v1416_v60, %v7013_v57  ;;  %v10302_v15 = vld [vmem:[#allocation76_spill] sm:$0xff] }
 0x1c9   : > { %1245 = vrot.lane.b32.xlu1 %v10289_v21, %s6116_s15  ;;  %v1482_v33 = vsel %vm1474_vm7, %v1449_v18, %v7282_v8  ;;  %v1386_v8 = vsel %vm1379_vm3, %v10224_v37, %v10294_v53  ;;  %v10305_v21 = vld [vmem:[#allocation106_spill] sm:$0xff] }
 0x1ca   : > { %1243 = vrot.lane.b32.xlu0 %v10291_v44, %s6116_s15  ;;  %v1515_v20 = vsel %vm1507_vm8, %v1482_v33, %v7406_v1  ;;  %v1417_v1 = vsel %vm1410_vm4, %v1386_v8, %v10296_v7  ;;  %v10311_v8 = vld [vmem:[#allocation68_spill] sm:$0xff] }
 0x1cb   : > { %v1302_v3 = vpop.permute.xlu1 %1301  ;;  %v1548_v43 = vsel %vm1540_vm9, %v1515_v20, %v1124_v35  ;;  %v1450_v30 = vsel %vm1441_vm5, %v1417_v1, %v7023_v24  ;;  %v10298_v24 = vld [vmem:[#allocation93_spill] sm:$0xff] }
 0x1cc   : > { %v1613_v27 = vsel %vm1606_vm11, %v1580_v45, %v1302_v3  ;;  %v1214_v14 = vpop.permute.xlu0 %1213  ;;  %v1483_v37 = vsel %vm1474_vm7, %v1450_v30, %v7292_v48  ;;  %v1418_v50 = vsel %vm1410_vm4, %v1387_v34, %v10298_v24  ;;  %v10303_v35 = vld [vmem:[#allocation65_spill] sm:$0xff] }
 0x1cd   : > { %1061 = vrot.lane.b32.xlu1 %v10293_v49, %s6114_s28  ;;  %5940 = vmatprep.mubr.msk.f32.mxu0 %vm1651_vm12, %v1613_v27  ;;  %v1581_v55 = vsel %vm1573_vm10, %v1548_v43, %v1214_v14  ;;  %v1516_v11 = vsel %vm1507_vm8, %v1483_v37, %v7416_v58  ;;  %v1451_v58 = vsel %vm1441_vm5, %v1418_v50, %v10299_v59  ;;  %v10314_v37 = vld [vmem:[#allocation66_spill] sm:$0xff]  ;;  %v10317_v59 = vld [vmem:[#allocation89_spill] sm:$0xff] }
 0x1ce   : > { %1333 = vrot.lane.b32.xlu0 %v10293_v49, %s6117_s16  ;;  %v1484_v26 = vsel %vm1474_vm7, %v1451_v58, %v7290_v28  ;;  %v1388_v28 = vsel %vm1379_vm3, %v10228_v61, %v10302_v15  ;;  %v1008_v58 = vrot.slane %v10317_v59, 2  ;;  %v10322_v15 = vld [vmem:[#allocation107_spill] sm:$0xff] }
 0x1cf   : > { %v1126_v57 = vpop.permute.xlu1 %1125 }
 0x1d0   : > { %v1304_v56 = vpop.permute.xlu0 %1303  ;;  %v1549_v63 = vsel %vm1540_vm9, %v1516_v11, %v1126_v57 }
 0x1d1   : > { %v1614_v42 = vsel %vm1606_vm11, %v1581_v55, %v1304_v56  ;;  %1063 = vrot.lane.b32.xlu1 %v10295_v22, %s6114_s28  ;;  %v10310_v56 = vld [vmem:[#allocation9_spill] sm:$0xff] }
 0x1d2   : > { %1335 = vrot.lane.b32.xlu0 %v10295_v22, %s6117_s16  ;;  %5941 = vmatmul.mubr.msk.f32.gmra.mrb[6].mxu0 %vm1651_vm12, %v1614_v42 }
 0x1d3   : > { %v1216_v47 = vpop.permute.xlu1 %1215 }
 0x1d4   : > { %v1128_v6 = vpop.permute.xlu0 %1127  ;;  %v1582_v48 = vsel %vm1573_vm10, %v1549_v63, %v1216_v47  ;;  %v10312_v47 = vld [vmem:[#allocation32_spill] sm:$0xff] }
 0x1d5   : > { %1159 = vrot.lane.b32.xlu1 %v10208_v52, %s6115_s14 }
 0x1d6   : > { %1157 = vrot.lane.b32.xlu0 %v10210_v16, %s6115_s14  ;;  %v1517_v16 = vsel %vm1507_vm8, %v1484_v26, %v7414_v0  ;;  %v1419_v0 = vsel %vm1410_vm4, %v1388_v28, %v10304_v19  ;;  %v10318_v26 = vld [vmem:[#allocation104_spill] sm:$0xff] }
 0x1d7   : > { %v1306_v29 = vpop.permute.xlu1 %1305  ;;  %v1550_v13 = vsel %vm1540_vm9, %v1517_v16, %v1128_v6  ;;  %v1452_v54 = vsel %vm1441_vm5, %v1419_v0, %v10305_v21  ;;  %v10315_v6 = vld [vmem:[#allocation10_spill] sm:$0xff] }
 0x1d8   : > { %v1615_v52 = vsel %vm1606_vm11, %v1582_v48, %v1306_v29  ;;  %v1218_v31 = vpop.permute.xlu0 %1217  ;;  %v1485_v61 = vsel %vm1474_vm7, %v1452_v54, %v7300_v36  ;;  %v10307_v36 = vld [vmem:[#allocation47_spill] sm:$0xff] }
 0x1d9   : > { %1249 = vrot.lane.b32.xlu1 %v10300_v5, %s6116_s15  ;;  %5943 = vmatprep.mubr.msk.f32.mxu0 %vm1651_vm12, %v1615_v52  ;;  %v1583_v25 = vsel %vm1573_vm10, %v1550_v13, %v1218_v31  ;;  %v1518_v44 = vsel %vm1507_vm8, %v1485_v61, %v7424_v4  ;;  %v1486_v14 = vsel %vm1474_vm7, %v10307_v36, %v7298_v32  ;;  %v10308_v32 = vld [vmem:[#allocation44_spill] sm:$0xff]  ;;  %v10316_v48 = vld [vmem:[#allocation87_spill] sm:$0xff]  ;;  %v10319_v5 = vld [vmem:[#allocation105_spill] sm:$0xff] }
 0x1da   : > { %1247 = vrot.lane.b32.xlu0 %v10301_v2, %s6116_s15  ;;  %v1519_v4 = vsel %vm1507_vm8, %v1486_v14, %v7422_v39  ;;  %v1009_v29 = vrot.slane %v10316_v48, 2  ;;  %v10320_v2 = vld [vmem:[#allocation103_spill] sm:$0xff] }
 0x1db   : > { %v1130_v40 = vpop.permute.xlu1 %1129  ;;  %v1011_v13 = vrot.slane %v10320_v2, 2  ;;  %v10324_v61 = vld [vmem:[#allocation7_spill] sm:$0xff] }
 0x1dc   : > { %v1308_v51 = vpop.permute.xlu0 %1307  ;;  %v1551_v60 = vsel %vm1540_vm9, %v1518_v44, %v1130_v40  ;;  %v1010_v16 = vsel %vm643_vm2, %v1008_v58, %v1009_v29  ;;  %v10332_v58 = vld [vmem:[#allocation99_spill] sm:$0xff] }
 0x1dd   : > { %v1616_v41 = vsel %vm1606_vm11, %v1583_v25, %v1308_v51  ;;  %1065 = vrot.lane.b32.xlu1 %v10303_v35, %s6114_s28  ;;  %v10321_v51 = vld [vmem:[#allocation80_spill] sm:$0xff]  ;;  %v1012_v19 = vsel %vm643_vm2, %v1009_v29, %v1011_v13 }
 0x1de   : > { %1337 = vrot.lane.b32.xlu0 %v10303_v35, %s6117_s16  ;;  %5944 = vmatmul.mubr.msk.f32.gmra.mrb[8].mxu0 %vm1651_vm12, %v1616_v41  ;;  %v1489_v28 = vsel %vm1474_vm7, %v10322_v15, %v10321_v51  ;;  %v10323_v41 = vld [vmem:[#allocation15_spill] sm:$0xff] }
 0x1df   : > { %v1220_v46 = vpop.permute.xlu1 %1219  ;;  %v1522_v35 = vsel %vm1507_vm8, %v1489_v28, %v10323_v41 }
 0x1e0   : > { %v1132_v17 = vpop.permute.xlu0 %1131  ;;  %v1584_v45 = vsel %vm1573_vm10, %v1551_v60, %v1220_v46 }
 0x1e1   : > { %1067 = vrot.lane.b32.xlu1 %v10306_v9, %s6114_s28  ;;  %v1552_v33 = vsel %vm1540_vm9, %v1519_v4, %v1132_v17  ;;  %v10325_v17 = vld [vmem:[#allocation49_spill] sm:$0xff] }
 0x1e2   : > { %1339 = vrot.lane.b32.xlu0 %v10306_v9, %s6117_s16  ;;  %v1490_v44 = vsel %vm1474_vm7, %v10325_v17, %v10324_v61 }
 0x1e3   : > { %v1310_v3 = vpop.permute.xlu1 %1309 }
 0x1e4   : > { %v1617_v18 = vsel %vm1606_vm11, %v1584_v45, %v1310_v3  ;;  %v1222_v27 = vpop.permute.xlu0 %1221 }
 0x1e5   : > { %1163 = vrot.lane.b32.xlu1 %v10215_v10, %s6115_s14  ;;  %5946 = vmatprep.mubr.msk.f32.mxu0 %vm1651_vm12, %v1617_v18  ;;  %v1585_v20 = vsel %vm1573_vm10, %v1552_v33, %v1222_v27  ;;  %v10309_v10 = vld [vmem:[#allocation45_spill] sm:$0xff] }
 0x1e6   : > { %1161 = vrot.lane.b32.xlu0 %v10218_v38, %s6115_s14  ;;  %v1487_v38 = vsel %vm1474_vm7, %v7057_v12, %v7308_v23  ;;  %v10313_v12 = vld [vmem:[#allocation48_spill] sm:$0xff] }
 0x1e7   : > { %v1134_v49 = vpop.permute.xlu1 %1133  ;;  %v1520_v53 = vsel %vm1507_vm8, %v1487_v38, %v10310_v56  ;;  %v1488_v23 = vsel %vm1474_vm7, %v10313_v12, %v10312_v47  ;;  %v10328_v56 = vld [vmem:[#allocation33_spill] sm:$0xff] }
 0x1e8   : > { %v1312_v43 = vpop.permute.xlu0 %1311  ;;  %v1553_v42 = vsel %vm1540_vm9, %v1520_v53, %v1134_v49  ;;  %v1521_v11 = vsel %vm1507_vm8, %v1488_v23, %v10315_v6  ;;  %v10329_v53 = vld [vmem:[#allocation50_spill] sm:$0xff] }
 0x1e9   : > { %v1618_v57 = vsel %vm1606_vm11, %v1585_v20, %v1312_v43  ;;  %1253 = vrot.lane.b32.xlu1 %v10308_v32, %s6116_s15  ;;  %v10326_v20 = vld [vmem:[#allocation98_spill] sm:$0xff]  ;;  %v10327_v43 = vld [vmem:[#allocation108_spill] sm:$0xff] }
 0x1ea   : > { %1251 = vrot.lane.b32.xlu0 %v10309_v10, %s6116_s15  ;;  %5947 = vmatmul.mubr.msk.f32.gmra.mrb[10].mxu0 %vm1651_vm12, %v1618_v57  ;;  %v1491_v57 = vsel %vm1474_vm7, %v10327_v43, %v10326_v20 }
 0x1eb   : > { %v1224_v39 = vpop.permute.xlu1 %1223 }
 0x1ec   : > { %v1136_v55 = vpop.permute.xlu0 %1135  ;;  %v1586_v22 = vsel %vm1573_vm10, %v1553_v42, %v1224_v39 }
 0x1ed   : > { %1069 = vrot.lane.b32.xlu1 %v10311_v8, %s6114_s28  ;;  %v1554_v62 = vsel %vm1540_vm9, %v1521_v11, %v1136_v55 }
 0x1ee   : > { %1341 = vrot.lane.b32.xlu0 %v10311_v8, %s6117_s16  ;;  %v1492_v8 = vsel %vm1474_vm7, %v10329_v53, %v10328_v56 }
 0x1ef   : > { %v1314_v7 = vpop.permute.xlu1 %1313 }
 0x1f0   : > { %v1619_v1 = vsel %vm1606_vm11, %v1586_v22, %v1314_v7  ;;  %v1226_v30 = vpop.permute.xlu0 %1225 }
 0x1f1   : > { %1071 = vrot.lane.b32.xlu1 %v10314_v37, %s6114_s28  ;;  %5949 = vmatprep.mubr.msk.f32.mxu0 %vm1651_vm12, %v1619_v1  ;;  %v1587_v63 = vsel %vm1573_vm10, %v1554_v62, %v1226_v30  ;;  %v10330_v62 = vld [vmem:[#allocation6_spill] sm:$0xff] }
 0x1f2   : > { %1343 = vrot.lane.b32.xlu0 %v10314_v37, %s6117_s16 }
 0x1f3   : > { %v1044_v34 = vpop.permute.xlu1 %1043 }
 0x1f4   : > { %v1316_v24 = vpop.permute.xlu0 %1315  ;;  %v1523_v60 = vsel %vm1507_vm8, %v1490_v44, %v1044_v34  ;;  %v10331_v34 = vld [vmem:[#allocation109_spill] sm:$0xff] }
 0x1f5   : > { %v1620_v50 = vsel %vm1606_vm11, %v1587_v63, %v1316_v24  ;;  %1167 = vrot.lane.b32.xlu1 %v10316_v48, %s6115_s14  ;;  %v1493_v63 = vsel %vm1474_vm7, %v10331_v34, %v10330_v62  ;;  %v10336_v44 = vld [vmem:[#allocation81_spill] sm:$0xff] }
 0x1f6   : > { %1165 = vrot.lane.b32.xlu0 %v10317_v59, %s6115_s14  ;;  %5950 = vmatmul.mubr.msk.f32.gmra.mrb[12].mxu0 %vm1651_vm12, %v1620_v50 }
 0x1f7   : > { %v1140_v52 = vpop.permute.xlu1 %1139 }
 0x1f8   : > { %v1138_v31 = vpop.permute.xlu0 %1137  ;;  %v1556_v45 = vsel %vm1540_vm9, %v1523_v60, %v1140_v52  ;;  %v10333_v52 = vld [vmem:[#allocation51_spill] sm:$0xff] }
 0x1f9   : > { %1257 = vrot.lane.b32.xlu1 %v10318_v26, %s6116_s15  ;;  %v1555_v0 = vsel %vm1540_vm9, %v1522_v35, %v1138_v31  ;;  %v1494_v31 = vsel %vm1474_vm7, %v10333_v52, %v10332_v58  ;;  %v10334_v35 = vld [vmem:[#allocation36_spill] sm:$0xff] }
 0x1fa   : > { %1255 = vrot.lane.b32.xlu0 %v10319_v5, %s6116_s15 }
 0x1fb   : > { %v1230_v40 = vpop.permute.xlu1 %1229 }
 0x1fc   : > { %v1228_v25 = vpop.permute.xlu0 %1227  ;;  %v1589_v18 = vsel %vm1573_vm10, %v1556_v45, %v1230_v40 }
 0x1fd   : > { %1073 = vrot.lane.b32.xlu1 %v1010_v16, %s6114_s28  ;;  %v1588_v54 = vsel %vm1573_vm10, %v1555_v0, %v1228_v25 }
 0x1fe   : > { %1345 = vrot.lane.b32.xlu0 %v1010_v16, %s6117_s16 }
 0x1ff   : > { %v1046_v21 = vpop.permute.xlu1 %1045 }
 0x200   : > { %v1318_v46 = vpop.permute.xlu0 %1317  ;;  %v1524_v32 = vsel %vm1507_vm8, %v1491_v57, %v1046_v21  ;;  %v10338_v57 = vld [vmem:[#allocation37_spill] sm:$0xff] }
 0x201   : > { %v1621_v9 = vsel %vm1606_vm11, %v1588_v54, %v1318_v46  ;;  %1075 = vrot.lane.b32.xlu1 %v1012_v19, %s6114_s28 }
 0x202   : > { %1347 = vrot.lane.b32.xlu0 %v1012_v19, %s6117_s16  ;;  %5952 = vmatprep.mubr.msk.f32.mxu0 %vm1651_vm12, %v1621_v9  ;;  %v10335_v19 = vld [vmem:[#allocation110_spill] sm:$0xff]  ;;  %v10337_v9 = vld [vmem:[#allocation52_spill] sm:$0xff] }
 0x203   : > { %v1048_v3 = vpop.permute.xlu1 %1047  ;;  %v1495_v0 = vsel %vm1474_vm7, %v10335_v19, %v10334_v35  ;;  %v1496_v60 = vsel %vm1474_vm7, %v10337_v9, %v10336_v44 }
 0x204   : > { %v1320_v27 = vpop.permute.xlu0 %1319  ;;  %v1525_v22 = vsel %vm1507_vm8, %v1492_v8, %v1048_v3  ;;  %v10340_v8 = vld [vmem:[#allocation82_spill] sm:$0xff] }
 0x205   : > { %v1622_v36 = vsel %vm1606_vm11, %v1589_v18, %v1320_v27 }
 0x206   : > { %5953 = vmatmul.mubr.msk.f32.gmra.mrb[14].mxu0 %vm1651_vm12, %v1622_v36 }
 0x207   : > { %v1144_v14 = vpop.permute.xlu1 %1143 }
 0x208   : > { %v1142_v4 = vpop.permute.xlu0 %1141  ;;  %v1558_v7 = vsel %vm1540_vm9, %v1525_v22, %v1144_v14 }
 0x209   : > { %v1557_v10 = vsel %vm1540_vm9, %v1524_v32, %v1142_v4  ;;  %v10339_v32 = vld [vmem:[#allocation111_spill] sm:$0xff] }
 0x20b   : > { %v1234_v33 = vpop.permute.xlu1 %1233 }
 0x20c   : > { %v1232_v49 = vpop.permute.xlu0 %1231  ;;  %v1591_v30 = vsel %vm1573_vm10, %v1558_v7, %v1234_v33 }
 0x20d   : > { %v1590_v38 = vsel %vm1573_vm10, %v1557_v10, %v1232_v49  ;;  %v1497_v10 = vsel %vm1474_vm7, %v10339_v32, %v10338_v57 }
 0x20f   : > { %v1050_v39 = vpop.permute.xlu1 %1049 }
 0x210   : > { %v1322_v55 = vpop.permute.xlu0 %1321  ;;  %v1526_v24 = vsel %vm1507_vm8, %v1493_v63, %v1050_v39  ;;  %v10342_v63 = vld [vmem:[#allocation83_spill] sm:$0xff] }
 0x211   : > { %v1623_v42 = vsel %vm1606_vm11, %v1590_v38, %v1322_v55 }
 0x212   : > { %5955 = vmatprep.mubr.msk.f32.mxu0 %vm1651_vm12, %v1623_v42  ;;  %v10341_v42 = vld [vmem:[#allocation96_spill] sm:$0xff] }
 0x213   : > { %v1052_v1 = vpop.permute.xlu1 %1051  ;;  %v1498_v22 = vsel %vm1474_vm7, %v10341_v42, %v10340_v8 }
 0x214   : > { %v1324_v47 = vpop.permute.xlu0 %1323  ;;  %v1527_v5 = vsel %vm1507_vm8, %v1494_v31, %v1052_v1  ;;  %v10344_v31 = vld [vmem:[#allocation12_spill] sm:$0xff] }
 0x215   : > { %v1624_v12 = vsel %vm1606_vm11, %v1591_v30, %v1324_v47 }
 0x216   : > { %5956 = vmatmul.mubr.msk.f32.gmra.mrb[16].mxu0 %vm1651_vm12, %v1624_v12 }
 0x217   : > { %v1148_v23 = vpop.permute.xlu1 %1147 }
 0x218   : > { %v1146_v37 = vpop.permute.xlu0 %1145  ;;  %v1560_v16 = vsel %vm1540_vm9, %v1527_v5, %v1148_v23 }
 0x219   : > { %v1559_v50 = vsel %vm1540_vm9, %v1526_v24, %v1146_v37  ;;  %v10343_v24 = vld [vmem:[#allocation77_spill] sm:$0xff] }
 0x21b   : > { %v1238_v6 = vpop.permute.xlu1 %1237 }
 0x21c   : > { %v1236_v11 = vpop.permute.xlu0 %1235  ;;  %v1593_v13 = vsel %vm1573_vm10, %v1560_v16, %v1238_v6 }
 0x21d   : > { %v1592_v29 = vsel %vm1573_vm10, %v1559_v50, %v1236_v11  ;;  %v1499_v50 = vsel %vm1474_vm7, %v10343_v24, %v10342_v63 }
 0x21f   : > { %v1054_v48 = vpop.permute.xlu1 %1053 }
 0x220   : > { %v1326_v59 = vpop.permute.xlu0 %1325  ;;  %v1528_v21 = vsel %vm1507_vm8, %v1495_v0, %v1054_v48  ;;  %v10346_v0 = vld [vmem:[#allocation8_spill] sm:$0xff] }
 0x221   : > { %v1625_v26 = vsel %vm1606_vm11, %v1592_v29, %v1326_v59 }
 0x222   : > { %5958 = vmatprep.mubr.msk.f32.mxu0 %vm1651_vm12, %v1625_v26  ;;  %v10345_v26 = vld [vmem:[#allocation5_spill] sm:$0xff] }
 0x223   : > { %v1056_v2 = vpop.permute.xlu1 %1055  ;;  %v1500_v5 = vsel %vm1474_vm7, %v10345_v26, %v10344_v31 }
 0x224   : > { %v1328_v40 = vpop.permute.xlu0 %1327  ;;  %v1529_v3 = vsel %vm1507_vm8, %v1496_v60, %v1056_v2  ;;  %v10348_v60 = vld [vmem:[#allocation40_spill] sm:$0xff] }
 0x225   : > { %v1626_v25 = vsel %vm1606_vm11, %v1593_v13, %v1328_v40 }
 0x226   : > { %5959 = vmatmul.mubr.msk.f32.gmra.mrb[18].mxu0 %vm1651_vm12, %v1626_v25 }
 0x227   : > { %v1152_v51 = vpop.permute.xlu1 %1151 }
 0x228   : > { %v1150_v15 = vpop.permute.xlu0 %1149  ;;  %v1562_v18 = vsel %vm1540_vm9, %v1529_v3, %v1152_v51 }
 0x229   : > { %v1561_v54 = vsel %vm1540_vm9, %v1528_v21, %v1150_v15  ;;  %v10347_v21 = vld [vmem:[#allocation2_spill] sm:$0xff] }
 0x22b   : > { %v1242_v28 = vpop.permute.xlu1 %1241 }
 0x22c   : > { %v1240_v41 = vpop.permute.xlu0 %1239  ;;  %v1595_v36 = vsel %vm1573_vm10, %v1562_v18, %v1242_v28 }
 0x22d   : > { %v1594_v61 = vsel %vm1573_vm10, %v1561_v54, %v1240_v41  ;;  %v1501_v54 = vsel %vm1474_vm7, %v10347_v21, %v10346_v0 }
 0x22f   : > { %v1058_v46 = vpop.permute.xlu1 %1057 }
 0x230   : > { %v1330_v17 = vpop.permute.xlu0 %1329  ;;  %v1530_v39 = vsel %vm1507_vm8, %v1497_v10, %v1058_v46  ;;  %v10350_v10 = vld [vmem:[#allocation41_spill] sm:$0xff] }
 0x231   : > { %v1627_v45 = vsel %vm1606_vm11, %v1594_v61, %v1330_v17 }
 0x232   : > { %5961 = vmatprep.mubr.msk.f32.mxu0 %vm1651_vm12, %v1627_v45  ;;  %v10349_v45 = vld [vmem:[#allocation27_spill] sm:$0xff] }
 0x233   : > { %v1060_v27 = vpop.permute.xlu1 %1059  ;;  %v1502_v3 = vsel %vm1474_vm7, %v10349_v45, %v10348_v60 }
 0x234   : > { %v1332_v14 = vpop.permute.xlu0 %1331  ;;  %v1531_v1 = vsel %vm1507_vm8, %v1498_v22, %v1060_v27 }
 0x235   : > { %v1628_v4 = vsel %vm1606_vm11, %v1595_v36, %v1332_v14 }
 0x236   : > { %5962 = vmatmul.mubr.msk.f32.gmra.mrb[20].mxu0 %vm1651_vm12, %v1628_v4 }
 0x237   : > { %v1156_v33 = vpop.permute.xlu1 %1155 }
 0x238   : > { %v1154_v49 = vpop.permute.xlu0 %1153  ;;  %v1564_v30 = vsel %vm1540_vm9, %v1531_v1, %v1156_v33 }
 0x239   : > { %v1563_v38 = vsel %vm1540_vm9, %v1530_v39, %v1154_v49  ;;  %v10351_v39 = vld [vmem:[#allocation28_spill] sm:$0xff] }
 0x23b   : > { %v1246_v20 = vpop.permute.xlu1 %1245 }
 0x23c   : > { %v1244_v43 = vpop.permute.xlu0 %1243  ;;  %v1597_v12 = vsel %vm1573_vm10, %v1564_v30, %v1246_v20 }
 0x23d   : > { %v1596_v56 = vsel %vm1573_vm10, %v1563_v38, %v1244_v43  ;;  %v1503_v38 = vsel %vm1474_vm7, %v10351_v39, %v10350_v10 }
 0x23f   : > { %v1062_v55 = vpop.permute.xlu1 %1061 }
 0x240   : > { %v1334_v53 = vpop.permute.xlu0 %1333  ;;  %v1532_v48 = vsel %vm1507_vm8, %v1499_v50, %v1062_v55 }
 0x241   : > { %v1629_v7 = vsel %vm1606_vm11, %v1596_v56, %v1334_v53  ;;  %v10352_v56 = vld [vmem:[#allocation101_spill] sm:$0xff]  ;;  %v10353_v53 = vld [vmem:[#allocation79_spill] sm:$0xff] }
 0x242   : > { %5964 = vmatprep.mubr.msk.f32.mxu0 %vm1651_vm12, %v1629_v7  ;;  %v1505_v8 = vsel %vm1474_vm7, %v10353_v53, %v10352_v56 }
 0x243   : > { %v1064_v47 = vpop.permute.xlu1 %1063 }
 0x244   : > { %v1336_v23 = vpop.permute.xlu0 %1335  ;;  %v1533_v2 = vsel %vm1507_vm8, %v1500_v5, %v1064_v47  ;;  %v10354_v47 = vld [vmem:[#allocation84_spill] sm:$0xff] }
 0x245   : > { %v1630_v37 = vsel %vm1606_vm11, %v1597_v12, %v1336_v23  ;;  %v10355_v12 = vld [vmem:[#allocation78_spill] sm:$0xff] }
 0x246   : > { %5965 = vmatmul.mubr.msk.f32.gmra.mrb[22].mxu0 %vm1651_vm12, %v1630_v37  ;;  %v1504_v23 = vsel %vm1474_vm7, %v10355_v12, %v10354_v47 }
 0x247   : > { %v1160_v6 = vpop.permute.xlu1 %1159 }
 0x248   : > { %v1158_v11 = vpop.permute.xlu0 %1157  ;;  %v1566_v13 = vsel %vm1540_vm9, %v1533_v2, %v1160_v6  ;;  %v7869_v2 = vld [vmem:[%s9837_s2] ss:$0 sm:$0xff] }
 0x249   : > { %v1565_v29 = vsel %vm1540_vm9, %v1532_v48, %v1158_v11 }
 0x24b   : > { %v1250_v62 = vpop.permute.xlu1 %1249 }
 0x24c   : > { %v1248_v34 = vpop.permute.xlu0 %1247  ;;  %v1599_v25 = vsel %vm1573_vm10, %v1566_v13, %v1250_v62  ;;  %v10356_v62 = vld [vmem:[#allocation100_spill] sm:$0xff] }
 0x24d   : > { %v1598_v58 = vsel %vm1573_vm10, %v1565_v29, %v1248_v34  ;;  %v10357_v34 = vld [vmem:[#allocation97_spill] sm:$0xff] }
 0x24e   : > { %v1506_v63 = vsel %vm1474_vm7, %v10357_v34, %v10356_v62 }
 0x24f   : > { %v1066_v59 = vpop.permute.xlu1 %1065 }
 0x250   : > { %v1338_v52 = vpop.permute.xlu0 %1337  ;;  %v1534_v46 = vsel %vm1507_vm8, %v1501_v54, %v1066_v59 }
 0x251   : > { %v1631_v16 = vsel %vm1606_vm11, %v1598_v58, %v1338_v52 }
 0x252   : > { %5967 = vmatprep.mubr.msk.f32.mxu0 %vm1651_vm12, %v1631_v16 }
 0x253   : > { %v1068_v40 = vpop.permute.xlu1 %1067 }
 0x254   : > { %v1340_v51 = vpop.permute.xlu0 %1339  ;;  %v1535_v27 = vsel %vm1507_vm8, %v1502_v3, %v1068_v40 }
 0x255   : > { %v1632_v15 = vsel %vm1606_vm11, %v1599_v25, %v1340_v51 }
 0x256   : > { %5968 = vmatmul.mubr.msk.f32.gmra.mrb[24].mxu0 %vm1651_vm12, %v1632_v15 }
 0x257   : > { %v1164_v28 = vpop.permute.xlu1 %1163 }
 0x258   : > { %v1162_v41 = vpop.permute.xlu0 %1161  ;;  %v1568_v36 = vsel %vm1540_vm9, %v1535_v27, %v1164_v28 }
 0x259   : > { %v1567_v61 = vsel %vm1540_vm9, %v1534_v46, %v1162_v41 }
 0x25b   : > { %v1254_v35 = vpop.permute.xlu1 %1253 }
 0x25c   : > { %v1252_v19 = vpop.permute.xlu0 %1251  ;;  %v1601_v4 = vsel %vm1573_vm10, %v1568_v36, %v1254_v35 }
 0x25d   : > { %v1600_v44 = vsel %vm1573_vm10, %v1567_v61, %v1252_v19 }
 0x25f   : > { %v1070_v17 = vpop.permute.xlu1 %1069 }
 0x260   : > { %v1342_v9 = vpop.permute.xlu0 %1341  ;;  %v1536_v55 = vsel %vm1507_vm8, %v1503_v38, %v1070_v17 }
 0x261   : > { %v1633_v18 = vsel %vm1606_vm11, %v1600_v44, %v1342_v9 }
 0x262   : > { %5970 = vmatprep.mubr.msk.f32.mxu0 %vm1651_vm12, %v1633_v18 }
 0x263   : > { %v1072_v14 = vpop.permute.xlu1 %1071 }
 0x264   : > { %v1344_v33 = vpop.permute.xlu0 %1343  ;;  %v1537_v11 = vsel %vm1507_vm8, %v1504_v23, %v1072_v14 }
 0x265   : > { %v1634_v49 = vsel %vm1606_vm11, %v1601_v4, %v1344_v33 }
 0x266   : > { %5971 = vmatmul.mubr.msk.f32.gmra.mrb[26].mxu0 %vm1651_vm12, %v1634_v49 }
 0x267   : > { %v1168_v20 = vpop.permute.xlu1 %1167 }
 0x268   : > { %v1166_v43 = vpop.permute.xlu0 %1165  ;;  %v1570_v24 = vsel %vm1540_vm9, %v1537_v11, %v1168_v20 }
 0x269   : > { %v1569_v42 = vsel %vm1540_vm9, %v1536_v55, %v1166_v43 }
 0x26b   : > { %v1258_v57 = vpop.permute.xlu1 %1257 }
 0x26c   : > { %v1256_v32 = vpop.permute.xlu0 %1255  ;;  %v1603_v29 = vsel %vm1573_vm10, %v1570_v24, %v1258_v57 }
 0x26d   : > { %v1602_v7 = vsel %vm1573_vm10, %v1569_v42, %v1256_v32 }
 0x26f   : > { %v1074_v22 = vpop.permute.xlu1 %1073 }
 0x270   : > { %v1538_v1 = vsel %vm1507_vm8, %v1505_v8, %v1074_v22  ;;  %v1346_v30 = vpop.permute.xlu0 %1345 }
 0x271   : > { %v1571_v37 = vsel %vm1540_vm9, %v1538_v1, %v1166_v43  ;;  %v1635_v6 = vsel %vm1606_vm11, %v1602_v7, %v1346_v30 }
 0x272   : > { %5973 = vmatprep.mubr.msk.f32.mxu0 %vm1651_vm12, %v1635_v6  ;;  %v1604_v48 = vsel %vm1573_vm10, %v1571_v37, %v1256_v32 }
 0x273   : > { %v1076_v50 = vpop.permute.xlu1 %1075  ;;  %v1637_v26 = vsel %vm1606_vm11, %v1604_v48, %v1346_v30 }
 0x274   : > { %v1539_v59 = vsel %vm1507_vm8, %v1506_v63, %v1076_v50  ;;  %v1348_v58 = vpop.permute.xlu0 %1347 }
 0x275   : > { %v1572_v52 = vsel %vm1540_vm9, %v1539_v59, %v1168_v20  ;;  %v1636_v31 = vsel %vm1606_vm11, %v1603_v29, %v1348_v58 }
 0x276   : > { %5974 = vmatmul.mubr.msk.f32.gmra.mrb[28].mxu0 %vm1651_vm12, %v1636_v31  ;;  %v1605_v5 = vsel %vm1573_vm10, %v1572_v52, %v1258_v57 }
 0x277   : > { %5976 = vmatprep.mubr.msk.f32.mxu0 %vm1651_vm12, %v1637_v26  ;;  %v1638_v16 = vsel %vm1606_vm11, %v1605_v5, %v1348_v58 }
 0x27a   : > { %5977 = vmatmul.mubr.msk.f32.gmra.mrb[30].mxu0 %vm1651_vm12, %v1638_v16 }
 0x281   : > { %v5933_v13 = vpop.f32.mrb[0].mxu0 }
 0x282   : > { %v1824_v40 = vadd.f32 %v5933_v13, %v7869_v2  ;;  %v1818_v25 = vpop.f32.mrb[1].mxu0 }
 0x283   : > { %v1819_v51 = vadd.f32 %v7869_v2, %v1818_v25 }
 0x284   : > { %vm1978_vm13 = vcmp.ge.f32.partialorder %v1824_v40, 0.0  ;;  %v2010_v15 = vmul.f32 0.01, %v1824_v40 }
 0x285   : > { %vm1977_vm14 = vcmp.ge.f32.partialorder %v1819_v51, 0.0  ;;  %v2009_v28 = vmul.f32 0.01, %v1819_v51 }
 0x286   : > { %v2042_v41 = vsel %vm1978_vm13, %v1824_v40, %v2010_v15 }
 0x287   : > { %v2106_v35 = vrot.slane %v2042_v41, 7  ;;  %v2200_v19 = vrot.slane %v2042_v41, 6  ;;  %v2041_v0 = vsel %vm1977_vm14, %v1819_v51, %v2009_v28 }
 0x288   : > { %v2105_v21 = vrot.slane %v2041_v0, 7 }
 0x289   : > { %v7874_v54 = vsel %vm287_vm0, %v2106_v35, %v2200_v19 }
 0x28a   : > { %v7877_v46 = vsel %vm287_vm0, %v2105_v21, %v2106_v35  ;;  %v7880_v61 = vsel %vm287_vm0, %v2041_v0, %v2105_v21  ;;  %v2297_v17 = vrot.slane %v7874_v54, 1 }
 0x28b   : > { %10358 = vst [vmem:[#allocation11_spill] sm:$0xff] %v7880_v61  ;;  %v2295_v44 = vrot.slane %v7877_v46, 1  ;;  %v2294_v9 = vrot.slane %v7880_v61, 1 }
 0x28d   : > { %v5936_v60 = vpop.f32.mrb[2].mxu0  ;;  %v7886_v45 = vsel %vm477_vm1, %v2295_v44, %v2297_v17  ;;  %v7889_v3 = vsel %vm477_vm1, %v2294_v9, %v2295_v44 }
 0x28e   : > { %10359 = vst [vmem:[#allocation14_spill] sm:$0xff] %v7886_v45  ;;  %10360 = vst [vmem:[#allocation13_spill] sm:$0xff] %v7889_v3  ;;  %v1834_v18 = vadd.f32 %v5936_v60, %v7869_v2  ;;  %2371 = vrot.lane.b32.xlu1 %v7886_v45, %s6111_s25  ;;  %2369 = vrot.lane.b32.xlu0 %v7889_v3, %s6111_s25  ;;  %v1828_v27 = vpop.f32.mrb[3].mxu0 }
 0x28f   : > { %v1829_v36 = vadd.f32 %v7869_v2, %v1828_v27 }
 0x290   : > { %vm1980_vm15 = vcmp.ge.f32.partialorder %v1834_v18, 0.0  ;;  %v2012_v14 = vmul.f32 0.01, %v1834_v18 }
 0x291   : > { %vm1979_vm3 = vcmp.ge.f32.partialorder %v1829_v36, 0.0  ;;  %v2011_v4 = vmul.f32 0.01, %v1829_v36 }
 0x292   : > { %v2044_v33 = vsel %vm1980_vm15, %v1834_v18, %v2012_v14 }
 0x293   : > { %v2109_v49 = vrot.slane %v2044_v33, 7  ;;  %v2201_v20 = vrot.slane %v2044_v33, 6  ;;  %v2043_v43 = vsel %vm1979_vm3, %v1829_v36, %v2011_v4 }
 0x294   : > { %v2108_v57 = vrot.slane %v2043_v43, 7 }
 0x295   : > { %v7898_v32 = vsel %vm287_vm0, %v2109_v49, %v2201_v20 }
 0x296   : > { %v7901_v10 = vsel %vm287_vm0, %v2108_v57, %v2109_v49  ;;  %v7904_v39 = vsel %vm287_vm0, %v2043_v43, %v2108_v57  ;;  %v2302_v38 = vrot.slane %v7898_v32, 1 }
 0x297   : > { %v2300_v55 = vrot.slane %v7901_v10, 1  ;;  %v2299_v56 = vrot.slane %v7904_v39, 1 }
 0x299   : > { %v5939_v53 = vpop.f32.mrb[4].mxu0  ;;  %v7910_v8 = vsel %vm477_vm1, %v2300_v55, %v2302_v38  ;;  %v7913_v42 = vsel %vm477_vm1, %v2299_v56, %v2300_v55 }
 0x29a   : > { %10361 = vst [vmem:[#allocation17_spill] sm:$0xff] %v7910_v8  ;;  %10362 = vst [vmem:[#allocation16_spill] sm:$0xff] %v7913_v42  ;;  %v1844_v22 = vadd.f32 %v5939_v53, %v7869_v2  ;;  %2375 = vrot.lane.b32.xlu1 %v7910_v8, %s6111_s25  ;;  %2373 = vrot.lane.b32.xlu0 %v7913_v42, %s6111_s25  ;;  %v1838_v7 = vpop.f32.mrb[5].mxu0 }
 0x29b   : > { %v1839_v1 = vadd.f32 %v7869_v2, %v1838_v7 }
 0x29c   : > { %vm1982_vm5 = vcmp.ge.f32.partialorder %v1844_v22, 0.0  ;;  %v2014_v30 = vmul.f32 0.01, %v1844_v22 }
 0x29d   : > { %vm1981_vm6 = vcmp.ge.f32.partialorder %v1839_v1, 0.0  ;;  %v2013_v47 = vmul.f32 0.01, %v1839_v1 }
 0x29e   : > { %v2046_v12 = vsel %vm1982_vm5, %v1844_v22, %v2014_v30 }
 0x29f   : > { %v2112_v23 = vrot.slane %v2046_v12, 7  ;;  %v2202_v37 = vrot.slane %v2046_v12, 6  ;;  %v2045_v6 = vsel %vm1981_vm6, %v1839_v1, %v2013_v47 }
 0x2a0   : > { %v2111_v11 = vrot.slane %v2045_v6, 7 }
 0x2a1   : > { %v7922_v62 = vsel %vm287_vm0, %v2112_v23, %v2202_v37 }
 0x2a2   : > { %v7925_v34 = vsel %vm287_vm0, %v2111_v11, %v2112_v23  ;;  %v7928_v63 = vsel %vm287_vm0, %v2045_v6, %v2111_v11  ;;  %v2307_v24 = vrot.slane %v7922_v62, 1 }
 0x2a3   : > { %v2305_v50 = vrot.slane %v7925_v34, 1  ;;  %v2304_v48 = vrot.slane %v7928_v63, 1 }
 0x2a5   : > { %v5942_v29 = vpop.f32.mrb[6].mxu0  ;;  %v7934_v59 = vsel %vm477_vm1, %v2305_v50, %v2307_v24  ;;  %v7937_v58 = vsel %vm477_vm1, %v2304_v48, %v2305_v50 }
 0x2a6   : > { %v1854_v52 = vadd.f32 %v5942_v29, %v7869_v2  ;;  %2379 = vrot.lane.b32.xlu1 %v7934_v59, %s6111_s25  ;;  %2377 = vrot.lane.b32.xlu0 %v7937_v58, %s6111_s25  ;;  %v1848_v31 = vpop.f32.mrb[7].mxu0 }
 0x2a7   : > { %v1849_v26 = vadd.f32 %v7869_v2, %v1848_v31 }
 0x2a8   : > { %vm1984_vm8 = vcmp.ge.f32.partialorder %v1854_v52, 0.0  ;;  %v2016_v5 = vmul.f32 0.01, %v1854_v52 }
 0x2a9   : > { %vm1983_vm10 = vcmp.ge.f32.partialorder %v1849_v26, 0.0  ;;  %v2015_v16 = vmul.f32 0.01, %v1849_v26 }
 0x2aa   : > { %v2048_v13 = vsel %vm1984_vm8, %v1854_v52, %v2016_v5 }
 0x2ab   : > { %v2115_v40 = vrot.slane %v2048_v13, 7  ;;  %v2203_v25 = vrot.slane %v2048_v13, 6  ;;  %v2047_v51 = vsel %vm1983_vm10, %v1849_v26, %v2015_v16 }
 0x2ac   : > { %v2114_v15 = vrot.slane %v2047_v51, 7 }
 0x2ad   : > { %v7946_v28 = vsel %vm287_vm0, %v2115_v40, %v2203_v25 }
 0x2ae   : > { %v7949_v41 = vsel %vm287_vm0, %v2114_v15, %v2115_v40  ;;  %v7952_v35 = vsel %vm287_vm0, %v2047_v51, %v2114_v15  ;;  %v2312_v19 = vrot.slane %v7946_v28, 1 }
 0x2af   : > { %v2310_v0 = vrot.slane %v7949_v41, 1  ;;  %v2309_v21 = vrot.slane %v7952_v35, 1 }
 0x2b1   : > { %v5945_v17 = vpop.f32.mrb[8].mxu0  ;;  %v7958_v44 = vsel %vm477_vm1, %v2310_v0, %v2312_v19  ;;  %v7961_v9 = vsel %vm477_vm1, %v2309_v21, %v2310_v0 }
 0x2b2   : > { %v1864_v60 = vadd.f32 %v5945_v17, %v7869_v2  ;;  %2383 = vrot.lane.b32.xlu1 %v7958_v44, %s6111_s25  ;;  %2381 = vrot.lane.b32.xlu0 %v7961_v9, %s6111_s25  ;;  %v1858_v18 = vpop.f32.mrb[9].mxu0 }
 0x2b3   : > { %v1859_v27 = vadd.f32 %v7869_v2, %v1858_v18 }
 0x2b4   : > { %vm1986_vm12 = vcmp.ge.f32.partialorder %v1864_v60, 0.0  ;;  %v2018_v36 = vmul.f32 0.01, %v1864_v60 }
 0x2b5   : > { %vm1985_vm13 = vcmp.ge.f32.partialorder %v1859_v27, 0.0  ;;  %v2017_v14 = vmul.f32 0.01, %v1859_v27 }
 0x2b6   : > { %v2050_v4 = vsel %vm1986_vm12, %v1864_v60, %v2018_v36 }
 0x2b7   : > { %v2118_v33 = vrot.slane %v2050_v4, 7  ;;  %v2204_v49 = vrot.slane %v2050_v4, 6  ;;  %v2049_v20 = vsel %vm1985_vm13, %v1859_v27, %v2017_v14 }
 0x2b8   : > { %v2117_v43 = vrot.slane %v2049_v20, 7 }
 0x2b9   : > { %v7970_v57 = vsel %vm287_vm0, %v2118_v33, %v2204_v49 }
 0x2ba   : > { %v7973_v38 = vsel %vm287_vm0, %v2117_v43, %v2118_v33  ;;  %v7976_v55 = vsel %vm287_vm0, %v2049_v20, %v2117_v43  ;;  %v2317_v56 = vrot.slane %v7970_v57, 1 }
 0x2bb   : > { %v2315_v53 = vrot.slane %v7973_v38, 1  ;;  %v2314_v22 = vrot.slane %v7976_v55, 1 }
 0x2bd   : > { %v5948_v7 = vpop.f32.mrb[10].mxu0  ;;  %v7982_v1 = vsel %vm477_vm1, %v2315_v53, %v2317_v56  ;;  %v7985_v30 = vsel %vm477_vm1, %v2314_v22, %v2315_v53 }
 0x2be   : > { %v1874_v47 = vadd.f32 %v5948_v7, %v7869_v2  ;;  %2387 = vrot.lane.b32.xlu1 %v7982_v1, %s6111_s25  ;;  %2385 = vrot.lane.b32.xlu0 %v7985_v30, %s6111_s25  ;;  %v1868_v12 = vpop.f32.mrb[11].mxu0 }
 0x2bf   : > { %v1869_v23 = vadd.f32 %v7869_v2, %v1868_v12 }
 0x2c0   : > { %vm1988_vm14 = vcmp.ge.f32.partialorder %v1874_v47, 0.0  ;;  %v2020_v37 = vmul.f32 0.01, %v1874_v47 }
 0x2c1   : > { %vm1987_vm15 = vcmp.ge.f32.partialorder %v1869_v23, 0.0  ;;  %v2019_v6 = vmul.f32 0.01, %v1869_v23 }
 0x2c2   : > { %v2052_v11 = vsel %vm1988_vm14, %v1874_v47, %v2020_v37 }
 0x2c3   : > { %v2121_v24 = vrot.slane %v2052_v11, 7  ;;  %v2205_v50 = vrot.slane %v2052_v11, 6  ;;  %v2051_v48 = vsel %vm1987_vm15, %v1869_v23, %v2019_v6 }
 0x2c4   : > { %v2120_v29 = vrot.slane %v2051_v48, 7 }
 0x2c5   : > { %v7994_v52 = vsel %vm287_vm0, %v2121_v24, %v2205_v50 }
 0x2c6   : > { %v7997_v31 = vsel %vm287_vm0, %v2120_v29, %v2121_v24  ;;  %v8000_v26 = vsel %vm287_vm0, %v2051_v48, %v2120_v29  ;;  %v2322_v5 = vrot.slane %v7994_v52, 1 }
 0x2c7   : > { %v2320_v16 = vrot.slane %v7997_v31, 1  ;;  %v2319_v13 = vrot.slane %v8000_v26, 1 }
 0x2c9   : > { %v5951_v40 = vpop.f32.mrb[12].mxu0  ;;  %v8006_v25 = vsel %vm477_vm1, %v2320_v16, %v2322_v5  ;;  %v8009_v51 = vsel %vm477_vm1, %v2319_v13, %v2320_v16 }
 0x2ca   : > { %v1884_v15 = vadd.f32 %v5951_v40, %v7869_v2  ;;  %2391 = vrot.lane.b32.xlu1 %v8006_v25, %s6111_s25  ;;  %2389 = vrot.lane.b32.xlu0 %v8009_v51, %s6111_s25  ;;  %v1878_v19 = vpop.f32.mrb[13].mxu0 }
 0x2cb   : > { %v1879_v0 = vadd.f32 %v7869_v2, %v1878_v19 }
 0x2cc   : > { %vm1990_vm3 = vcmp.ge.f32.partialorder %v1884_v15, 0.0  ;;  %v2022_v21 = vmul.f32 0.01, %v1884_v15 }
 0x2cd   : > { %vm1989_vm5 = vcmp.ge.f32.partialorder %v1879_v0, 0.0  ;;  %v2021_v17 = vmul.f32 0.01, %v1879_v0 }
 0x2ce   : > { %v2054_v60 = vsel %vm1990_vm3, %v1884_v15, %v2022_v21 }
 0x2cf   : > { %v2124_v18 = vrot.slane %v2054_v60, 7  ;;  %v2206_v27 = vrot.slane %v2054_v60, 6  ;;  %v2053_v36 = vsel %vm1989_vm5, %v1879_v0, %v2021_v17 }
 0x2d0   : > { %v2123_v14 = vrot.slane %v2053_v36, 7 }
 0x2d1   : > { %v8018_v4 = vsel %vm287_vm0, %v2124_v18, %v2206_v27 }
 0x2d2   : > { %v8021_v33 = vsel %vm287_vm0, %v2123_v14, %v2124_v18  ;;  %v8024_v49 = vsel %vm287_vm0, %v2053_v36, %v2123_v14  ;;  %v2327_v20 = vrot.slane %v8018_v4, 1 }
 0x2d3   : > { %10363 = vst [vmem:[#allocation19_spill] sm:$0xff] %v8021_v33  ;;  %10364 = vst [vmem:[#allocation18_spill] sm:$0xff] %v8024_v49  ;;  %v2325_v43 = vrot.slane %v8021_v33, 1  ;;  %v2324_v56 = vrot.slane %v8024_v49, 1 }
 0x2d5   : > { %v8030_v53 = vsel %vm477_vm1, %v2325_v43, %v2327_v20  ;;  %v8033_v22 = vsel %vm477_vm1, %v2324_v56, %v2325_v43 }
 0x2d6   : > { %2395 = vrot.lane.b32.xlu1 %v8030_v53, %s6111_s25  ;;  %2393 = vrot.lane.b32.xlu0 %v8033_v22, %s6111_s25 }
 0x2d9   : > { %v5954_v7 = vpop.f32.mrb[14].mxu0 }
 0x2da   : > { %v1894_v47 = vadd.f32 %v5954_v7, %v7869_v2  ;;  %v1888_v12 = vpop.f32.mrb[15].mxu0 }
 0x2db   : > { %v1889_v23 = vadd.f32 %v7869_v2, %v1888_v12 }
 0x2dc   : > { %vm1992_vm6 = vcmp.ge.f32.partialorder %v1894_v47, 0.0  ;;  %v2024_v37 = vmul.f32 0.01, %v1894_v47 }
 0x2dd   : > { %vm1991_vm8 = vcmp.ge.f32.partialorder %v1889_v23, 0.0  ;;  %v2023_v6 = vmul.f32 0.01, %v1889_v23 }
 0x2de   : > { %v2056_v11 = vsel %vm1992_vm6, %v1894_v47, %v2024_v37 }
 0x2df   : > { %v2127_v24 = vrot.slane %v2056_v11, 7  ;;  %v2207_v50 = vrot.slane %v2056_v11, 6  ;;  %v2055_v48 = vsel %vm1991_vm8, %v1889_v23, %v2023_v6 }
 0x2e0   : > { %v2126_v29 = vrot.slane %v2055_v48, 7 }
 0x2e1   : > { %v8042_v5 = vsel %vm287_vm0, %v2127_v24, %v2207_v50 }
 0x2e2   : > { %v8045_v16 = vsel %vm287_vm0, %v2126_v29, %v2127_v24  ;;  %v8048_v13 = vsel %vm287_vm0, %v2055_v48, %v2126_v29  ;;  %v2332_v40 = vrot.slane %v8042_v5, 1 }
 0x2e3   : > { %v2330_v15 = vrot.slane %v8045_v16, 1  ;;  %v2329_v19 = vrot.slane %v8048_v13, 1 }
 0x2e5   : > { %v8054_v0 = vsel %vm477_vm1, %v2330_v15, %v2332_v40  ;;  %v8057_v21 = vsel %vm477_vm1, %v2329_v19, %v2330_v15 }
 0x2e6   : > { %2399 = vrot.lane.b32.xlu1 %v8054_v0, %s6111_s25  ;;  %2397 = vrot.lane.b32.xlu0 %v8057_v21, %s6111_s25 }
 0x2e9   : > { %v5957_v17 = vpop.f32.mrb[16].mxu0 }
 0x2ea   : > { %v1904_v60 = vadd.f32 %v5957_v17, %v7869_v2  ;;  %v1898_v18 = vpop.f32.mrb[17].mxu0 }
 0x2eb   : > { %v1899_v27 = vadd.f32 %v7869_v2, %v1898_v18 }
 0x2ec   : > { %vm1994_vm10 = vcmp.ge.f32.partialorder %v1904_v60, 0.0  ;;  %v2026_v36 = vmul.f32 0.01, %v1904_v60 }
 0x2ed   : > { %vm1993_vm12 = vcmp.ge.f32.partialorder %v1899_v27, 0.0  ;;  %v2025_v14 = vmul.f32 0.01, %v1899_v27 }
 0x2ee   : > { %v2058_v20 = vsel %vm1994_vm10, %v1904_v60, %v2026_v36 }
 0x2ef   : > { %v2130_v43 = vrot.slane %v2058_v20, 7  ;;  %v2208_v56 = vrot.slane %v2058_v20, 6  ;;  %v2057_v7 = vsel %vm1993_vm12, %v1899_v27, %v2025_v14 }
 0x2f0   : > { %v2129_v47 = vrot.slane %v2057_v7, 7 }
 0x2f1   : > { %v8066_v12 = vsel %vm287_vm0, %v2130_v43, %v2208_v56 }
 0x2f2   : > { %v8069_v23 = vsel %vm287_vm0, %v2129_v47, %v2130_v43  ;;  %v8072_v37 = vsel %vm287_vm0, %v2057_v7, %v2129_v47  ;;  %v2337_v6 = vrot.slane %v8066_v12, 1 }
 0x2f3   : > { %v2335_v11 = vrot.slane %v8069_v23, 1  ;;  %v2334_v24 = vrot.slane %v8072_v37, 1 }
 0x2f5   : > { %v8078_v50 = vsel %vm477_vm1, %v2335_v11, %v2337_v6  ;;  %v8081_v48 = vsel %vm477_vm1, %v2334_v24, %v2335_v11 }
 0x2f6   : > { %2403 = vrot.lane.b32.xlu1 %v8078_v50, %s6111_s25  ;;  %2401 = vrot.lane.b32.xlu0 %v8081_v48, %s6111_s25 }
 0x2f9   : > { %v5960_v29 = vpop.f32.mrb[18].mxu0 }
 0x2fa   : > { %v1914_v40 = vadd.f32 %v5960_v29, %v7869_v2  ;;  %v1908_v15 = vpop.f32.mrb[19].mxu0 }
 0x2fb   : > { %v1909_v19 = vadd.f32 %v7869_v2, %v1908_v15 }
 0x2fc   : > { %vm1996_vm13 = vcmp.ge.f32.partialorder %v1914_v40, 0.0  ;;  %v2028_v17 = vmul.f32 0.01, %v1914_v40 }
 0x2fd   : > { %vm1995_vm14 = vcmp.ge.f32.partialorder %v1909_v19, 0.0  ;;  %v2027_v60 = vmul.f32 0.01, %v1909_v19 }
 0x2fe   : > { %v2060_v18 = vsel %vm1996_vm13, %v1914_v40, %v2028_v17 }
 0x2ff   : > { %v2133_v27 = vrot.slane %v2060_v18, 7  ;;  %v2209_v36 = vrot.slane %v2060_v18, 6  ;;  %v2059_v14 = vsel %vm1995_vm14, %v1909_v19, %v2027_v60 }
 0x300   : > { %v2132_v20 = vrot.slane %v2059_v14, 7 }
 0x301   : > { %v8090_v43 = vsel %vm287_vm0, %v2133_v27, %v2209_v36 }
 0x302   : > { %10365 = vst [vmem:[#allocation21_spill] sm:$0xff] %v8090_v43  ;;  %v8093_v56 = vsel %vm287_vm0, %v2132_v20, %v2133_v27  ;;  %v8096_v7 = vsel %vm287_vm0, %v2059_v14, %v2132_v20  ;;  %v2342_v47 = vrot.slane %v8090_v43, 1 }
 0x303   : > { %10366 = vst [vmem:[#allocation20_spill] sm:$0xff] %v8093_v56  ;;  %v2340_v6 = vrot.slane %v8093_v56, 1  ;;  %v2339_v11 = vrot.slane %v8096_v7, 1 }
 0x305   : > { %v8102_v24 = vsel %vm477_vm1, %v2340_v6, %v2342_v47  ;;  %v8105_v29 = vsel %vm477_vm1, %v2339_v11, %v2340_v6 }
 0x306   : > { %10367 = vst [vmem:[#allocation23_spill] sm:$0xff] %v8102_v24  ;;  %10368 = vst [vmem:[#allocation22_spill] sm:$0xff] %v8105_v29  ;;  %2407 = vrot.lane.b32.xlu1 %v8102_v24, %s6111_s25  ;;  %2405 = vrot.lane.b32.xlu0 %v8105_v29, %s6111_s25  ;;  %v2462_v29 = vrot.slane %v7874_v54, 2 }
 0x309   : > { %v5963_v40 = vpop.f32.mrb[20].mxu0 }
 0x30a   : > { %v1924_v15 = vadd.f32 %v5963_v40, %v7869_v2  ;;  %v1918_v19 = vpop.f32.mrb[21].mxu0 }
 0x30b   : > { %v1919_v17 = vadd.f32 %v7869_v2, %v1918_v19 }
 0x30c   : > { %vm1998_vm15 = vcmp.ge.f32.partialorder %v1924_v15, 0.0  ;;  %v2030_v60 = vmul.f32 0.01, %v1924_v15 }
 0x30d   : > { %vm1997_vm3 = vcmp.ge.f32.partialorder %v1919_v17, 0.0  ;;  %v2029_v18 = vmul.f32 0.01, %v1919_v17 }
 0x30e   : > { %v2062_v27 = vsel %vm1998_vm15, %v1924_v15, %v2030_v60 }
 0x30f   : > { %v2136_v36 = vrot.slane %v2062_v27, 7  ;;  %v2210_v14 = vrot.slane %v2062_v27, 6  ;;  %v2061_v20 = vsel %vm1997_vm3, %v1919_v17, %v2029_v18 }
 0x310   : > { %v2135_v47 = vrot.slane %v2061_v20, 7 }
 0x311   : > { %v8114_v6 = vsel %vm287_vm0, %v2136_v36, %v2210_v14 }
 0x312   : > { %10369 = vst [vmem:[#allocation53_spill] sm:$0xff] %v8114_v6  ;;  %v8117_v11 = vsel %vm287_vm0, %v2135_v47, %v2136_v36  ;;  %v8120_v40 = vsel %vm287_vm0, %v2061_v20, %v2135_v47  ;;  %v2347_v19 = vrot.slane %v8114_v6, 1 }
 0x313   : > { %10370 = vst [vmem:[#allocation24_spill] sm:$0xff] %v8117_v11  ;;  %10371 = vst [vmem:[#allocation25_spill] sm:$0xff] %v8120_v40  ;;  %v2345_v45 = vrot.slane %v8117_v11, 1  ;;  %v2344_v3 = vrot.slane %v8120_v40, 1 }
 0x315   : > { %v8126_v15 = vsel %vm477_vm1, %v2345_v45, %v2347_v19  ;;  %v8129_v17 = vsel %vm477_vm1, %v2344_v3, %v2345_v45 }
 0x316   : > { %10372 = vst [vmem:[#allocation55_spill] sm:$0xff] %v8126_v15  ;;  %10373 = vst [vmem:[#allocation54_spill] sm:$0xff] %v8129_v17  ;;  %2411 = vrot.lane.b32.xlu1 %v8126_v15, %s6111_s25  ;;  %2409 = vrot.lane.b32.xlu0 %v8129_v17, %s6111_s25 }
 0x319   : > { %v5966_v60 = vpop.f32.mrb[22].mxu0 }
 0x31a   : > { %v1934_v18 = vadd.f32 %v5966_v60, %v7869_v2  ;;  %v1928_v27 = vpop.f32.mrb[23].mxu0 }
 0x31b   : > { %v1929_v36 = vadd.f32 %v7869_v2, %v1928_v27 }
 0x31c   : > { %vm2000_vm5 = vcmp.ge.f32.partialorder %v1934_v18, 0.0  ;;  %v2032_v14 = vmul.f32 0.01, %v1934_v18 }
 0x31d   : > { %vm1999_vm6 = vcmp.ge.f32.partialorder %v1929_v36, 0.0  ;;  %v2031_v20 = vmul.f32 0.01, %v1929_v36 }
 0x31e   : > { %v2064_v47 = vsel %vm2000_vm5, %v1934_v18, %v2032_v14 }
 0x31f   : > { %v2139_v19 = vrot.slane %v2064_v47, 7  ;;  %v2211_v45 = vrot.slane %v2064_v47, 6  ;;  %v2063_v3 = vsel %vm1999_vm6, %v1929_v36, %v2031_v20  ;;  %vm3384_vm6 = vcmask 457728  }
 0x320   : > { %v2138_v6 = vrot.slane %v2063_v3, 7 }
 0x321   : > { %v8138_v15 = vsel %vm287_vm0, %v2139_v19, %v2211_v45 }
 0x322   : > { %10374 = vst [vmem:[#allocation26_spill] sm:$0xff] %v8138_v15  ;;  %v8141_v11 = vsel %vm287_vm0, %v2138_v6, %v2139_v19  ;;  %v8144_v60 = vsel %vm287_vm0, %v2063_v3, %v2138_v6  ;;  %v2352_v27 = vrot.slane %v8138_v15, 1 }
 0x323   : > { %10375 = vst [vmem:[#allocation29_spill] sm:$0xff] %v8141_v11  ;;  %10376 = vst [vmem:[#allocation57_spill] sm:$0xff] %v8144_v60  ;;  %v2350_v17 = vrot.slane %v8141_v11, 1  ;;  %v2349_v40 = vrot.slane %v8144_v60, 1 }
 0x325   : > { %v8150_v18 = vsel %vm477_vm1, %v2350_v17, %v2352_v27  ;;  %v8153_v36 = vsel %vm477_vm1, %v2349_v40, %v2350_v17 }
 0x326   : > { %10377 = vst [vmem:[#allocation69_spill] sm:$0xff] %v8150_v18  ;;  %10378 = vst [vmem:[#allocation3_spill] sm:$0xff] %v8153_v36  ;;  %2415 = vrot.lane.b32.xlu1 %v8150_v18, %s6111_s25  ;;  %2413 = vrot.lane.b32.xlu0 %v8153_v36, %s6111_s25 }
 0x329   : > { %v5969_v6 = vpop.f32.mrb[24].mxu0 }
 0x32a   : > { %v1944_v14 = vadd.f32 %v5969_v6, %v7869_v2  ;;  %v1938_v20 = vpop.f32.mrb[25].mxu0 }
 0x32b   : > { %v1939_v47 = vadd.f32 %v7869_v2, %v1938_v20 }
 0x32c   : > { %vm2002_vm8 = vcmp.ge.f32.partialorder %v1944_v14, 0.0  ;;  %v2034_v19 = vmul.f32 0.01, %v1944_v14 }
 0x32d   : > { %vm2001_vm10 = vcmp.ge.f32.partialorder %v1939_v47, 0.0  ;;  %v2033_v45 = vmul.f32 0.01, %v1939_v47 }
 0x32e   : > { %v2066_v3 = vsel %vm2002_vm8, %v1944_v14, %v2034_v19  ;;  %vm3417_vm8 = vcmask 523264  }
 0x32f   : > { %v2142_v27 = vrot.slane %v2066_v3, 7  ;;  %v2212_v40 = vrot.slane %v2066_v3, 6  ;;  %v2065_v17 = vsel %vm2001_vm10, %v1939_v47, %v2033_v45  ;;  %vm3466_vm10 = vcmask 588800  }
 0x330   : > { %v2141_v15 = vrot.slane %v2065_v17, 7 }
 0x331   : > { %v8162_v18 = vsel %vm287_vm0, %v2142_v27, %v2212_v40 }
 0x332   : > { %10379 = vst [vmem:[#allocation56_spill] sm:$0xff] %v8162_v18  ;;  %v8165_v11 = vsel %vm287_vm0, %v2141_v15, %v2142_v27  ;;  %v8168_v6 = vsel %vm287_vm0, %v2065_v17, %v2141_v15  ;;  %v2357_v20 = vrot.slane %v8162_v18, 1 }
 0x333   : > { %10380 = vst [vmem:[#allocation86_spill] sm:$0xff] %v8165_v11  ;;  %10381 = vst [vmem:[#allocation71_spill] sm:$0xff] %v8168_v6  ;;  %v2355_v36 = vrot.slane %v8165_v11, 1  ;;  %v2354_v60 = vrot.slane %v8168_v6, 1 }
 0x335   : > { %v8174_v14 = vsel %vm477_vm1, %v2355_v36, %v2357_v20  ;;  %v8177_v47 = vsel %vm477_vm1, %v2354_v60, %v2355_v36 }
 0x336   : > { %10382 = vst [vmem:[#allocation4_spill] sm:$0xff] %v8174_v14  ;;  %10383 = vst [vmem:[#allocation85_spill] sm:$0xff] %v8177_v47  ;;  %2419 = vrot.lane.b32.xlu1 %v8174_v14, %s6111_s25  ;;  %2417 = vrot.lane.b32.xlu0 %v8177_v47, %s6111_s25 }
 0x339   : > { %v5972_v15 = vpop.f32.mrb[26].mxu0 }
 0x33a   : > { %v1954_v19 = vadd.f32 %v5972_v15, %v7869_v2  ;;  %v1948_v45 = vpop.f32.mrb[27].mxu0 }
 0x33b   : > { %v1949_v3 = vadd.f32 %v7869_v2, %v1948_v45 }
 0x33c   : > { %vm2004_vm12 = vcmp.ge.f32.partialorder %v1954_v19, 0.0  ;;  %v2036_v27 = vmul.f32 0.01, %v1954_v19 }
 0x33d   : > { %vm2003_vm13 = vcmp.ge.f32.partialorder %v1949_v3, 0.0  ;;  %v2035_v40 = vmul.f32 0.01, %v1949_v3 }
 0x33e   : > { %v2068_v17 = vsel %vm2004_vm12, %v1954_v19, %v2036_v27 }
 0x33f   : > { %v2145_v20 = vrot.slane %v2068_v17, 7  ;;  %v2213_v60 = vrot.slane %v2068_v17, 6  ;;  %v2067_v36 = vsel %vm2003_vm13, %v1949_v3, %v2035_v40 }
 0x340   : > { %v2144_v18 = vrot.slane %v2067_v36, 7 }
 0x341   : > { %v8186_v14 = vsel %vm287_vm0, %v2145_v20, %v2213_v60 }
 0x342   : > { %10384 = vst [vmem:[#allocation102_spill] sm:$0xff] %v8186_v14  ;;  %v8189_v11 = vsel %vm287_vm0, %v2144_v18, %v2145_v20  ;;  %v8192_v15 = vsel %vm287_vm0, %v2067_v36, %v2144_v18  ;;  %v2362_v45 = vrot.slane %v8186_v14, 1 }
 0x343   : > { %10385 = vst [vmem:[#allocation30_spill] sm:$0xff] %v8189_v11  ;;  %10386 = vst [vmem:[#allocation31_spill] sm:$0xff] %v8192_v15  ;;  %v2360_v47 = vrot.slane %v8189_v11, 1  ;;  %v2359_v6 = vrot.slane %v8192_v15, 1 }
 0x345   : > { %v8198_v19 = vsel %vm477_vm1, %v2360_v47, %v2362_v45  ;;  %v8201_v3 = vsel %vm477_vm1, %v2359_v6, %v2360_v47 }
 0x346   : > { %10387 = vst [vmem:[#allocation59_spill] sm:$0xff] %v8198_v19  ;;  %10388 = vst [vmem:[#allocation58_spill] sm:$0xff] %v8201_v3  ;;  %2423 = vrot.lane.b32.xlu1 %v8198_v19, %s6111_s25  ;;  %2421 = vrot.lane.b32.xlu0 %v8201_v3, %s6111_s25 }
 0x349   : > { %v5975_v18 = vpop.f32.mrb[28].mxu0 }
 0x34a   : > { %v1964_v27 = vadd.f32 %v5975_v18, %v7869_v2  ;;  %v1958_v40 = vpop.f32.mrb[29].mxu0 }
 0x34b   : > { %v1959_v17 = vadd.f32 %v7869_v2, %v1958_v40 }
 0x34c   : > { %vm2006_vm14 = vcmp.ge.f32.partialorder %v1964_v27, 0.0  ;;  %v2038_v20 = vmul.f32 0.01, %v1964_v27 }
 0x34d   : > { %vm2005_vm15 = vcmp.ge.f32.partialorder %v1959_v17, 0.0  ;;  %v2037_v60 = vmul.f32 0.01, %v1959_v17  ;;  %v5978_v36 = vpop.f32.mrb[30].mxu0 }
 0x34e   : > { %v2070_v45 = vsel %vm2006_vm14, %v1964_v27, %v2038_v20  ;;  %v1974_v6 = vadd.f32 %v5978_v36, %v7869_v2  ;;  %v1968_v47 = vpop.f32.mrb[31].mxu0 }
 0x34f   : > { %v2148_v14 = vrot.slane %v2070_v45, 7  ;;  %v2214_v19 = vrot.slane %v2070_v45, 6  ;;  %v2069_v11 = vsel %vm2005_vm15, %v1959_v17, %v2037_v60  ;;  %v1969_v3 = vadd.f32 %v7869_v2, %v1968_v47 }
 0x350   : > { %v2147_v15 = vrot.slane %v2069_v11, 7  ;;  %vm2008_vm3 = vcmp.ge.f32.partialorder %v1974_v6, 0.0  ;;  %v2040_v18 = vmul.f32 0.01, %v1974_v6  ;;  %vm5041_vm15 = vcmask 1041409  }
 0x351   : > { %vm2007_vm5 = vcmp.ge.f32.partialorder %v1969_v3, 0.0  ;;  %v2039_v43 = vmul.f32 0.01, %v1969_v3  ;;  %v8212_v40 = vsel %vm287_vm0, %v2148_v14, %v2214_v19  ;;  %v2460_v19 = vrot.slane %v7877_v46, 2 }
 0x352   : > { %10389 = vst [vmem:[#allocation67_spill] sm:$0xff] %v8212_v40  ;;  %v8215_v24 = vsel %vm287_vm0, %v2147_v15, %v2148_v14  ;;  %v8218_v27 = vsel %vm287_vm0, %v2069_v11, %v2147_v15  ;;  %v2072_v20 = vsel %vm2008_vm3, %v1974_v6, %v2040_v18  ;;  %v2367_v36 = vrot.slane %v8212_v40, 1 }
 0x353   : > { %10390 = vst [vmem:[#allocation35_spill] sm:$0xff] %v8215_v24  ;;  %10391 = vst [vmem:[#allocation90_spill] sm:$0xff] %v8218_v27  ;;  %v2151_v17 = vrot.slane %v2072_v20, 7  ;;  %v2215_v60 = vrot.slane %v2072_v20, 6  ;;  %v2071_v2 = vsel %vm2007_vm5, %v1969_v3, %v2039_v43  ;;  %v2365_v45 = vrot.slane %v8215_v24, 1 }
 0x354   : > { %v2150_v47 = vrot.slane %v2071_v2, 7  ;;  %v2364_v56 = vrot.slane %v8218_v27, 1  ;;  %v2459_v11 = vrot.slane %v7880_v61, 2  ;;  %vm5043_vm3 = vcmask 1043459  }
 0x355   : > { %v8226_v14 = vsel %vm477_vm1, %v2365_v45, %v2367_v36  ;;  %v2263_v15 = vsel %vm287_vm0, %v2151_v17, %v2215_v60  ;;  %v8247_v36 = vsel %vm643_vm2, %v2460_v19, %v2462_v29  ;;  %v2464_v29 = vrot.slane %v7904_v39, 2 }
 0x356   : > { %10392 = vst [vmem:[#allocation34_spill] sm:$0xff] %v8226_v14  ;;  %2427 = vrot.lane.b32.xlu1 %v8226_v14, %s6111_s25  ;;  %v8233_v43 = vsel %vm477_vm1, %v2364_v56, %v2365_v45  ;;  %v8236_v3 = vsel %vm287_vm0, %v2071_v2, %v2150_v47  ;;  %v8239_v6 = vsel %vm287_vm0, %v2150_v47, %v2151_v17  ;;  %10396 = vst [vmem:[#allocation60_spill] sm:$0xff] %v8247_v36  ;;  %vm3318_vm0 = vcmask 326656  }
 0x357   : > { %10393 = vst [vmem:[#allocation61_spill] sm:$0xff] %v8233_v43  ;;  %10394 = vst [vmem:[#allocation70_spill] sm:$0xff] %v8236_v3  ;;  %2425 = vrot.lane.b32.xlu0 %v8233_v43, %s6111_s25  ;;  %v2722_v54 = vrot.slane %v8236_v3, 1  ;;  %v2823_v18 = vrot.slane %v8236_v3, 2  ;;  %v2723_v20 = vrot.slane %v8239_v6, 1  ;;  %v2824_v56 = vrot.slane %v8239_v6, 2 }
 0x358   : > { %10395 = vst [vmem:[#allocation88_spill] sm:$0xff] %v8239_v6  ;;  %v2725_v60 = vrot.slane %v2263_v15, 1  ;;  %v2826_v2 = vrot.slane %v2263_v15, 2  ;;  %v8251_v45 = vsel %vm643_vm2, %v2459_v11, %v2460_v19  ;;  %v2465_v17 = vrot.slane %v7901_v10, 2 }
 0x359   : > { %10397 = vst [vmem:[#allocation73_spill] sm:$0xff] %v8251_v45  ;;  %v2467_v47 = vrot.slane %v7898_v32, 2  ;;  %v8256_v40 = vsel %vm477_vm1, %v2722_v54, %v2723_v20  ;;  %v8265_v15 = vsel %vm643_vm2, %v2823_v18, %v2824_v56  ;;  %v2470_v11 = vrot.slane %v7925_v34, 2 }
 0x35a   : > { %10398 = vst [vmem:[#allocation92_spill] sm:$0xff] %v8256_v40  ;;  %2536 = vrot.lane.b32.xlu1 %v8247_v36, %s6113_s27  ;;  %v8262_v3 = vsel %vm477_vm1, %v2723_v20, %v2725_v60  ;;  %10400 = vst [vmem:[#allocation72_spill] sm:$0xff] %v8265_v15  ;;  %v8268_v19 = vsel %vm643_vm2, %v2824_v56, %v2826_v2  ;;  %v2472_v54 = vrot.slane %v7922_v62, 2  ;;  %v2469_v18 = vrot.slane %v7928_v63, 2 }
 0x35b   : > { %10399 = vst [vmem:[#allocation38_spill] sm:$0xff] %v8262_v3  ;;  %10401 = vst [vmem:[#allocation39_spill] sm:$0xff] %v8268_v19  ;;  %2534 = vrot.lane.b32.xlu0 %v8251_v45, %s6113_s27  ;;  %v8273_v32 = vsel %vm643_vm2, %v2465_v17, %v2467_v47  ;;  %v8280_v20 = vsel %vm643_vm2, %v2464_v29, %v2465_v17  ;;  %v2475_v60 = vrot.slane %v7949_v41, 2  ;;  %v2477_v2 = vrot.slane %v7946_v28, 2  ;;  %v3450_v28 = vld [vmem:[%s9838_s3] sm:$0xff] }
 0x35c   : > { %10402 = vst [vmem:[#allocation91_spill] sm:$0xff] %v8273_v32  ;;  %10403 = vst [vmem:[#allocation63_spill] sm:$0xff] %v8280_v20  ;;  %v8286_v56 = vsel %vm643_vm2, %v2470_v11, %v2472_v54  ;;  %v2471_v62 = vsel %vm643_vm2, %v2469_v18, %v2470_v11  ;;  %v2474_v17 = vrot.slane %v7952_v35, 2  ;;  %v3451_v11 = vld [vmem:[%s9838_s3 + $0x8] sm:$0xff]  ;;  %v3452_v18 = vld [vmem:[%s9838_s3 + $0x10] sm:$0xff]  ;;  %v2489_v14 = vrot.slane %v8024_v49, 2 }
 0x35d   : > { %v8296_v47 = vsel %vm643_vm2, %v2475_v60, %v2477_v2  ;;  %v6053_v54 = vpack.c.bf16 %v3451_v11, %v3450_v28  ;;  %v3455_v28 = vld [vmem:[%s9838_s3 + $0x28] sm:$0xff]  ;;  %vm3351_vm1 = vcmask 392192   ;;  %vm5045_vm5 = vcmask 1045509  }
 0x35e   : > { %2540 = vrot.lane.b32.xlu1 %v8273_v32, %s6113_s27  ;;  %v8301_v29 = vsel %vm643_vm2, %v2474_v17, %v2475_v60  ;;  %v3453_v60 = vld [vmem:[%s9838_s3 + $0x18] sm:$0xff]  ;;  %v3454_v17 = vld [vmem:[%s9838_s3 + $0x20] sm:$0xff] }
 0x35f   : > { %2538 = vrot.lane.b32.xlu0 %v8280_v20, %s6113_s27  ;;  %6069 = vmatprep.subr.bf16.mxu1 %v6053_v54  ;;  %v6057_v2 = vpack.c.bf16 %v3453_v60, %v3452_v18  ;;  %v6061_v11 = vpack.c.bf16 %v3455_v28, %v3454_v17  ;;  %v3457_v18 = vld [vmem:[%s9838_s3 + $0x38] sm:$0xff]  ;;  %v8372_v17 = vpop.permute.xlu0 %2369 }
 0x360   : > { %6054 = vmatprep.subr.bf16.mxu0 %v6053_v54  ;;  %6074 = vmatpush3.bf16.msra.mxu1 %v6053_v54 }
 0x361   : > { %6056 = vmatpush3.bf16.msra.mxu0 %v6053_v54  ;;  %6070 = vmatprep.subr.bf16.mxu1 %v6057_v2  ;;  %v3456_v54 = vld [vmem:[%s9838_s3 + $0x30] sm:$0xff] }
 0x362   : > { %2544 = vrot.lane.b32.xlu1 %v8286_v56, %s6113_s27  ;;  %6058 = vmatprep.subr.bf16.mxu0 %v6057_v2  ;;  %v6065_v60 = vpack.c.bf16 %v3457_v18, %v3456_v54 }
 0x363   : > { %2542 = vrot.lane.b32.xlu0 %v2471_v62, %s6113_s27 }
 0x364   : > { %6075 = vmatpush3.bf16.msra.mxu1 %v6057_v2 }
 0x365   : > { %6060 = vmatpush3.bf16.msra.mxu0 %v6057_v2  ;;  %6071 = vmatprep.subr.bf16.mxu1 %v6061_v11  ;;  %v3458_v2 = vld [vmem:[%s9838_s3 + $0x40] sm:$0xff] }
 0x366   : > { %2548 = vrot.lane.b32.xlu1 %v8296_v47, %s6113_s27  ;;  %6062 = vmatprep.subr.bf16.mxu0 %v6061_v11 }
 0x367   : > { %2546 = vrot.lane.b32.xlu0 %v8301_v29, %s6113_s27 }
 0x368   : > { %6076 = vmatpush3.bf16.msra.mxu1 %v6061_v11 }
 0x369   : > { %6064 = vmatpush3.bf16.msra.mxu0 %v6061_v11  ;;  %6072 = vmatprep.subr.bf16.mxu1 %v6065_v60 }
 0x36a   : > { %2631 = vrot.lane.b32.xlu1 %v7901_v10, %s6115_s14  ;;  %6066 = vmatprep.subr.bf16.mxu0 %v6065_v60 }
 0x36b   : > { %2629 = vrot.lane.b32.xlu0 %v7904_v39, %s6115_s14 }
 0x36c   : > { %6077 = vmatpush3.bf16.msra.mxu1 %v6065_v60 }
 0x36d   : > { %6068 = vmatpush3.bf16.msra.mxu0 %v6065_v60  ;;  %6073 = vmatprep.subr.mxu1 %v3458_v2 }
 0x36e   : > { %2733 = vrot.lane.b32.xlu1 %v7910_v8, %s6117_s16  ;;  %5995 = vmatprep.subr.mxu0 %v3458_v2 }
 0x36f   : > { %2731 = vrot.lane.b32.xlu0 %v7913_v42, %s6117_s16  ;;  %v2480_v42 = vrot.slane %v7973_v38, 2 }
 0x370   : > { %6078 = vmatpush3.msra.mxu1 %v3458_v2 }
 0x371   : > { %5996 = vmatpush3.msra.mxu0 %v3458_v2 }
 0x372   : > { %2834 = vrot.lane.b32.xlu1 %v8273_v32, %s6118_s6  ;;  %v2479_v32 = vrot.slane %v7976_v55, 2 }
 0x373   : > { %2832 = vrot.lane.b32.xlu0 %v8280_v20, %s6118_s6 }
 0x374   : > { %v2481_v19 = vsel %vm643_vm2, %v2479_v32, %v2480_v42 }
 0x376   : > { %2633 = vrot.lane.b32.xlu1 %v7928_v63, %s6115_s14 }
 0x377   : > { %2928 = vrot.lane.b32.xlu0 %v7928_v63, %s6119_s17 }
 0x37a   : > { %3018 = vrot.lane.b32.xlu1 %v7937_v58, %s6120_s20 }
 0x37b   : > { %2930 = vrot.lane.b32.xlu0 %v7925_v34, %s6119_s17 }
 0x37e   : > { %2735 = vrot.lane.b32.xlu1 %v7937_v58, %s6117_s16  ;;  %v8370_v58 = vpop.permute.xlu1 %2371 }
 0x37f   : > { %2635 = vrot.lane.b32.xlu0 %v7925_v34, %s6115_s14 }
 0x382   : > { %3108 = vrot.lane.b32.xlu1 %v2471_v62, %s6121_s23 }
 0x383   : > { %3020 = vrot.lane.b32.xlu0 %v7934_v59, %s6120_s20 }
 0x386   : > { %2836 = vrot.lane.b32.xlu1 %v2471_v62, %s6118_s6  ;;  %v8380_v62 = vpop.permute.xlu0 %2373 }
 0x387   : > { %2737 = vrot.lane.b32.xlu0 %v7934_v59, %s6117_s16  ;;  %v8378_v59 = vpop.permute.xlu1 %2375 }
 0x38a   : > { %2838 = vrot.lane.b32.xlu1 %v8286_v56, %s6118_s6  ;;  %v8388_v28 = vpop.permute.xlu0 %2377 }
 0x38b   : > { %3110 = vrot.lane.b32.xlu0 %v8286_v56, %s6121_s23  ;;  %v8386_v56 = vpop.permute.xlu1 %2379 }
 0x38e   : > { %2637 = vrot.lane.b32.xlu1 %v7952_v35, %s6115_s14  ;;  %v8396_v54 = vpop.permute.xlu0 %2381 }
 0x38f   : > { %2932 = vrot.lane.b32.xlu0 %v7952_v35, %s6119_s17  ;;  %v8394_v11 = vpop.permute.xlu1 %2383 }
 0x392   : > { %3022 = vrot.lane.b32.xlu1 %v7961_v9, %s6120_s20  ;;  %v8404_v18 = vpop.permute.xlu0 %2385 }
 0x393   : > { %2934 = vrot.lane.b32.xlu0 %v7949_v41, %s6119_s17 }
 0x396   : > { %2739 = vrot.lane.b32.xlu1 %v7961_v9, %s6117_s16  ;;  %v8402_v9 = vpop.permute.xlu1 %2387  ;;  %v8412_v2 = vpop.permute.xlu0 %2389 }
 0x397   : > { %2639 = vrot.lane.b32.xlu0 %v7949_v41, %s6115_s14 }
 0x39a   : > { %3112 = vrot.lane.b32.xlu1 %v8301_v29, %s6121_s23  ;;  %v8410_v60 = vpop.permute.xlu1 %2391 }
 0x39b   : > { %3024 = vrot.lane.b32.xlu0 %v7958_v44, %s6120_s20 }
 0x39e   : > { %2840 = vrot.lane.b32.xlu1 %v8301_v29, %s6118_s6  ;;  %v8420_v29 = vpop.permute.xlu0 %2393 }
 0x39f   : > { %2741 = vrot.lane.b32.xlu0 %v7958_v44, %s6117_s16  ;;  %v8418_v44 = vpop.permute.xlu1 %2395 }
 0x3a0   : > { %10404 = vst [vmem:[#allocation75_spill] sm:$0xff] %v8418_v44 }
 0x3a2   : > { %2842 = vrot.lane.b32.xlu1 %v8296_v47, %s6118_s6  ;;  %v8428_v20 = vpop.permute.xlu0 %2397 }
 0x3a3   : > { %3114 = vrot.lane.b32.xlu0 %v8296_v47, %s6121_s23  ;;  %v8426_v47 = vpop.permute.xlu1 %2399  ;;  %10406 = vst [vmem:[#allocation94_spill] sm:$0xff] %v8428_v20  ;;  %v3194_v20 = vsel %vm1410_vm4, %v7880_v61, %v8372_v17 }
 0x3a4   : > { %10405 = vst [vmem:[#allocation62_spill] sm:$0xff] %v8426_v47 }
 0x3a6   : > { %2641 = vrot.lane.b32.xlu1 %v7976_v55, %s6115_s14  ;;  %v8438_v36 = vpop.permute.xlu0 %2401 }
 0x3a7   : > { %2936 = vrot.lane.b32.xlu0 %v7976_v55, %s6119_s17  ;;  %v8436_v8 = vpop.permute.xlu1 %2403  ;;  %10408 = vst [vmem:[#allocation93_spill] sm:$0xff] %v8438_v36  ;;  %v2490_v36 = vrot.slane %v8021_v33, 2 }
 0x3a8   : > { %10407 = vst [vmem:[#allocation74_spill] sm:$0xff] %v8436_v8 }
 0x3a9   : > { %v2491_v43 = vsel %vm643_vm2, %v2489_v14, %v2490_v36 }
 0x3aa   : > { %3026 = vrot.lane.b32.xlu1 %v7985_v30, %s6120_s20  ;;  %v8446_v15 = vpop.permute.xlu0 %2405 }
 0x3ab   : > { %2938 = vrot.lane.b32.xlu0 %v7973_v38, %s6119_s17  ;;  %v8444_v45 = vpop.permute.xlu1 %2407  ;;  %10410 = vst [vmem:[#allocation42_spill] sm:$0xff] %v8446_v15 }
 0x3ac   : > { %10409 = vst [vmem:[#allocation46_spill] sm:$0xff] %v8444_v45 }
 0x3ae   : > { %2743 = vrot.lane.b32.xlu1 %v7985_v30, %s6117_s16  ;;  %v2482_v30 = vrot.slane %v7970_v57, 2  ;;  %v8454_v40 = vpop.permute.xlu0 %2409 }
 0x3af   : > { %2643 = vrot.lane.b32.xlu0 %v7973_v38, %s6115_s14  ;;  %v8452_v3 = vpop.permute.xlu1 %2411  ;;  %10412 = vst [vmem:[#allocation76_spill] sm:$0xff] %v8454_v40 }
 0x3b0   : > { %10411 = vst [vmem:[#allocation43_spill] sm:$0xff] %v8452_v3  ;;  %v2483_v32 = vsel %vm643_vm2, %v2480_v42, %v2482_v30 }
 0x3b2   : > { %3116 = vrot.lane.b32.xlu1 %v2481_v19, %s6121_s23  ;;  %v8461_v15 = vpop.permute.xlu0 %2413 }
 0x3b3   : > { %3028 = vrot.lane.b32.xlu0 %v7982_v1, %s6120_s20  ;;  %v8459_v45 = vpop.permute.xlu1 %2415  ;;  %10414 = vst [vmem:[#allocation95_spill] sm:$0xff] %v8461_v15 }
 0x3b4   : > { %10413 = vst [vmem:[#allocation65_spill] sm:$0xff] %v8459_v45  ;;  %v2485_v45 = vrot.slane %v7997_v31, 2 }
 0x3b6   : > { %2844 = vrot.lane.b32.xlu1 %v2481_v19, %s6118_s6 }
 0x3b7   : > { %2745 = vrot.lane.b32.xlu0 %v7982_v1, %s6117_s16  ;;  %v8466_v57 = vpop.permute.xlu1 %2419  ;;  %v8468_v1 = vpop.permute.xlu0 %2417 }
 0x3b8   : > { %10415 = vst [vmem:[#allocation106_spill] sm:$0xff] %v8466_v57  ;;  %10416 = vst [vmem:[#allocation64_spill] sm:$0xff] %v8468_v1  ;;  %v2484_v1 = vrot.slane %v8000_v26, 2 }
 0x3ba   : > { %2550 = vrot.lane.b32.xlu1 %v2481_v19, %s6113_s27 }
 0x3bb   : > { %3118 = vrot.lane.b32.xlu0 %v2483_v32, %s6121_s23  ;;  %v8473_v42 = vpop.permute.xlu1 %2423  ;;  %v8475_v19 = vpop.permute.xlu0 %2421 }
 0x3bc   : > { %10417 = vst [vmem:[#allocation47_spill] sm:$0xff] %v8473_v42  ;;  %10418 = vst [vmem:[#allocation44_spill] sm:$0xff] %v8475_v19  ;;  %v2486_v19 = vsel %vm643_vm2, %v2484_v1, %v2485_v45 }
 0x3be   : > { %2940 = vrot.lane.b32.xlu1 %v8000_v26, %s6119_s17 }
 0x3bf   : > { %2846 = vrot.lane.b32.xlu0 %v2483_v32, %s6118_s6 }
 0x3c2   : > { %2645 = vrot.lane.b32.xlu1 %v8000_v26, %s6115_s14 }
 0x3c3   : > { %2552 = vrot.lane.b32.xlu0 %v2483_v32, %s6113_s27 }
 0x3c6   : > { %3030 = vrot.lane.b32.xlu1 %v8009_v51, %s6120_s20 }
 0x3c7   : > { %2942 = vrot.lane.b32.xlu0 %v7997_v31, %s6119_s17 }
 0x3c8   : > { %v8481_v30 = vpop.permute.xlu1 %2427 }
 0x3c9   : > { %10419 = vst [vmem:[#allocation45_spill] sm:$0xff] %v8481_v30  ;;  %v8483_v57 = vpop.permute.xlu0 %2425 }
 0x3ca   : > { %10420 = vst [vmem:[#allocation9_spill] sm:$0xff] %v8483_v57  ;;  %2747 = vrot.lane.b32.xlu1 %v8009_v51, %s6117_s16  ;;  %v2487_v51 = vrot.slane %v7994_v52, 2 }
 0x3cb   : > { %2647 = vrot.lane.b32.xlu0 %v7997_v31, %s6115_s14 }
 0x3cc   : > { %v8491_v32 = vpop.permute.xlu1 %2536  ;;  %v2488_v1 = vsel %vm643_vm2, %v2485_v45, %v2487_v51 }
 0x3cd   : > { %v2535_v42 = vpop.permute.xlu0 %2534 }
 0x3ce   : > { %3120 = vrot.lane.b32.xlu1 %v2486_v19, %s6121_s23 }
 0x3cf   : > { %3032 = vrot.lane.b32.xlu0 %v8006_v25, %s6120_s20 }
 0x3d0   : > { %v8497_v30 = vpop.permute.xlu1 %2540 }
 0x3d1   : > { %v8499_v57 = vpop.permute.xlu0 %2538 }
 0x3d2   : > { %2848 = vrot.lane.b32.xlu1 %v2486_v19, %s6118_s6 }
 0x3d3   : > { %2749 = vrot.lane.b32.xlu0 %v8006_v25, %s6117_s16 }
 0x3d4   : > { %v8505_v15 = vpop.permute.xlu1 %2544 }
 0x3d5   : > { %v8507_v3 = vpop.permute.xlu0 %2542 }
 0x3d6   : > { %2554 = vrot.lane.b32.xlu1 %v2486_v19, %s6113_s27 }
 0x3d7   : > { %3122 = vrot.lane.b32.xlu0 %v2488_v1, %s6121_s23 }
 0x3d8   : > { %v8512_v40 = vpop.permute.xlu1 %2548 }
 0x3d9   : > { %v8514_v6 = vpop.permute.xlu0 %2546 }
 0x3da   : > { %2944 = vrot.lane.b32.xlu1 %v8024_v49, %s6119_s17 }
 0x3db   : > { %2850 = vrot.lane.b32.xlu0 %v2488_v1, %s6118_s6 }
 0x3dc   : > { %v2632_v52 = vpop.permute.xlu1 %2631 }
 0x3dd   : > { %v2630_v25 = vpop.permute.xlu0 %2629 }
 0x3de   : > { %2649 = vrot.lane.b32.xlu1 %v8024_v49, %s6115_s14 }
 0x3df   : > { %2556 = vrot.lane.b32.xlu0 %v2488_v1, %s6113_s27 }
 0x3e0   : > { %v2734_v19 = vpop.permute.xlu1 %2733 }
 0x3e1   : > { %v2732_v45 = vpop.permute.xlu0 %2731 }
 0x3e2   : > { %3034 = vrot.lane.b32.xlu1 %v8033_v22, %s6120_s20 }
 0x3e3   : > { %2946 = vrot.lane.b32.xlu0 %v8021_v33, %s6119_s17 }
 0x3e4   : > { %v2835_v51 = vpop.permute.xlu1 %2834 }
 0x3e5   : > { %v2833_v8 = vpop.permute.xlu0 %2832 }
 0x3e6   : > { %2751 = vrot.lane.b32.xlu1 %v8033_v22, %s6117_s16  ;;  %v2492_v22 = vrot.slane %v8018_v4, 2 }
 0x3e7   : > { %2651 = vrot.lane.b32.xlu0 %v8021_v33, %s6115_s14  ;;  %v8544_v33 = vsel %vm1474_vm7, %v3194_v20, %v2535_v42 }
 0x3e8   : > { %v8532_v1 = vpop.permute.xlu1 %2633  ;;  %v3256_v14 = vsel %vm1540_vm9, %v8544_v33, %v2630_v25  ;;  %v2493_v4 = vsel %vm643_vm2, %v2490_v36, %v2492_v22 }
 0x3e9   : > { %v2929_v24 = vpop.permute.xlu0 %2928  ;;  %v3288_v49 = vsel %vm1606_vm11, %v3256_v14, %v2732_v45 }
 0x3ea   : > { %3124 = vrot.lane.b32.xlu1 %v2491_v43, %s6121_s23  ;;  %v3321_v61 = vsel %vm3318_vm0, %v3288_v49, %v2833_v8  ;;  %v3195_v8 = vsel %vm1410_vm4, %v7877_v46, %v8370_v58 }
 0x3eb   : > { %3036 = vrot.lane.b32.xlu0 %v8030_v53, %s6120_s20  ;;  %v3354_v20 = vsel %vm3351_vm1, %v3321_v61, %v2929_v24  ;;  %v8569_v61 = vsel %vm1474_vm7, %v3195_v8, %v8491_v32 }
 0x3ec   : > { %v3019_v27 = vpop.permute.xlu1 %3018  ;;  %v3257_v24 = vsel %vm1540_vm9, %v8569_v61, %v2632_v52 }
 0x3ed   : > { %v2931_v47 = vpop.permute.xlu0 %2930 }
 0x3ee   : > { %2852 = vrot.lane.b32.xlu1 %v2491_v43, %s6118_s6 }
 0x3ef   : > { %2753 = vrot.lane.b32.xlu0 %v8030_v53, %s6117_s16  ;;  %v3387_v53 = vsel %vm3384_vm6, %v3354_v20, %v3019_v27 }
 0x3f0   : > { %v2736_v44 = vpop.permute.xlu1 %2735 }
 0x3f1   : > { %v8551_v17 = vpop.permute.xlu0 %2635 }
 0x3f2   : > { %2558 = vrot.lane.b32.xlu1 %v2491_v43, %s6113_s27  ;;  %v3289_v43 = vsel %vm1606_vm11, %v3257_v24, %v2734_v19 }
 0x3f3   : > { %3126 = vrot.lane.b32.xlu0 %v2493_v4, %s6121_s23  ;;  %v3322_v36 = vsel %vm3318_vm0, %v3289_v43, %v2835_v51  ;;  %v2494_v51 = vrot.slane %v8048_v13, 2 }
 0x3f4   : > { %v3109_v42 = vpop.permute.xlu1 %3108  ;;  %v3355_v58 = vsel %vm3351_vm1, %v3322_v36, %v2931_v47  ;;  %v2495_v47 = vrot.slane %v8045_v16, 2 }
 0x3f5   : > { %v3021_v25 = vpop.permute.xlu0 %3020  ;;  %v3420_v45 = vsel %vm3417_vm8, %v3387_v53, %v3109_v42 }
 0x3f6   : > { %2948 = vrot.lane.b32.xlu1 %v8048_v13, %s6119_s17  ;;  %6000 = vmatprep.mubr.msk.f32.mxu1 %vm3466_vm10, %v3420_v45  ;;  %v3388_v32 = vsel %vm3384_vm6, %v3355_v58, %v3021_v25  ;;  %v2496_v42 = vsel %vm643_vm2, %v2494_v51, %v2495_v47  ;;  %v3196_v25 = vsel %vm1410_vm4, %v7904_v39, %v8380_v62  ;;  %v2497_v62 = vrot.slane %v8042_v5, 2 }
 0x3f7   : > { %2854 = vrot.lane.b32.xlu0 %v2493_v4, %s6118_s6  ;;  %v3226_v45 = vsel %vm1474_vm7, %v3196_v25, %v8499_v57  ;;  %v3197_v5 = vsel %vm1410_vm4, %v7901_v10, %v8378_v59 }
 0x3f8   : > { %v2837_v49 = vpop.permute.xlu1 %2836 }
 0x3f9   : > { %v2738_v27 = vpop.permute.xlu0 %2737 }
 0x3fa   : > { %2653 = vrot.lane.b32.xlu1 %v8048_v13, %s6115_s14 }
 0x3fb   : > { %2560 = vrot.lane.b32.xlu0 %v2493_v4, %s6113_s27 }
 0x3fc   : > { %v2839_v22 = vpop.permute.xlu1 %2838 }
 0x3fd   : > { %v3111_v14 = vpop.permute.xlu0 %3110 }
 0x3fe   : > { %v3421_v20 = vsel %vm3417_vm8, %v3388_v32, %v3111_v14  ;;  %3038 = vrot.lane.b32.xlu1 %v8057_v21, %s6120_s20 }
 0x3ff   : > { %2950 = vrot.lane.b32.xlu0 %v8045_v16, %s6119_s17  ;;  %6001 = vmatmul.mubr.msk.f32.vlgmr.msra.gmra.mrb[0].mxu1 %vm3466_vm10, %v3421_v20 }
 0x400   : > { %v2638_v52 = vpop.permute.xlu1 %2637 }
 0x401   : > { %v2933_v19 = vpop.permute.xlu0 %2932 }
 0x402   : > { %2755 = vrot.lane.b32.xlu1 %v8057_v21, %s6117_s16  ;;  %v3258_v21 = vsel %vm1540_vm9, %v3226_v45, %v8532_v1  ;;  %v2499_v45 = vrot.slane %v8072_v37, 2 }
 0x403   : > { %2655 = vrot.lane.b32.xlu0 %v8045_v16, %s6115_s14  ;;  %v3290_v24 = vsel %vm1606_vm11, %v3258_v21, %v2736_v44  ;;  %v2498_v44 = vsel %vm643_vm2, %v2495_v47, %v2497_v62  ;;  %v2500_v21 = vrot.slane %v8069_v23, 2 }
 0x404   : > { %v3023_v4 = vpop.permute.xlu1 %3022  ;;  %v3323_v36 = vsel %vm3318_vm0, %v3290_v24, %v2837_v49  ;;  %v3198_v24 = vsel %vm1410_vm4, %v7928_v63, %v8388_v28 }
 0x405   : > { %v2935_v53 = vpop.permute.xlu0 %2934  ;;  %v3356_v58 = vsel %vm3351_vm1, %v3323_v36, %v2933_v19  ;;  %v3228_v36 = vsel %vm1474_vm7, %v3198_v24, %v8507_v3 }
 0x406   : > { %3128 = vrot.lane.b32.xlu1 %v2496_v42, %s6121_s23  ;;  %v3389_v57 = vsel %vm3384_vm6, %v3356_v58, %v3023_v4  ;;  %v3260_v62 = vsel %vm1540_vm9, %v3228_v36, %v2638_v52 }
 0x407   : > { %3040 = vrot.lane.b32.xlu0 %v8054_v0, %s6120_s20 }
 0x408   : > { %v2740_v8 = vpop.permute.xlu1 %2739 }
 0x409   : > { %v8604_v43 = vpop.permute.xlu0 %2639 }
 0x40a   : > { %2856 = vrot.lane.b32.xlu1 %v2496_v42, %s6118_s6 }
 0x40b   : > { %2757 = vrot.lane.b32.xlu0 %v8054_v0, %s6117_s16  ;;  %v3227_v0 = vsel %vm1474_vm7, %v3197_v5, %v8497_v30 }
 0x40c   : > { %v3113_v32 = vpop.permute.xlu1 %3112  ;;  %v3259_v20 = vsel %vm1540_vm9, %v3227_v0, %v8551_v17 }
 0x40d   : > { %v3422_v1 = vsel %vm3417_vm8, %v3389_v57, %v3113_v32  ;;  %v3025_v14 = vpop.permute.xlu0 %3024  ;;  %v3291_v51 = vsel %vm1606_vm11, %v3259_v20, %v2738_v27  ;;  %v3292_v57 = vsel %vm1606_vm11, %v3260_v62, %v2740_v8  ;;  %v2502_v8 = vrot.slane %v8066_v12, 2 }
 0x40e   : > { %2562 = vrot.lane.b32.xlu1 %v2496_v42, %s6113_s27  ;;  %6003 = vmatprep.mubr.msk.f32.mxu1 %vm3466_vm10, %v3422_v1  ;;  %v3324_v47 = vsel %vm3318_vm0, %v3291_v51, %v2839_v22  ;;  %v2501_v1 = vsel %vm643_vm2, %v2499_v45, %v2500_v21 }
 0x40f   : > { %3130 = vrot.lane.b32.xlu0 %v2498_v44, %s6121_s23  ;;  %v3357_v59 = vsel %vm3351_vm1, %v3324_v47, %v2935_v53  ;;  %v2503_v12 = vsel %vm643_vm2, %v2500_v21, %v2502_v8  ;;  %v3200_v21 = vsel %vm1410_vm4, %v7952_v35, %v8396_v54 }
 0x410   : > { %v2841_v49 = vpop.permute.xlu1 %2840  ;;  %v3390_v42 = vsel %vm3384_vm6, %v3357_v59, %v3025_v14  ;;  %v3230_v24 = vsel %vm1474_vm7, %v3200_v21, %v8514_v6  ;;  %v10423_v6 = vld [vmem:[#allocation23_spill] sm:$0xff] }
 0x411   : > { %v2742_v19 = vpop.permute.xlu0 %2741  ;;  %v3325_v63 = vsel %vm3318_vm0, %v3292_v57, %v2841_v49 }
 0x412   : > { %2952 = vrot.lane.b32.xlu1 %v8072_v37, %s6119_s17 }
 0x413   : > { %2858 = vrot.lane.b32.xlu0 %v2498_v44, %s6118_s6 }
 0x414   : > { %v2843_v4 = vpop.permute.xlu1 %2842 }
 0x415   : > { %v3115_v30 = vpop.permute.xlu0 %3114 }
 0x416   : > { %v3423_v25 = vsel %vm3417_vm8, %v3390_v42, %v3115_v30  ;;  %2657 = vrot.lane.b32.xlu1 %v8072_v37, %s6115_s14  ;;  %v10421_v30 = vld [vmem:[#allocation22_spill] sm:$0xff] }
 0x417   : > { %2564 = vrot.lane.b32.xlu0 %v2498_v44, %s6113_s27  ;;  %6004 = vmatmul.mubr.msk.f32.gmra.mrb[2].mxu1 %vm3466_vm10, %v3423_v25  ;;  %v3199_v44 = vsel %vm1410_vm4, %v7925_v34, %v8386_v56  ;;  %v10422_v25 = vld [vmem:[#allocation20_spill] sm:$0xff] }
 0x418   : > { %v8637_v17 = vpop.permute.xlu1 %2641  ;;  %v3229_v5 = vsel %vm1474_vm7, %v3199_v44, %v8505_v15  ;;  %v2505_v45 = vrot.slane %v10422_v25, 2 }
 0x419   : > { %v2937_v27 = vpop.permute.xlu0 %2936  ;;  %v3261_v49 = vsel %vm1540_vm9, %v3229_v5, %v8604_v43  ;;  %v3262_v36 = vsel %vm1540_vm9, %v3230_v24, %v8637_v17 }
 0x41a   : > { %3042 = vrot.lane.b32.xlu1 %v8081_v48, %s6120_s20  ;;  %v3293_v51 = vsel %vm1606_vm11, %v3261_v49, %v2742_v19 }
 0x41b   : > { %2954 = vrot.lane.b32.xlu0 %v8069_v23, %s6119_s17  ;;  %v3326_v47 = vsel %vm3318_vm0, %v3293_v51, %v2843_v4 }
 0x41c   : > { %v3027_v22 = vpop.permute.xlu1 %3026 }
 0x41d   : > { %v2939_v53 = vpop.permute.xlu0 %2938 }
 0x41e   : > { %2759 = vrot.lane.b32.xlu1 %v8081_v48, %s6117_s16  ;;  %v3358_v48 = vsel %vm3351_vm1, %v3325_v63, %v2937_v27  ;;  %v3359_v34 = vsel %vm3351_vm1, %v3326_v47, %v2939_v53  ;;  %v2504_v53 = vrot.slane %v8096_v7, 2 }
 0x41f   : > { %2659 = vrot.lane.b32.xlu0 %v8069_v23, %s6115_s14  ;;  %v3391_v3 = vsel %vm3384_vm6, %v3358_v48, %v3027_v22 }
 0x420   : > { %v2744_v58 = vpop.permute.xlu1 %2743  ;;  %v2506_v63 = vsel %vm643_vm2, %v2504_v53, %v2505_v45 }
 0x421   : > { %v8656_v32 = vpop.permute.xlu0 %2643  ;;  %v3294_v57 = vsel %vm1606_vm11, %v3262_v36, %v2744_v58  ;;  %v10424_v58 = vld [vmem:[#allocation21_spill] sm:$0xff] }
 0x422   : > { %3132 = vrot.lane.b32.xlu1 %v2501_v1, %s6121_s23 }
 0x423   : > { %3044 = vrot.lane.b32.xlu0 %v8078_v50, %s6120_s20 }
 0x424   : > { %v3117_v28 = vpop.permute.xlu1 %3116 }
 0x425   : > { %v3424_v52 = vsel %vm3417_vm8, %v3391_v3, %v3117_v28  ;;  %v3029_v14 = vpop.permute.xlu0 %3028 }
 0x426   : > { %2860 = vrot.lane.b32.xlu1 %v2501_v1, %s6118_s6  ;;  %6006 = vmatprep.mubr.msk.f32.mxu1 %vm3466_vm10, %v3424_v52  ;;  %v3392_v15 = vsel %vm3384_vm6, %v3359_v34, %v3029_v14  ;;  %v2507_v52 = vrot.slane %v10424_v58, 2  ;;  %v3201_v14 = vsel %vm1410_vm4, %v7949_v41, %v8394_v11  ;;  %v10425_v34 = vld [vmem:[#allocation25_spill] sm:$0xff] }
 0x427   : > { %2761 = vrot.lane.b32.xlu0 %v8078_v50, %s6117_s16  ;;  %v3231_v8 = vsel %vm1474_vm7, %v3201_v14, %v8512_v40 }
 0x428   : > { %v2845_v0 = vpop.permute.xlu1 %2844  ;;  %v3263_v5 = vsel %vm1540_vm9, %v3231_v8, %v8656_v32  ;;  %v2508_v51 = vsel %vm643_vm2, %v2505_v45, %v2507_v52  ;;  %v3202_v45 = vsel %vm1410_vm4, %v7976_v55, %v8404_v18 }
 0x429   : > { %v2746_v20 = vpop.permute.xlu0 %2745  ;;  %v3327_v35 = vsel %vm3318_vm0, %v3294_v57, %v2845_v0 }
 0x42a   : > { %2566 = vrot.lane.b32.xlu1 %v2501_v1, %s6113_s27  ;;  %v3295_v49 = vsel %vm1606_vm11, %v3263_v5, %v2746_v20 }
 0x42b   : > { %3134 = vrot.lane.b32.xlu0 %v2503_v12, %s6121_s23 }
 0x42c   : > { %v8684_v50 = vpop.permute.xlu1 %2550 }
 0x42d   : > { %v3119_v56 = vpop.permute.xlu0 %3118  ;;  %v3232_v21 = vsel %vm1474_vm7, %v3202_v45, %v8684_v50  ;;  %v10428_v50 = vld [vmem:[#allocation55_spill] sm:$0xff] }
 0x42e   : > { %v3425_v43 = vsel %vm3417_vm8, %v3392_v15, %v3119_v56  ;;  %2956 = vrot.lane.b32.xlu1 %v8096_v7, %s6119_s17 }
 0x42f   : > { %2862 = vrot.lane.b32.xlu0 %v2503_v12, %s6118_s6  ;;  %6007 = vmatmul.mubr.msk.f32.gmra.mrb[4].mxu1 %vm3466_vm10, %v3425_v43 }
 0x430   : > { %v2941_v19 = vpop.permute.xlu1 %2940 }
 0x431   : > { %v2847_v59 = vpop.permute.xlu0 %2846  ;;  %v3360_v54 = vsel %vm3351_vm1, %v3327_v35, %v2941_v19  ;;  %v10426_v19 = vld [vmem:[#allocation54_spill] sm:$0xff] }
 0x432   : > { %2661 = vrot.lane.b32.xlu1 %v8096_v7, %s6115_s14 }
 0x433   : > { %2568 = vrot.lane.b32.xlu0 %v2503_v12, %s6113_s27  ;;  %v3328_v12 = vsel %vm3318_vm0, %v3295_v49, %v2847_v59  ;;  %v10427_v59 = vld [vmem:[#allocation24_spill] sm:$0xff] }
 0x434   : > { %v8695_v4 = vpop.permute.xlu1 %2645  ;;  %v2510_v53 = vrot.slane %v10427_v59, 2 }
 0x435   : > { %v8697_v42 = vpop.permute.xlu0 %2552  ;;  %v3264_v24 = vsel %vm1540_vm9, %v3232_v21, %v8695_v4 }
 0x436   : > { %3046 = vrot.lane.b32.xlu1 %v10421_v30, %s6120_s20 }
 0x437   : > { %2958 = vrot.lane.b32.xlu0 %v10422_v25, %s6119_s17 }
 0x438   : > { %v3031_v27 = vpop.permute.xlu1 %3030 }
 0x439   : > { %v2943_v22 = vpop.permute.xlu0 %2942  ;;  %v3393_v48 = vsel %vm3384_vm6, %v3360_v54, %v3031_v27 }
 0x43a   : > { %2763 = vrot.lane.b32.xlu1 %v10421_v30, %s6117_s16  ;;  %v3361_v41 = vsel %vm3351_vm1, %v3328_v12, %v2943_v22  ;;  %v2509_v22 = vrot.slane %v10425_v34, 2 }
 0x43b   : > { %2663 = vrot.lane.b32.xlu0 %v10422_v25, %s6115_s14 }
 0x43c   : > { %v2748_v62 = vpop.permute.xlu1 %2747  ;;  %v2511_v35 = vsel %vm643_vm2, %v2509_v22, %v2510_v53 }
 0x43d   : > { %v8717_v1 = vpop.permute.xlu0 %2647  ;;  %v3296_v57 = vsel %vm1606_vm11, %v3264_v24, %v2748_v62  ;;  %v10429_v62 = vld [vmem:[#allocation53_spill] sm:$0xff] }
 0x43e   : > { %3136 = vrot.lane.b32.xlu1 %v2506_v63, %s6121_s23 }
 0x43f   : > { %3048 = vrot.lane.b32.xlu0 %v10423_v6, %s6120_s20 }
 0x440   : > { %v3121_v3 = vpop.permute.xlu1 %3120 }
 0x441   : > { %v3426_v17 = vsel %vm3417_vm8, %v3393_v48, %v3121_v3  ;;  %v3033_v28 = vpop.permute.xlu0 %3032  ;;  %v2512_v3 = vrot.slane %v10429_v62, 2 }
 0x442   : > { %2864 = vrot.lane.b32.xlu1 %v2506_v63, %s6118_s6  ;;  %6009 = vmatprep.mubr.msk.f32.mxu1 %vm3466_vm10, %v3426_v17  ;;  %v3394_v40 = vsel %vm3384_vm6, %v3361_v41, %v3033_v28  ;;  %v3203_v17 = vsel %vm1410_vm4, %v7973_v38, %v8402_v9 }
 0x443   : > { %2765 = vrot.lane.b32.xlu0 %v10423_v6, %s6117_s16  ;;  %v3233_v28 = vsel %vm1474_vm7, %v3203_v17, %v8697_v42 }
 0x444   : > { %v2849_v44 = vpop.permute.xlu1 %2848  ;;  %v3265_v52 = vsel %vm1540_vm9, %v3233_v28, %v8717_v1 }
 0x445   : > { %v2750_v0 = vpop.permute.xlu0 %2749  ;;  %v3329_v55 = vsel %vm3318_vm0, %v3296_v57, %v2849_v44  ;;  %v2513_v44 = vsel %vm643_vm2, %v2510_v53, %v2512_v3 }
 0x446   : > { %2570 = vrot.lane.b32.xlu1 %v2506_v63, %s6113_s27  ;;  %v3297_v8 = vsel %vm1606_vm11, %v3265_v52, %v2750_v0  ;;  %v10435_v52 = vld [vmem:[#allocation71_spill] sm:$0xff] }
 0x447   : > { %3138 = vrot.lane.b32.xlu0 %v2508_v51, %s6121_s23 }
 0x448   : > { %v8745_v11 = vpop.permute.xlu1 %2554 }
 0x449   : > { %v3123_v47 = vpop.permute.xlu0 %3122 }
 0x44a   : > { %v3427_v32 = vsel %vm3417_vm8, %v3394_v40, %v3123_v47  ;;  %2960 = vrot.lane.b32.xlu1 %v10425_v34, %s6119_s17  ;;  %v10431_v47 = vld [vmem:[#allocation3_spill] sm:$0xff] }
 0x44b   : > { %2866 = vrot.lane.b32.xlu0 %v2508_v51, %s6118_s6  ;;  %6010 = vmatmul.mubr.msk.f32.gmra.mrb[6].mxu1 %vm3466_vm10, %v3427_v32  ;;  %v10432_v32 = vld [vmem:[#allocation29_spill] sm:$0xff] }
 0x44c   : > { %v2945_v20 = vpop.permute.xlu1 %2944 }
 0x44d   : > { %v2851_v15 = vpop.permute.xlu0 %2850  ;;  %v3362_v18 = vsel %vm3351_vm1, %v3329_v55, %v2945_v20 }
 0x44e   : > { %2665 = vrot.lane.b32.xlu1 %v10425_v34, %s6115_s14  ;;  %v3330_v5 = vsel %vm3318_vm0, %v3297_v8, %v2851_v15 }
 0x44f   : > { %2572 = vrot.lane.b32.xlu0 %v2508_v51, %s6113_s27  ;;  %v10430_v51 = vld [vmem:[#allocation57_spill] sm:$0xff] }
 0x450   : > { %v8756_v56 = vpop.permute.xlu1 %2649 }
 0x451   : > { %v8758_v43 = vpop.permute.xlu0 %2556 }
 0x452   : > { %3050 = vrot.lane.b32.xlu1 %v10426_v19, %s6120_s20 }
 0x453   : > { %2962 = vrot.lane.b32.xlu0 %v10427_v59, %s6119_s17 }
 0x454   : > { %v3035_v30 = vpop.permute.xlu1 %3034 }
 0x455   : > { %v2947_v27 = vpop.permute.xlu0 %2946  ;;  %v3395_v54 = vsel %vm3384_vm6, %v3362_v18, %v3035_v30  ;;  %v2515_v30 = vrot.slane %v10432_v32, 2 }
 0x456   : > { %2767 = vrot.lane.b32.xlu1 %v10426_v19, %s6117_s16  ;;  %v3363_v38 = vsel %vm3351_vm1, %v3330_v5, %v2947_v27  ;;  %v2514_v19 = vrot.slane %v10430_v51, 2  ;;  %v3204_v27 = vsel %vm1410_vm4, %v8000_v26, %v8412_v2 }
 0x457   : > { %2667 = vrot.lane.b32.xlu0 %v10427_v59, %s6115_s14  ;;  %v3234_v22 = vsel %vm1474_vm7, %v3204_v27, %v8745_v11  ;;  %v10433_v11 = vld [vmem:[#allocation69_spill] sm:$0xff] }
 0x458   : > { %v2752_v36 = vpop.permute.xlu1 %2751  ;;  %v3266_v53 = vsel %vm1540_vm9, %v3234_v22, %v8756_v56  ;;  %v2516_v57 = vsel %vm643_vm2, %v2514_v19, %v2515_v30 }
 0x459   : > { %v8778_v63 = vpop.permute.xlu0 %2651  ;;  %v3298_v21 = vsel %vm1606_vm11, %v3266_v53, %v2752_v36  ;;  %v10434_v36 = vld [vmem:[#allocation26_spill] sm:$0xff] }
 0x45a   : > { %3140 = vrot.lane.b32.xlu1 %v2511_v35, %s6121_s23 }
 0x45b   : > { %3052 = vrot.lane.b32.xlu0 %v10428_v50, %s6120_s20 }
 0x45c   : > { %v3125_v6 = vpop.permute.xlu1 %3124 }
 0x45d   : > { %v3428_v4 = vsel %vm3417_vm8, %v3395_v54, %v3125_v6  ;;  %v3037_v48 = vpop.permute.xlu0 %3036  ;;  %v3205_v54 = vsel %vm1410_vm4, %v7997_v31, %v8410_v60 }
 0x45e   : > { %2868 = vrot.lane.b32.xlu1 %v2511_v35, %s6118_s6  ;;  %6012 = vmatprep.mubr.msk.f32.mxu1 %vm3466_vm10, %v3428_v4  ;;  %v3396_v42 = vsel %vm3384_vm6, %v3363_v38, %v3037_v48  ;;  %v3235_v6 = vsel %vm1474_vm7, %v3205_v54, %v8758_v43  ;;  %v10436_v38 = vld [vmem:[#allocation85_spill] sm:$0xff] }
 0x45f   : > { %2769 = vrot.lane.b32.xlu0 %v10428_v50, %s6117_s16  ;;  %v2517_v50 = vrot.slane %v10434_v36, 2  ;;  %v3267_v48 = vsel %vm1540_vm9, %v3235_v6, %v8778_v63 }
 0x460   : > { %v2853_v58 = vpop.permute.xlu1 %2852 }
 0x461   : > { %v2754_v14 = vpop.permute.xlu0 %2753  ;;  %v3331_v26 = vsel %vm3318_vm0, %v3298_v21, %v2853_v58  ;;  %v2518_v17 = vsel %vm643_vm2, %v2515_v30, %v2517_v50 }
 0x462   : > { %2574 = vrot.lane.b32.xlu1 %v2511_v35, %s6113_s27  ;;  %v3299_v3 = vsel %vm1606_vm11, %v3267_v48, %v2754_v14 }
 0x463   : > { %3142 = vrot.lane.b32.xlu0 %v2513_v44, %s6121_s23 }
 0x464   : > { %v8806_v9 = vpop.permute.xlu1 %2558 }
 0x465   : > { %v3127_v49 = vpop.permute.xlu0 %3126 }
 0x466   : > { %v3429_v1 = vsel %vm3417_vm8, %v3396_v42, %v3127_v49  ;;  %2964 = vrot.lane.b32.xlu1 %v10430_v51, %s6119_s17  ;;  %v10437_v42 = vld [vmem:[#allocation86_spill] sm:$0xff] }
 0x467   : > { %2870 = vrot.lane.b32.xlu0 %v2513_v44, %s6118_s6  ;;  %6013 = vmatmul.mubr.msk.f32.gmra.mrb[8].mxu1 %vm3466_vm10, %v3429_v1 }
 0x468   : > { %v2949_v0 = vpop.permute.xlu1 %2948 }
 0x469   : > { %v2855_v12 = vpop.permute.xlu0 %2854  ;;  %v3364_v2 = vsel %vm3351_vm1, %v3331_v26, %v2949_v0  ;;  %v2519_v0 = vrot.slane %v10435_v52, 2 }
 0x46a   : > { %2669 = vrot.lane.b32.xlu1 %v10430_v51, %s6115_s14  ;;  %v3332_v28 = vsel %vm3318_vm0, %v3299_v3, %v2855_v12  ;;  %v2520_v12 = vrot.slane %v10437_v42, 2 }
 0x46b   : > { %2576 = vrot.lane.b32.xlu0 %v2513_v44, %s6113_s27 }
 0x46c   : > { %v8817_v41 = vpop.permute.xlu1 %2653  ;;  %v2521_v53 = vsel %vm643_vm2, %v2519_v0, %v2520_v12 }
 0x46d   : > { %v8819_v40 = vpop.permute.xlu0 %2560 }
 0x46e   : > { %3054 = vrot.lane.b32.xlu1 %v10431_v47, %s6120_s20 }
 0x46f   : > { %2966 = vrot.lane.b32.xlu0 %v10432_v32, %s6119_s17 }
 0x470   : > { %v3039_v20 = vpop.permute.xlu1 %3038 }
 0x471   : > { %v2951_v15 = vpop.permute.xlu0 %2950  ;;  %v3397_v35 = vsel %vm3384_vm6, %v3364_v2, %v3039_v20 }
 0x472   : > { %2771 = vrot.lane.b32.xlu1 %v10431_v47, %s6117_s16  ;;  %v3365_v31 = vsel %vm3351_vm1, %v3332_v28, %v2951_v15  ;;  %v10438_v47 = vld [vmem:[#allocation18_spill] sm:$0xff] }
 0x473   : > { %2671 = vrot.lane.b32.xlu0 %v10432_v32, %s6115_s14  ;;  %v3206_v20 = vsel %vm1410_vm4, %v10438_v47, %v8420_v29 }
 0x474   : > { %v2756_v45 = vpop.permute.xlu1 %2755  ;;  %v3236_v15 = vsel %vm1474_vm7, %v3206_v20, %v8806_v9  ;;  %v10439_v9 = vld [vmem:[#allocation4_spill] sm:$0xff] }
 0x475   : > { %v8839_v24 = vpop.permute.xlu0 %2655  ;;  %v3268_v19 = vsel %vm1540_vm9, %v3236_v15, %v8817_v41 }
 0x476   : > { %3144 = vrot.lane.b32.xlu1 %v2516_v57, %s6121_s23  ;;  %v3300_v27 = vsel %vm1606_vm11, %v3268_v19, %v2756_v45  ;;  %v10440_v45 = vld [vmem:[#allocation56_spill] sm:$0xff] }
 0x477   : > { %3056 = vrot.lane.b32.xlu0 %v10433_v11, %s6120_s20 }
 0x478   : > { %v3129_v55 = vpop.permute.xlu1 %3128 }
 0x479   : > { %v3430_v56 = vsel %vm3417_vm8, %v3397_v35, %v3129_v55  ;;  %v3041_v18 = vpop.permute.xlu0 %3040  ;;  %v10441_v35 = vld [vmem:[#allocation75_spill] sm:$0xff] }
 0x47a   : > { %2872 = vrot.lane.b32.xlu1 %v2516_v57, %s6118_s6  ;;  %6015 = vmatprep.mubr.msk.f32.mxu1 %vm3466_vm10, %v3430_v56  ;;  %v3398_v43 = vsel %vm3384_vm6, %v3365_v31, %v3041_v18  ;;  %v10442_v55 = vld [vmem:[#allocation19_spill] sm:$0xff] }
 0x47b   : > { %2773 = vrot.lane.b32.xlu0 %v10433_v11, %s6117_s16  ;;  %v2522_v11 = vrot.slane %v10440_v45, 2  ;;  %v3207_v56 = vsel %vm1410_vm4, %v10442_v55, %v10441_v35  ;;  %v10443_v31 = vld [vmem:[#allocation31_spill] sm:$0xff] }
 0x47c   : > { %v2857_v4 = vpop.permute.xlu1 %2856  ;;  %v3237_v18 = vsel %vm1474_vm7, %v3207_v56, %v8819_v40 }
 0x47d   : > { %v2758_v62 = vpop.permute.xlu0 %2757  ;;  %v3333_v29 = vsel %vm3318_vm0, %v3300_v27, %v2857_v4  ;;  %v3269_v50 = vsel %vm1540_vm9, %v3237_v18, %v8839_v24  ;;  %v2523_v4 = vsel %vm643_vm2, %v2520_v12, %v2522_v11  ;;  %v10446_v12 = vld [vmem:[#allocation94_spill] sm:$0xff] }
 0x47e   : > { %2578 = vrot.lane.b32.xlu1 %v2516_v57, %s6113_s27  ;;  %v3301_v6 = vsel %vm1606_vm11, %v3269_v50, %v2758_v62  ;;  %v3208_v47 = vsel %vm1410_vm4, %v8048_v13, %v10446_v12 }
 0x47f   : > { %3146 = vrot.lane.b32.xlu0 %v2518_v17, %s6121_s23 }
 0x480   : > { %v8867_v60 = vpop.permute.xlu1 %2562 }
 0x481   : > { %v3131_v58 = vpop.permute.xlu0 %3130  ;;  %v3238_v20 = vsel %vm1474_vm7, %v3208_v47, %v8867_v60  ;;  %v10447_v60 = vld [vmem:[#allocation59_spill] sm:$0xff] }
 0x482   : > { %v3431_v63 = vsel %vm3417_vm8, %v3398_v43, %v3131_v58  ;;  %2968 = vrot.lane.b32.xlu1 %v10435_v52, %s6119_s17 }
 0x483   : > { %2874 = vrot.lane.b32.xlu0 %v2518_v17, %s6118_s6  ;;  %6016 = vmatmul.mubr.msk.f32.gmra.mrb[10].mxu1 %vm3466_vm10, %v3431_v63 }
 0x484   : > { %v2953_v14 = vpop.permute.xlu1 %2952 }
 0x485   : > { %v2859_v8 = vpop.permute.xlu0 %2858  ;;  %v3366_v21 = vsel %vm3351_vm1, %v3333_v29, %v2953_v14  ;;  %v10444_v14 = vld [vmem:[#allocation58_spill] sm:$0xff] }
 0x486   : > { %2673 = vrot.lane.b32.xlu1 %v10435_v52, %s6115_s14  ;;  %v3334_v48 = vsel %vm3318_vm0, %v3301_v6, %v2859_v8  ;;  %v10445_v8 = vld [vmem:[#allocation30_spill] sm:$0xff] }
 0x487   : > { %2580 = vrot.lane.b32.xlu0 %v2518_v17, %s6113_s27  ;;  %v2525_v0 = vrot.slane %v10445_v8, 2 }
 0x488   : > { %v8878_v44 = vpop.permute.xlu1 %2657 }
 0x489   : > { %v8880_v5 = vpop.permute.xlu0 %2564  ;;  %v3270_v15 = vsel %vm1540_vm9, %v3238_v20, %v8878_v44 }
 0x48a   : > { %3058 = vrot.lane.b32.xlu1 %v10436_v38, %s6120_s20 }
 0x48b   : > { %2970 = vrot.lane.b32.xlu0 %v10437_v42, %s6119_s17 }
 0x48c   : > { %v3043_v49 = vpop.permute.xlu1 %3042 }
 0x48d   : > { %v2955_v1 = vpop.permute.xlu0 %2954  ;;  %v3399_v57 = vsel %vm3384_vm6, %v3366_v21, %v3043_v49 }
 0x48e   : > { %2775 = vrot.lane.b32.xlu1 %v10436_v38, %s6117_s16  ;;  %v3367_v3 = vsel %vm3351_vm1, %v3334_v48, %v2955_v1  ;;  %v2524_v1 = vrot.slane %v10443_v31, 2  ;;  %v10450_v48 = vld [vmem:[#allocation90_spill] sm:$0xff] }
 0x48f   : > { %2675 = vrot.lane.b32.xlu0 %v10437_v42, %s6115_s14 }
 0x490   : > { %v2760_v30 = vpop.permute.xlu1 %2759  ;;  %v2526_v29 = vsel %vm643_vm2, %v2524_v1, %v2525_v0  ;;  %v10453_v1 = vld [vmem:[#allocation93_spill] sm:$0xff] }
 0x491   : > { %v8900_v22 = vpop.permute.xlu0 %2659  ;;  %v3302_v27 = vsel %vm1606_vm11, %v3270_v15, %v2760_v30  ;;  %v10448_v30 = vld [vmem:[#allocation102_spill] sm:$0xff] }
 0x492   : > { %3148 = vrot.lane.b32.xlu1 %v2521_v53, %s6121_s23 }
 0x493   : > { %3060 = vrot.lane.b32.xlu0 %v10439_v9, %s6120_s20 }
 0x494   : > { %v3133_v26 = vpop.permute.xlu1 %3132 }
 0x495   : > { %v3432_v41 = vsel %vm3417_vm8, %v3399_v57, %v3133_v26  ;;  %v3045_v2 = vpop.permute.xlu0 %3044 }
 0x496   : > { %2876 = vrot.lane.b32.xlu1 %v2521_v53, %s6118_s6  ;;  %6018 = vmatprep.mubr.msk.f32.mxu1 %vm3466_vm10, %v3432_v41  ;;  %v3400_v40 = vsel %vm3384_vm6, %v3367_v3, %v3045_v2  ;;  %v2527_v41 = vrot.slane %v10448_v30, 2  ;;  %v10449_v2 = vld [vmem:[#allocation62_spill] sm:$0xff] }
 0x497   : > { %2777 = vrot.lane.b32.xlu0 %v10439_v9, %s6117_s16  ;;  %v3209_v45 = vsel %vm1410_vm4, %v8045_v16, %v10449_v2 }
 0x498   : > { %v2861_v36 = vpop.permute.xlu1 %2860  ;;  %v3239_v11 = vsel %vm1474_vm7, %v3209_v45, %v8880_v5 }
 0x499   : > { %v2762_v54 = vpop.permute.xlu0 %2761  ;;  %v3335_v13 = vsel %vm3318_vm0, %v3302_v27, %v2861_v36  ;;  %v3271_v55 = vsel %vm1540_vm9, %v3239_v11, %v8900_v22  ;;  %v2528_v36 = vsel %vm643_vm2, %v2525_v0, %v2527_v41  ;;  %v3210_v0 = vsel %vm1410_vm4, %v8072_v37, %v10453_v1 }
 0x49a   : > { %2582 = vrot.lane.b32.xlu1 %v2521_v53, %s6113_s27  ;;  %v3303_v18 = vsel %vm1606_vm11, %v3271_v55, %v2762_v54 }
 0x49b   : > { %3150 = vrot.lane.b32.xlu0 %v2523_v4, %s6121_s23 }
 0x49c   : > { %v8928_v17 = vpop.permute.xlu1 %2566 }
 0x49d   : > { %v3135_v28 = vpop.permute.xlu0 %3134  ;;  %v3240_v12 = vsel %vm1474_vm7, %v3210_v0, %v8928_v17  ;;  %v10454_v17 = vld [vmem:[#allocation34_spill] sm:$0xff]  ;;  %v10461_v0 = vld [vmem:[#allocation92_spill] sm:$0xff] }
 0x49e   : > { %v3433_v24 = vsel %vm3417_vm8, %v3400_v40, %v3135_v28  ;;  %2972 = vrot.lane.b32.xlu1 %v10443_v31, %s6119_s17 }
 0x49f   : > { %2878 = vrot.lane.b32.xlu0 %v2523_v4, %s6118_s6  ;;  %6019 = vmatmul.mubr.msk.f32.gmra.mrb[12].mxu1 %vm3466_vm10, %v3433_v24  ;;  %v10451_v24 = vld [vmem:[#allocation61_spill] sm:$0xff] }
 0x4a0   : > { %v2957_v62 = vpop.permute.xlu1 %2956 }
 0x4a1   : > { %v2863_v43 = vpop.permute.xlu0 %2862  ;;  %v3368_v21 = vsel %vm3351_vm1, %v3335_v13, %v2957_v62  ;;  %v10452_v62 = vld [vmem:[#allocation35_spill] sm:$0xff] }
 0x4a2   : > { %2677 = vrot.lane.b32.xlu1 %v10443_v31, %s6115_s14  ;;  %v3336_v50 = vsel %vm3318_vm0, %v3303_v18, %v2863_v43 }
 0x4a3   : > { %2584 = vrot.lane.b32.xlu0 %v2523_v4, %s6113_s27 }
 0x4a4   : > { %v8939_v58 = vpop.permute.xlu1 %2661 }
 0x4a5   : > { %v8941_v63 = vpop.permute.xlu0 %2568  ;;  %v3272_v47 = vsel %vm1540_vm9, %v3240_v12, %v8939_v58 }
 0x4a6   : > { %3062 = vrot.lane.b32.xlu1 %v10444_v14, %s6120_s20 }
 0x4a7   : > { %2974 = vrot.lane.b32.xlu0 %v10445_v8, %s6119_s17 }
 0x4a8   : > { %v3047_v38 = vpop.permute.xlu1 %3046 }
 0x4a9   : > { %v2959_v49 = vpop.permute.xlu0 %2958  ;;  %v3401_v9 = vsel %vm3384_vm6, %v3368_v21, %v3047_v38  ;;  %v2529_v38 = vrot.slane %v10450_v48, 2 }
 0x4aa   : > { %2779 = vrot.lane.b32.xlu1 %v10444_v14, %s6117_s16  ;;  %v3369_v16 = vsel %vm3351_vm1, %v3336_v50, %v2959_v49  ;;  %v2530_v49 = vrot.slane %v10452_v62, 2 }
 0x4ab   : > { %2679 = vrot.lane.b32.xlu0 %v10445_v8, %s6115_s14 }
 0x4ac   : > { %v2764_v19 = vpop.permute.xlu1 %2763 }
 0x4ad   : > { %v8961_v53 = vpop.permute.xlu0 %2663  ;;  %v3304_v15 = vsel %vm1606_vm11, %v3272_v47, %v2764_v19  ;;  %v10455_v19 = vld [vmem:[#allocation67_spill] sm:$0xff] }
 0x4ae   : > { %3152 = vrot.lane.b32.xlu1 %v2526_v29, %s6121_s23 }
 0x4af   : > { %3064 = vrot.lane.b32.xlu0 %v10447_v60, %s6120_s20 }
 0x4b0   : > { %v3137_v57 = vpop.permute.xlu1 %3136 }
 0x4b1   : > { %v3434_v44 = vsel %vm3417_vm8, %v3401_v9, %v3137_v57  ;;  %v3049_v26 = vpop.permute.xlu0 %3048  ;;  %v2532_v57 = vrot.slane %v10455_v19, 2 }
 0x4b2   : > { %2880 = vrot.lane.b32.xlu1 %v2526_v29, %s6118_s6  ;;  %6021 = vmatprep.mubr.msk.f32.mxu1 %vm3466_vm10, %v3434_v44  ;;  %v3402_v5 = vsel %vm3384_vm6, %v3369_v16, %v3049_v26  ;;  %v10456_v44 = vld [vmem:[#allocation74_spill] sm:$0xff] }
 0x4b3   : > { %2781 = vrot.lane.b32.xlu0 %v10447_v60, %s6117_s16  ;;  %v3211_v26 = vsel %vm1410_vm4, %v8069_v23, %v10456_v44  ;;  %v2533_v55 = vsel %vm643_vm2, %v2530_v49, %v2532_v57  ;;  %v10457_v16 = vld [vmem:[#allocation70_spill] sm:$0xff] }
 0x4b4   : > { %v2865_v35 = vpop.permute.xlu1 %2864  ;;  %v3241_v30 = vsel %vm1474_vm7, %v3211_v26, %v8941_v63 }
 0x4b5   : > { %v2766_v56 = vpop.permute.xlu0 %2765  ;;  %v3337_v37 = vsel %vm3318_vm0, %v3304_v15, %v2865_v35  ;;  %v3273_v2 = vsel %vm1540_vm9, %v3241_v30, %v8961_v53 }
 0x4b6   : > { %2586 = vrot.lane.b32.xlu1 %v2526_v29, %s6113_s27  ;;  %v2531_v29 = vsel %vm643_vm2, %v2529_v38, %v2530_v49  ;;  %v3305_v11 = vsel %vm1606_vm11, %v3273_v2, %v2766_v56  ;;  %v10460_v38 = vld [vmem:[#allocation42_spill] sm:$0xff]  ;;  %v10466_v2 = vld [vmem:[#allocation72_spill] sm:$0xff] }
 0x4b7   : > { %3154 = vrot.lane.b32.xlu0 %v2528_v36, %s6121_s23  ;;  %v3212_v49 = vsel %vm1410_vm4, %v8096_v7, %v10460_v38  ;;  %v10462_v7 = vld [vmem:[#allocation13_spill] sm:$0xff]  ;;  %v3920_v38 = vlaneseq }
 0x4b8   : > { %v8989_v6 = vpop.permute.xlu1 %2570 }
 0x4b9   : > { %v3139_v4 = vpop.permute.xlu0 %3138  ;;  %v3242_v1 = vsel %vm1474_vm7, %v3212_v49, %v8989_v6 }
 0x4ba   : > { %v3435_v22 = vsel %vm3417_vm8, %v3402_v5, %v3139_v4  ;;  %2976 = vrot.lane.b32.xlu1 %v10450_v48, %s6119_s17 }
 0x4bb   : > { %2882 = vrot.lane.b32.xlu0 %v2528_v36, %s6118_s6  ;;  %6022 = vmatmul.mubr.msk.f32.gmra.mrb[14].mxu1 %vm3466_vm10, %v3435_v22  ;;  %v10458_v22 = vld [vmem:[#allocation11_spill] sm:$0xff] }
 0x4bc   : > { %v2961_v54 = vpop.permute.xlu1 %2960 }
 0x4bd   : > { %v2867_v3 = vpop.permute.xlu0 %2866  ;;  %v3370_v13 = vsel %vm3351_vm1, %v3337_v37, %v2961_v54 }
 0x4be   : > { %2681 = vrot.lane.b32.xlu1 %v10450_v48, %s6115_s14  ;;  %v3338_v23 = vsel %vm3318_vm0, %v3305_v11, %v2867_v3 }
 0x4bf   : > { %2588 = vrot.lane.b32.xlu0 %v2528_v36, %s6113_s27 }
 0x4c0   : > { %v9000_v40 = vpop.permute.xlu1 %2665 }
 0x4c1   : > { %v9002_v28 = vpop.permute.xlu0 %2572  ;;  %v3274_v12 = vsel %vm1540_vm9, %v3242_v1, %v9000_v40 }
 0x4c2   : > { %3066 = vrot.lane.b32.xlu1 %v10451_v24, %s6120_s20 }
 0x4c3   : > { %2978 = vrot.lane.b32.xlu0 %v10452_v62, %s6119_s17 }
 0x4c4   : > { %v3051_v43 = vpop.permute.xlu1 %3050 }
 0x4c5   : > { %v2963_v14 = vpop.permute.xlu0 %2962  ;;  %v3403_v21 = vsel %vm3384_vm6, %v3370_v13, %v3051_v43 }
 0x4c6   : > { %2783 = vrot.lane.b32.xlu1 %v10451_v24, %s6117_s16  ;;  %v3371_v63 = vsel %vm3351_vm1, %v3338_v23, %v2963_v14  ;;  %v10459_v24 = vld [vmem:[#allocation88_spill] sm:$0xff] }
 0x4c7   : > { %2683 = vrot.lane.b32.xlu0 %v10452_v62, %s6115_s14 }
 0x4c8   : > { %v2768_v20 = vpop.permute.xlu1 %2767 }
 0x4c9   : > { %v9022_v27 = vpop.permute.xlu0 %2667  ;;  %v3306_v15 = vsel %vm1606_vm11, %v3274_v12, %v2768_v20  ;;  %v10463_v20 = vld [vmem:[#allocation38_spill] sm:$0xff]  ;;  %v10470_v12 = vld [vmem:[#allocation76_spill] sm:$0xff] }
 0x4ca   : > { %3156 = vrot.lane.b32.xlu1 %v2531_v29, %s6121_s23 }
 0x4cb   : > { %3068 = vrot.lane.b32.xlu0 %v10454_v17, %s6120_s20 }
 0x4cc   : > { %v3141_v60 = vpop.permute.xlu1 %3140 }
 0x4cd   : > { %v3436_v58 = vsel %vm3417_vm8, %v3403_v21, %v3141_v60  ;;  %v3053_v9 = vpop.permute.xlu0 %3052  ;;  %v10464_v60 = vld [vmem:[#allocation46_spill] sm:$0xff] }
 0x4ce   : > { %2884 = vrot.lane.b32.xlu1 %v2531_v29, %s6118_s6  ;;  %6024 = vmatprep.mubr.msk.f32.mxu1 %vm3466_vm10, %v3436_v58  ;;  %v3404_v53 = vsel %vm3384_vm6, %v3371_v63, %v3053_v9  ;;  %v3213_v58 = vsel %vm1410_vm4, %v10422_v25, %v10464_v60  ;;  %v10467_v63 = vld [vmem:[#allocation73_spill] sm:$0xff] }
 0x4cf   : > { %2785 = vrot.lane.b32.xlu0 %v10454_v17, %s6117_s16  ;;  %v3243_v19 = vsel %vm1474_vm7, %v3213_v58, %v9002_v28  ;;  %v10471_v60 = vld [vmem:[#allocation17_spill] sm:$0xff] }
 0x4d0   : > { %v2869_v41 = vpop.permute.xlu1 %2868  ;;  %v3275_v44 = vsel %vm1540_vm9, %v3243_v19, %v9022_v27 }
 0x4d1   : > { %v2770_v45 = vpop.permute.xlu0 %2769  ;;  %v3339_v37 = vsel %vm3318_vm0, %v3306_v15, %v2869_v41  ;;  %v10465_v41 = vld [vmem:[#allocation14_spill] sm:$0xff]  ;;  %v3214_v15 = vsel %vm1410_vm4, %v10425_v34, %v10470_v12 }
 0x4d2   : > { %v9045_v35 = vpop.f32.mrb[0].mxu1  ;;  %2590 = vrot.lane.b32.xlu1 %v2531_v29, %s6113_s27  ;;  %v3307_v30 = vsel %vm1606_vm11, %v3275_v44, %v2770_v45 }
 0x4d3   : > { %v9050_v18 = vpop.f32.mrb[1].mxu1  ;;  %3158 = vrot.lane.b32.xlu0 %v2533_v55, %s6121_s23 }
 0x4d4   : > { %v9054_v36 = vpop.permute.xlu1 %2574 }
 0x4d5   : > { %v3143_v50 = vpop.permute.xlu0 %3142 }
 0x4d6   : > { %v3437_v56 = vsel %vm3417_vm8, %v3404_v53, %v3143_v50  ;;  %2980 = vrot.lane.b32.xlu1 %v10457_v16, %s6119_s17  ;;  %v10468_v50 = vld [vmem:[#allocation39_spill] sm:$0xff] }
 0x4d7   : > { %2886 = vrot.lane.b32.xlu0 %v2533_v55, %s6118_s6  ;;  %6025 = vmatmul.mubr.msk.f32.gmra.mrb[16].mxu1 %vm3466_vm10, %v3437_v56  ;;  %v9134_v56 = vld [vmem:[%s9839_s4] ss:$0 sm:$0xff] }
 0x4d8   : > { %v2965_v5 = vpop.permute.xlu1 %2964 }
 0x4d9   : > { %v2871_v4 = vpop.permute.xlu0 %2870 }
 0x4da   : > { %2625 = vrot.lane.b32.xlu1 %v10458_v22, %s6115_s14  ;;  %v3340_v25 = vsel %vm3318_vm0, %v3307_v30, %v2871_v4 }
 0x4db   : > { %2592 = vrot.lane.b32.xlu0 %v2533_v55, %s6113_s27 }
 0x4dc   : > { %v9065_v54 = vpop.permute.xlu1 %2669 }
 0x4dd   : > { %v9067_v3 = vpop.permute.xlu0 %2576 }
 0x4de   : > { %2982 = vrot.lane.b32.xlu1 %v10459_v24, %s6119_s17 }
 0x4df   : > { %2685 = vrot.lane.b32.xlu0 %v10457_v16, %s6115_s14 }
 0x4e0   : > { %v3055_v43 = vpop.permute.xlu1 %3054 }
 0x4e1   : > { %v2967_v14 = vpop.permute.xlu0 %2966 }
 0x4e2   : > { %2627 = vrot.lane.b32.xlu1 %v7877_v46, %s6115_s14  ;;  %v3372_v46 = vsel %vm3351_vm1, %v3339_v37, %v2965_v5  ;;  %v3373_v11 = vsel %vm3351_vm1, %v3340_v25, %v2967_v14 }
 0x4e3   : > { %3070 = vrot.lane.b32.xlu0 %v10461_v0, %s6120_s20  ;;  %v3405_v6 = vsel %vm3384_vm6, %v3372_v46, %v3055_v43  ;;  %v6122_v43 = vmov 1983009808  }
 0x4e4   : > { %v2772_v47 = vpop.permute.xlu1 %2771  ;;  %v3918_v14 = vunpack.c.l.s4 %v6122_v43 }
 0x4e5   : > { %v9085_v29 = vpop.permute.xlu0 %2671 }
 0x4e6   : > { %2727 = vrot.lane.b32.xlu1 %v10462_v7, %s6117_s16  ;;  %v3244_v7 = vsel %vm1474_vm7, %v3214_v15, %v9054_v36  ;;  %v3919_v46 = vunpack.c.0.s8 %v3918_v14 }
 0x4e7   : > { %2687 = vrot.lane.b32.xlu0 %v10459_v24, %s6115_s14  ;;  %v10469_v24 = vld [vmem:[#allocation60_spill] sm:$0xff] }
 0x4e8   : > { %v3145_v13 = vpop.permute.xlu1 %3144 }
 0x4e9   : > { %v3438_v40 = vsel %vm3417_vm8, %v3405_v6, %v3145_v13  ;;  %v3057_v17 = vpop.permute.xlu0 %3056  ;;  %v9157_v6 = vshrl.u32 %v3920_v38, 7  ;;  %v3276_v13 = vsel %vm1540_vm9, %v3244_v7, %v9065_v54 }
 0x4ea   : > { %v6005_v21 = vpop.f32.mrb[2].mxu1  ;;  %3072 = vrot.lane.b32.xlu1 %v10463_v20, %s6120_s20  ;;  %6027 = vmatprep.mubr.msk.f32.mxu1 %vm3466_vm10, %v3438_v40  ;;  %v3406_v28 = vsel %vm3384_vm6, %v3373_v11, %v3057_v17  ;;  %v3308_v34 = vsel %vm1606_vm11, %v3276_v13, %v2772_v47  ;;  %v10473_v47 = vld [vmem:[#allocation16_spill] sm:$0xff] }
 0x4eb   : > { %v3649_v9 = vpop.f32.mrb[3].mxu1  ;;  %2787 = vrot.lane.b32.xlu0 %v10461_v0, %s6117_s16  ;;  %v3655_v5 = vadd.f32 %v6005_v21, %v9134_v56  ;;  %v9177_v44 = vsub.s32 %v3919_v46, %v9157_v6 }
 0x4ec   : > { %v2873_v57 = vpop.permute.xlu1 %2872  ;;  %v3650_v22 = vadd.f32 %v9134_v56, %v3649_v9 }
 0x4ed   : > { %v9107_v26 = vpop.permute.xlu0 %2773  ;;  %v3825_v1 = vmul.f32 0.01, %v3655_v5  ;;  %vm3793_vm2 = vcmp.ge.f32.partialorder %v3655_v5, 0.0  ;;  %v3341_v36 = vsel %vm3318_vm0, %v3308_v34, %v2873_v57 }
 0x4ee   : > { %2729 = vrot.lane.b32.xlu1 %v10465_v41, %s6117_s16  ;;  %v3824_v37 = vmul.f32 0.01, %v3650_v22  ;;  %vm3792_vm12 = vcmp.ge.f32.partialorder %v3650_v22, 0.0 }
 0x4ef   : > { %3160 = vrot.lane.b32.xlu0 %v10466_v2, %s6121_s23  ;;  %v3857_v17 = vsel %vm3793_vm2, %v3655_v5, %v3825_v1  ;;  %vm5047_vm2 = vcmask 1047559  }
 0x4f0   : > { %v9116_v55 = vpop.permute.xlu1 %2578  ;;  %v4001_v57 = vcombine.high %v3857_v17, %v3857_v17 }
 0x4f1   : > { %v3147_v23 = vpop.permute.xlu0 %3146 }
 0x4f2   : > { %v3439_v27 = vsel %vm3417_vm8, %v3406_v28, %v3147_v23  ;;  %2828 = vrot.lane.b32.xlu1 %v10467_v63, %s6118_s6 }
 0x4f3   : > { %2789 = vrot.lane.b32.xlu0 %v10463_v20, %s6117_s16  ;;  %6028 = vmatmul.mubr.msk.f32.gmra.mrb[18].mxu1 %vm3466_vm10, %v3439_v27  ;;  %v4008_v27 = vrot.slane %v3857_v17, %v9177_v44 }
 0x4f4   : > { %v2969_v45 = vpop.permute.xlu1 %2968 }
 0x4f5   : > { %v9125_v53 = vpop.permute.xlu0 %2874  ;;  %v3374_v54 = vsel %vm3351_vm1, %v3341_v36, %v2969_v45  ;;  %v10474_v45 = vld [vmem:[#allocation91_spill] sm:$0xff]  ;;  %v4016_v7 = vcombine.high %v4008_v27, %v4008_v27 }
 0x4f6   : > { %3162 = vrot.lane.b32.xlu1 %v10468_v50, %s6121_s23 }
 0x4f7   : > { %2888 = vrot.lane.b32.xlu0 %v10466_v2, %s6118_s6 }
 0x4f8   : > { %v9136_v16 = vpop.permute.xlu1 %2673 }
 0x4f9   : > { %v9139_v4 = vpop.permute.xlu0 %2580 }
 0x4fa   : > { %2890 = vrot.lane.b32.xlu1 %v10468_v50, %s6118_s6 }
 0x4fb   : > { %2830 = vrot.lane.b32.xlu0 %v10469_v24, %s6118_s6  ;;  %v10475_v24 = vld [vmem:[#allocation63_spill] sm:$0xff] }
 0x4fc   : > { %v3059_v49 = vpop.permute.xlu1 %3058 }
 0x4fd   : > { %v9146_v0 = vpop.permute.xlu0 %2970  ;;  %v3407_v30 = vsel %vm3384_vm6, %v3374_v54, %v3059_v49 }
 0x4fe   : > { %2926 = vrot.lane.b32.xlu1 %v7901_v10, %s6119_s17  ;;  %v3856_v10 = vsel %vm3792_vm12, %v3650_v22, %v3824_v37 }
 0x4ff   : > { %2924 = vrot.lane.b32.xlu0 %v7904_v39, %s6119_s17  ;;  %v10472_v39 = vld [vmem:[#allocation43_spill] sm:$0xff]  ;;  %v3984_v2 = vcombine.high %v3856_v10, %v3856_v10  ;;  %v3991_v5 = vrot.slane %v3856_v10, %v9177_v44 }
 0x500   : > { %v9161_v40 = vpop.permute.xlu1 %2775  ;;  %v3215_v58 = vsel %vm1410_vm4, %v10427_v59, %v10472_v39 }
 0x501   : > { %v9164_v21 = vpop.permute.xlu0 %2675  ;;  %v3245_v23 = vsel %vm1474_vm7, %v3215_v58, %v9067_v3  ;;  %v4015_v3 = vrot.slane %v4001_v57, %v9177_v44  ;;  %v3998_v1 = vrot.slane %v3984_v2, %v9177_v44  ;;  %v3999_v17 = vcombine.high %v3991_v5, %v3991_v5 }
 0x502   : > { %v6008_v20 = vpop.f32.mrb[4].mxu1  ;;  %3016 = vrot.lane.b32.xlu1 %v10471_v60, %s6120_s20  ;;  %v3277_v50 = vsel %vm1540_vm9, %v3245_v23, %v9085_v29 }
 0x503   : > { %v3665_v9 = vadd.f32 %v6008_v20, %v9134_v56  ;;  %v3659_v19 = vpop.f32.mrb[5].mxu1  ;;  %3014 = vrot.lane.b32.xlu0 %v10473_v47, %s6120_s20  ;;  %v3309_v12 = vsel %vm1606_vm11, %v3277_v50, %v9107_v26  ;;  %v4017_v60 = vcombine.high %v4015_v3, %v4015_v3 }
 0x504   : > { %v3660_v41 = vadd.f32 %v9134_v56, %v3659_v19  ;;  %v3149_v25 = vpop.permute.xlu1 %3148 }
 0x505   : > { %vm3795_vm13 = vcmp.ge.f32.partialorder %v3665_v9, 0.0  ;;  %v3827_v59 = vmul.f32 0.01, %v3665_v9  ;;  %v3440_v11 = vsel %vm3417_vm8, %v3407_v30, %v3149_v25  ;;  %v3061_v28 = vpop.permute.xlu0 %3060 }
 0x506   : > { %vm3794_vm14 = vcmp.ge.f32.partialorder %v3660_v41, 0.0  ;;  %v3826_v63 = vmul.f32 0.01, %v3660_v41  ;;  %3106 = vrot.lane.b32.xlu1 %v10474_v45, %s6121_s23  ;;  %6030 = vmatprep.mubr.msk.f32.mxu1 %vm3466_vm10, %v3440_v11 }
 0x507   : > { %v3859_v22 = vsel %vm3795_vm13, %v3665_v9, %v3827_v59  ;;  %3104 = vrot.lane.b32.xlu0 %v10475_v24, %s6121_s23  ;;  %v4000_v9 = vcombine.high %v3998_v1, %v3998_v1 }
 0x508   : > { %v4035_v43 = vcombine.high %v3859_v22, %v3859_v22  ;;  %v4042_v14 = vrot.slane %v3859_v22, %v9177_v44  ;;  %v3858_v38 = vsel %vm3794_vm14, %v3660_v41, %v3826_v63  ;;  %v9195_v49 = vpop.permute.xlu1 %2876  ;;  %v3342_v41 = vsel %vm3318_vm0, %v3309_v12, %v9125_v53 }
 0x509   : > { %v4018_v29 = vcombine.high %v3858_v38, %v3858_v38  ;;  %v4025_v15 = vrot.slane %v3858_v38, %v9177_v44  ;;  %v9201_v37 = vpop.permute.xlu0 %2777  ;;  %v3375_v11 = vsel %vm3351_vm1, %v3342_v41, %v9146_v0 }
 0x50a   : > { %v4049_v46 = vrot.slane %v4035_v43, %v9177_v44  ;;  %v4050_v13 = vcombine.high %v4042_v14, %v4042_v14  ;;  %v4600_v34 = vmax.f32 %v4008_v27, %v4042_v14  ;;  %v3408_v22 = vsel %vm3384_vm6, %v3375_v11, %v3061_v28 }
 0x50b   : > { %v4032_v10 = vrot.slane %v4018_v29, %v9177_v44  ;;  %v4033_v36 = vcombine.high %v4025_v15, %v4025_v15  ;;  %v4596_v20 = vmax.f32 %v3991_v5, %v4025_v15 }
 0x50c   : > { %v4051_v39 = vcombine.high %v4049_v46, %v4049_v46  ;;  %v4601_v58 = vmax.f32 %v4016_v7, %v4050_v13  ;;  %v4602_v26 = vmax.f32 %v4015_v3, %v4049_v46  ;;  %v9205_v54 = vpop.permute.xlu1 %2582  ;;  %v5780_v2 = vrot.slane %v4600_v34, 9 }
 0x50d   : > { %v4034_v19 = vcombine.high %v4032_v10, %v4032_v10  ;;  %v4597_v47 = vmax.f32 %v3999_v17, %v4033_v36  ;;  %v4598_v57 = vmax.f32 %v3998_v1, %v4032_v10  ;;  %v3151_v30 = vpop.permute.xlu0 %3150  ;;  %v5776_v27 = vrot.slane %v4596_v20, 9 }
 0x50e   : > { %v4603_v25 = vmax.f32 %v4017_v60, %v4051_v39  ;;  %v5781_v59 = vrot.slane %v4601_v58, 9  ;;  %v5782_v45 = vrot.slane %v4602_v26, 9  ;;  %v3441_v53 = vsel %vm3417_vm8, %v3408_v22, %v3151_v30 }
 0x50f   : > { %v4599_v23 = vmax.f32 %v4000_v9, %v4034_v19  ;;  %v5777_v63 = vrot.slane %v4597_v47, 9  ;;  %v5778_v3 = vrot.slane %v4598_v57, 9  ;;  %v4920_v1 = vmax.f32 %v4600_v34, %v5780_v2  ;;  %6031 = vmatmul.mubr.msk.f32.gmra.mrb[20].mxu1 %vm3466_vm10, %v3441_v53 }
 0x510   : > { %v5783_v50 = vrot.slane %v4603_v25, 9  ;;  %v4921_v5 = vmax.f32 %v4601_v58, %v5781_v59  ;;  %v2973_v24 = vpop.permute.xlu1 %2972  ;;  %v4916_v0 = vmax.f32 %v4596_v20, %v5776_v27  ;;  %v4922_v46 = vmax.f32 %v4602_v26, %v5782_v45  ;;  %v10476_v27 = vld [vmem:[#allocation95_spill] sm:$0xff] }
 0x511   : > { %v5779_v43 = vrot.slane %v4599_v23, 9  ;;  %v4917_v14 = vmax.f32 %v4597_v47, %v5777_v63  ;;  %v2879_v38 = vpop.permute.xlu0 %2878  ;;  %v4918_v36 = vmax.f32 %v4598_v57, %v5778_v3  ;;  %v3216_v63 = vsel %vm1410_vm4, %v10430_v51, %v10476_v27 }
 0x512   : > { %v4923_v12 = vmax.f32 %v4603_v25, %v5783_v50  ;;  %v5086_v29 = vrot.slane %v4921_v5, 7  ;;  %v3246_v50 = vsel %vm1474_vm7, %v3216_v63, %v9116_v55 }
 0x513   : > { %v4919_v15 = vmax.f32 %v4599_v23, %v5779_v43  ;;  %v5072_v7 = vrot.slane %v4917_v14, 7  ;;  %v3278_v5 = vsel %vm1540_vm9, %v3246_v50, %v9136_v16  ;;  %v10477_v16 = vld [vmem:[#allocation65_spill] sm:$0xff] }
 0x514   : > { %v5087_v28 = vsel %vm5041_vm15, %v5086_v29, %v4920_v1  ;;  %v5093_v13 = vrot.slane %v4923_v12, 7  ;;  %v9215_v17 = vpop.permute.xlu1 %2677  ;;  %v3310_v3 = vsel %vm1606_vm11, %v3278_v5, %v9161_v40  ;;  %v3217_v40 = vsel %vm1410_vm4, %v10432_v32, %v10477_v16 }
 0x515   : > { %v5088_v10 = vsel %vm5043_vm3, %v5086_v29, %v5087_v28  ;;  %v5073_v34 = vsel %vm5041_vm15, %v5072_v7, %v4916_v0  ;;  %v5079_v60 = vrot.slane %v4919_v15, 7  ;;  %v9219_v39 = vpop.permute.xlu0 %2584  ;;  %v3343_v14 = vsel %vm3318_vm0, %v3310_v3, %v9195_v49  ;;  %v10479_v3 = vld [vmem:[#allocation106_spill] sm:$0xff] }
 0x516   : > { %v5094_v20 = vsel %vm5041_vm15, %v5093_v13, %v4922_v46  ;;  %v5074_v58 = vsel %vm5043_vm3, %v5072_v7, %v5073_v34  ;;  %v5089_v26 = vsel %vm5045_vm5, %v5086_v29, %v5088_v10  ;;  %v3376_v51 = vsel %vm3351_vm1, %v3343_v14, %v2973_v24 }
 0x517   : > { %v5095_v9 = vsel %vm5043_vm3, %v5093_v13, %v5094_v20  ;;  %v5080_v19 = vsel %vm5041_vm15, %v5079_v60, %v4918_v36  ;;  %v5075_v47 = vsel %vm5045_vm5, %v5072_v7, %v5074_v58  ;;  %v9228_v30 = vsel %vm5047_vm2, %v5086_v29, %v5089_v26 }
 0x518   : > { %v5081_v57 = vsel %vm5043_vm3, %v5079_v60, %v5080_v19  ;;  %v3063_v41 = vpop.permute.xlu1 %3062  ;;  %v9232_v25 = vsel %vm5047_vm2, %v5072_v7, %v5075_v47  ;;  %v5096_v2 = vsel %vm5045_vm5, %v5093_v13, %v5095_v9  ;;  %v3247_v15 = vsel %vm1474_vm7, %v3217_v40, %v9139_v4  ;;  %v10478_v19 = vld [vmem:[#allocation64_spill] sm:$0xff] }
 0x519   : > { %v2975_v59 = vpop.permute.xlu0 %2974  ;;  %v5082_v11 = vsel %vm5045_vm5, %v5079_v60, %v5081_v57  ;;  %v9237_v23 = vsel %vm5047_vm2, %v5093_v13, %v5096_v2  ;;  %v3409_v12 = vsel %vm3384_vm6, %v3376_v51, %v3063_v41  ;;  %v3279_v24 = vsel %vm1540_vm9, %v3247_v15, %v9164_v21 }
 0x51a   : > { %v9243_v45 = vsel %vm5047_vm2, %v5079_v60, %v5082_v11  ;;  %v3311_v46 = vsel %vm1606_vm11, %v3279_v24, %v9201_v37  ;;  %v3218_v47 = vsel %vm1410_vm4, %v10435_v52, %v10478_v19  ;;  %v3219_v14 = vsel %vm1410_vm4, %v10437_v42, %v10479_v3 }
 0x51b   : > { %v3344_v28 = vsel %vm3318_vm0, %v3311_v46, %v2879_v38  ;;  %v3248_v41 = vsel %vm1474_vm7, %v3218_v47, %v9205_v54  ;;  %v3249_v42 = vsel %vm1474_vm7, %v3219_v14, %v9219_v39 }
 0x51c   : > { %v2780_v22 = vpop.permute.xlu1 %2779  ;;  %v3377_v13 = vsel %vm3351_vm1, %v3344_v28, %v2975_v59  ;;  %v3280_v2 = vsel %vm1540_vm9, %v3248_v41, %v9215_v17 }
 0x51d   : > { %v9251_v43 = vpop.permute.xlu0 %2679  ;;  %v3312_v11 = vsel %vm1606_vm11, %v3280_v2, %v2780_v22 }
 0x51e   : > { %v6011_v53 = vpop.f32.mrb[6].mxu1 }
 0x51f   : > { %v3669_v1 = vpop.f32.mrb[7].mxu1  ;;  %v3675_v37 = vadd.f32 %v6011_v53, %v9134_v56 }
 0x520   : > { %v3153_v29 = vpop.permute.xlu1 %3152  ;;  %v3670_v38 = vadd.f32 %v9134_v56, %v3669_v1 }
 0x521   : > { %v3442_v55 = vsel %vm3417_vm8, %v3409_v12, %v3153_v29  ;;  %v3065_v0 = vpop.permute.xlu0 %3064  ;;  %v3829_v26 = vmul.f32 0.01, %v3675_v37  ;;  %vm3797_vm12 = vcmp.ge.f32.partialorder %v3675_v37, 0.0 }
 0x522   : > { %6033 = vmatprep.mubr.msk.f32.mxu1 %vm3466_vm10, %v3442_v55  ;;  %v3410_v32 = vsel %vm3384_vm6, %v3377_v13, %v3065_v0  ;;  %v3828_v57 = vmul.f32 0.01, %v3670_v38  ;;  %vm3796_vm13 = vcmp.ge.f32.partialorder %v3670_v38, 0.0 }
 0x523   : > { %v3861_v27 = vsel %vm3797_vm12, %v3675_v37, %v3829_v26 }
 0x524   : > { %v2881_v49 = vpop.permute.xlu1 %2880  ;;  %v3860_v50 = vsel %vm3796_vm13, %v3670_v38, %v3828_v57  ;;  %v4069_v51 = vcombine.high %v3861_v27, %v3861_v27  ;;  %v4076_v1 = vrot.slane %v3861_v27, %v9177_v44 }
 0x525   : > { %v9266_v7 = vpop.permute.xlu0 %2781  ;;  %v3345_v5 = vsel %vm3318_vm0, %v3312_v11, %v2881_v49  ;;  %v4052_v55 = vcombine.high %v3860_v50, %v3860_v50  ;;  %v3281_v49 = vsel %vm1540_vm9, %v3249_v42, %v9251_v43  ;;  %v4059_v24 = vrot.slane %v3860_v50, %v9177_v44 }
 0x526   : > { %v4083_v28 = vrot.slane %v4069_v51, %v9177_v44  ;;  %v3313_v43 = vsel %vm1606_vm11, %v3281_v49, %v9266_v7 }
 0x527   : > { %v4066_v39 = vrot.slane %v4052_v55, %v9177_v44  ;;  %v4067_v57 = vcombine.high %v4059_v24, %v4059_v24 }
 0x528   : > { %v9272_v10 = vpop.permute.xlu1 %2586  ;;  %v4085_v27 = vcombine.high %v4083_v28, %v4083_v28 }
 0x529   : > { %v3155_v36 = vpop.permute.xlu0 %3154  ;;  %v4068_v14 = vcombine.high %v4066_v39, %v4066_v39 }
 0x52a   : > { %v3443_v4 = vsel %vm3417_vm8, %v3410_v32, %v3155_v36 }
 0x52b   : > { %6034 = vmatmul.mubr.msk.f32.gmra.mrb[22].mxu1 %vm3466_vm10, %v3443_v4 }
 0x52c   : > { %v2977_v34 = vpop.permute.xlu1 %2976 }
 0x52d   : > { %v9277_v21 = vpop.permute.xlu0 %2882  ;;  %v3378_v54 = vsel %vm3351_vm1, %v3345_v5, %v2977_v34  ;;  %v4084_v34 = vcombine.high %v4076_v1, %v4076_v1 }
 0x52e   : > { %v3346_v51 = vsel %vm3318_vm0, %v3313_v43, %v9277_v21 }
 0x530   : > { %v9279_v60 = vpop.permute.xlu1 %2681 }
 0x531   : > { %v9282_v20 = vpop.permute.xlu0 %2588 }
 0x534   : > { %v3067_v58 = vpop.permute.xlu1 %3066 }
 0x535   : > { %v9285_v9 = vpop.permute.xlu0 %2978  ;;  %v3411_v22 = vsel %vm3384_vm6, %v3378_v54, %v3067_v58 }
 0x538   : > { %v9294_v59 = vpop.permute.xlu1 %2783 }
 0x539   : > { %v9297_v63 = vpop.permute.xlu0 %2683 }
 0x53a   : > { %v6014_v52 = vpop.f32.mrb[8].mxu1 }
 0x53b   : > { %v3685_v53 = vadd.f32 %v6014_v52, %v9134_v56  ;;  %v3679_v17 = vpop.f32.mrb[9].mxu1 }
 0x53c   : > { %v3680_v12 = vadd.f32 %v9134_v56, %v3679_v17  ;;  %v3157_v29 = vpop.permute.xlu1 %3156 }
 0x53d   : > { %vm3799_vm14 = vcmp.ge.f32.partialorder %v3685_v53, 0.0  ;;  %v3831_v0 = vmul.f32 0.01, %v3685_v53  ;;  %v3444_v16 = vsel %vm3417_vm8, %v3411_v22, %v3157_v29  ;;  %v3069_v40 = vpop.permute.xlu0 %3068  ;;  %v3379_v29 = vsel %vm3351_vm1, %v3346_v51, %v9285_v9 }
 0x53e   : > { %vm3798_vm12 = vcmp.ge.f32.partialorder %v3680_v12, 0.0  ;;  %v3830_v15 = vmul.f32 0.01, %v3680_v12  ;;  %6036 = vmatprep.mubr.msk.f32.mxu1 %vm3466_vm10, %v3444_v16 }
 0x53f   : > { %v3863_v46 = vsel %vm3799_vm14, %v3685_v53, %v3831_v0 }
 0x540   : > { %v4103_v13 = vcombine.high %v3863_v46, %v3863_v46  ;;  %v4110_v32 = vrot.slane %v3863_v46, %v9177_v44  ;;  %v3862_v36 = vsel %vm3798_vm12, %v3680_v12, %v3830_v15  ;;  %v9317_v4 = vpop.permute.xlu1 %2884 }
 0x541   : > { %v4086_v37 = vcombine.high %v3862_v36, %v3862_v36  ;;  %v4093_v38 = vrot.slane %v3862_v36, %v9177_v44  ;;  %v9321_v58 = vpop.permute.xlu0 %2785 }
 0x542   : > { %v4117_v26 = vrot.slane %v4103_v13, %v9177_v44  ;;  %v4118_v19 = vcombine.high %v4110_v32, %v4110_v32  ;;  %v4608_v47 = vmax.f32 %v4076_v1, %v4110_v32 }
 0x543   : > { %v4100_v41 = vrot.slane %v4086_v37, %v9177_v44  ;;  %v4101_v2 = vcombine.high %v4093_v38, %v4093_v38  ;;  %v4604_v11 = vmax.f32 %v4059_v24, %v4093_v38  ;;  %v3412_v24 = vsel %vm3384_vm6, %v3379_v29, %v3069_v40 }
 0x544   : > { %v4119_v50 = vcombine.high %v4117_v26, %v4117_v26  ;;  %v4609_v5 = vmax.f32 %v4084_v34, %v4118_v19  ;;  %v4610_v52 = vmax.f32 %v4083_v28, %v4117_v26  ;;  %v9327_v3 = vpop.permute.xlu1 %2590  ;;  %v5788_v22 = vrot.slane %v4608_v47, 9 }
 0x545   : > { %v4102_v54 = vcombine.high %v4100_v41, %v4100_v41  ;;  %v4605_v53 = vmax.f32 %v4067_v57, %v4101_v2  ;;  %v4606_v17 = vmax.f32 %v4066_v39, %v4100_v41  ;;  %v3159_v7 = vpop.permute.xlu0 %3158  ;;  %v5784_v0 = vrot.slane %v4604_v11, 9 }
 0x546   : > { %v4611_v1 = vmax.f32 %v4085_v27, %v4119_v50  ;;  %v5789_v12 = vrot.slane %v4609_v5, 9  ;;  %v5790_v42 = vrot.slane %v4610_v52, 9  ;;  %v3445_v21 = vsel %vm3417_vm8, %v3412_v24, %v3159_v7 }
 0x547   : > { %v4607_v55 = vmax.f32 %v4068_v14, %v4102_v54  ;;  %v5785_v16 = vrot.slane %v4605_v53, 9  ;;  %v5786_v28 = vrot.slane %v4606_v17, 9  ;;  %v4928_v34 = vmax.f32 %v4608_v47, %v5788_v22  ;;  %6037 = vmatmul.mubr.msk.f32.gmra.mrb[24].mxu1 %vm3466_vm10, %v3445_v21 }
 0x548   : > { %v5791_v15 = vrot.slane %v4611_v1, 9  ;;  %v4929_v49 = vmax.f32 %v4609_v5, %v5789_v12  ;;  %v9334_v46 = vpop.permute.xlu1 %2980  ;;  %v4924_v9 = vmax.f32 %v4604_v11, %v5784_v0  ;;  %v4930_v26 = vmax.f32 %v4610_v52, %v5790_v42 }
 0x549   : > { %v5787_v13 = vrot.slane %v4607_v55, 9  ;;  %v4925_v32 = vmax.f32 %v4605_v53, %v5785_v16  ;;  %v2887_v36 = vpop.permute.xlu0 %2886  ;;  %v4926_v2 = vmax.f32 %v4606_v17, %v5786_v28 }
 0x54a   : > { %v4931_v39 = vmax.f32 %v4611_v1, %v5791_v15  ;;  %v5114_v37 = vrot.slane %v4929_v49, 7 }
 0x54b   : > { %v4927_v38 = vmax.f32 %v4607_v55, %v5787_v13  ;;  %v5100_v43 = vrot.slane %v4925_v32, 7  ;;  %v10480_v13 = vld [vmem:[#allocation44_spill] sm:$0xff] }
 0x54c   : > { %v5115_v19 = vsel %vm5041_vm15, %v5114_v37, %v4928_v34  ;;  %v5121_v40 = vrot.slane %v4931_v39, 7  ;;  %v9339_v57 = vpop.permute.xlu1 %2625  ;;  %v3220_v32 = vsel %vm1410_vm4, %v10443_v31, %v10480_v13 }
 0x54d   : > { %v5116_v41 = vsel %vm5043_vm3, %v5114_v37, %v5115_v19  ;;  %v5101_v27 = vsel %vm5041_vm15, %v5100_v43, %v4924_v9  ;;  %v5107_v50 = vrot.slane %v4927_v38, 7  ;;  %v2593_v47 = vpop.permute.xlu0 %2592  ;;  %v3250_v21 = vsel %vm1474_vm7, %v3220_v32, %v9272_v10  ;;  %v10481_v10 = vld [vmem:[#allocation47_spill] sm:$0xff] }
 0x54e   : > { %v5122_v5 = vsel %vm5041_vm15, %v5121_v40, %v4930_v26  ;;  %v5102_v14 = vsel %vm5043_vm3, %v5100_v43, %v5101_v27  ;;  %v5117_v11 = vsel %vm5045_vm5, %v5114_v37, %v5116_v41  ;;  %v3282_v39 = vsel %vm1540_vm9, %v3250_v21, %v9279_v60 }
 0x54f   : > { %v5123_v52 = vsel %vm5043_vm3, %v5121_v40, %v5122_v5  ;;  %v5108_v54 = vsel %vm5041_vm15, %v5107_v50, %v4926_v2  ;;  %v5103_v53 = vsel %vm5045_vm5, %v5100_v43, %v5102_v14  ;;  %v9350_v7 = vsel %vm5047_vm2, %v5114_v37, %v5117_v11  ;;  %v10482_v5 = vld [vmem:[#allocation9_spill] sm:$0xff] }
 0x550   : > { %v5109_v17 = vsel %vm5043_vm3, %v5107_v50, %v5108_v54  ;;  %v2983_v51 = vpop.permute.xlu1 %2982  ;;  %v9354_v1 = vsel %vm5047_vm2, %v5100_v43, %v5103_v53  ;;  %v5124_v22 = vsel %vm5045_vm5, %v5121_v40, %v5123_v52  ;;  %v3314_v9 = vsel %vm1606_vm11, %v3282_v39, %v9294_v59  ;;  %v10483_v53 = vld [vmem:[#allocation45_spill] sm:$0xff] }
 0x551   : > { %v2686_v12 = vpop.permute.xlu0 %2685  ;;  %v5110_v29 = vsel %vm5045_vm5, %v5107_v50, %v5109_v17  ;;  %v9359_v55 = vsel %vm5047_vm2, %v5121_v40, %v5124_v22  ;;  %v3347_v38 = vsel %vm3318_vm0, %v3314_v9, %v9317_v4  ;;  %v3221_v40 = vsel %vm1410_vm4, %v10445_v8, %v10481_v10 }
 0x552   : > { %v9362_v0 = vsel %vm5047_vm2, %v5107_v50, %v5110_v29  ;;  %v3380_v43 = vsel %vm3351_vm1, %v3347_v38, %v9334_v46  ;;  %v3251_v59 = vsel %vm1474_vm7, %v3221_v40, %v9282_v20  ;;  %v3222_v8 = vsel %vm1410_vm4, %v10450_v48, %v10482_v5 }
 0x553   : > { %v3283_v4 = vsel %vm1540_vm9, %v3251_v59, %v9297_v63  ;;  %v3252_v20 = vsel %vm1474_vm7, %v3222_v8, %v9327_v3  ;;  %v3223_v17 = vsel %vm1410_vm4, %v10452_v62, %v10483_v53 }
 0x554   : > { %v9364_v16 = vpop.permute.xlu1 %2627  ;;  %v3315_v2 = vsel %vm1606_vm11, %v3283_v4, %v9321_v58  ;;  %v3284_v63 = vsel %vm1540_vm9, %v3252_v20, %v2686_v12  ;;  %v3253_v3 = vsel %vm1474_vm7, %v3223_v17, %v2593_v47 }
 0x555   : > { %v3071_v42 = vpop.permute.xlu0 %3070  ;;  %v3348_v14 = vsel %vm3318_vm0, %v3315_v2, %v2887_v36 }
 0x556   : > { %v6017_v15 = vpop.f32.mrb[10].mxu1  ;;  %v3413_v31 = vsel %vm3384_vm6, %v3380_v43, %v3071_v42  ;;  %v3381_v11 = vsel %vm3351_vm1, %v3348_v14, %v2983_v51 }
 0x557   : > { %v3689_v49 = vpop.f32.mrb[11].mxu1  ;;  %v3695_v27 = vadd.f32 %v6017_v15, %v9134_v56 }
 0x558   : > { %v9366_v24 = vpop.permute.xlu1 %2727  ;;  %v3690_v52 = vadd.f32 %v9134_v56, %v3689_v49 }
 0x559   : > { %v2688_v28 = vpop.permute.xlu0 %2687  ;;  %v3833_v22 = vmul.f32 0.01, %v3695_v27  ;;  %vm3801_vm13 = vcmp.ge.f32.partialorder %v3695_v27, 0.0 }
 0x55a   : > { %v3285_v15 = vsel %vm1540_vm9, %v3253_v3, %v2688_v28  ;;  %v3832_v13 = vmul.f32 0.01, %v3690_v52  ;;  %vm3800_vm14 = vcmp.ge.f32.partialorder %v3690_v52, 0.0 }
 0x55b   : > { %v3865_v39 = vsel %vm3801_vm13, %v3695_v27, %v3833_v22 }
 0x55c   : > { %v3073_v34 = vpop.permute.xlu1 %3072  ;;  %v3864_v43 = vsel %vm3800_vm14, %v3690_v52, %v3832_v13 }
 0x55d   : > { %v2788_v37 = vpop.permute.xlu0 %2787  ;;  %v3414_v58 = vsel %vm3384_vm6, %v3381_v11, %v3073_v34  ;;  %v4127_v27 = vrot.slane %v3864_v43, %v9177_v44 }
 0x55e   : > { %v3316_v48 = vsel %vm1606_vm11, %v3284_v63, %v2788_v37 }
 0x560   : > { %v9381_v26 = vpop.permute.xlu1 %2729 }
 0x561   : > { %v3161_v19 = vpop.permute.xlu0 %3160 }
 0x562   : > { %v3446_v60 = vsel %vm3417_vm8, %v3413_v31, %v3161_v19 }
 0x563   : > { %6039 = vmatprep.mubr.msk.f32.mxu1 %vm3466_vm10, %v3446_v60 }
 0x564   : > { %v2829_v41 = vpop.permute.xlu1 %2828 }
 0x565   : > { %v2790_v50 = vpop.permute.xlu0 %2789 }
 0x566   : > { %v3317_v62 = vsel %vm1606_vm11, %v3285_v15, %v2790_v50 }
 0x568   : > { %v3163_v54 = vpop.permute.xlu1 %3162 }
 0x569   : > { %v3447_v36 = vsel %vm3417_vm8, %v3414_v58, %v3163_v54  ;;  %v2889_v29 = vpop.permute.xlu0 %2888 }
 0x56a   : > { %v3349_v12 = vsel %vm3318_vm0, %v3316_v48, %v2889_v29  ;;  %6040 = vmatmul.mubr.msk.f32.gmra.mrb[26].mxu1 %vm3466_vm10, %v3447_v36 }
 0x56b   : > { %v3382_v49 = vsel %vm3351_vm1, %v3349_v12, %v9334_v46  ;;  %v4137_v46 = vcombine.high %v3865_v39, %v3865_v39 }
 0x56c   : > { %v2891_v32 = vpop.permute.xlu1 %2890  ;;  %v3415_v21 = vsel %vm3384_vm6, %v3382_v49, %v3071_v42  ;;  %v4144_v42 = vrot.slane %v3865_v39, %v9177_v44 }
 0x56d   : > { %v3350_v47 = vsel %vm3318_vm0, %v3317_v62, %v2891_v32  ;;  %v2831_v37 = vpop.permute.xlu0 %2830  ;;  %v3448_v9 = vsel %vm3417_vm8, %v3415_v21, %v3161_v19  ;;  %v3254_v19 = vsel %vm1540_vm9, %v8544_v33, %v9339_v57  ;;  %v4151_v2 = vrot.slane %v4137_v46, %v9177_v44 }
 0x56e   : > { %v3383_v38 = vsel %vm3351_vm1, %v3350_v47, %v2983_v51  ;;  %6042 = vmatprep.mubr.msk.f32.mxu1 %vm3466_vm10, %v3448_v9  ;;  %v3255_v51 = vsel %vm1540_vm9, %v8569_v61, %v9364_v16  ;;  %v3286_v50 = vsel %vm1606_vm11, %v3254_v19, %v9366_v24  ;;  %v4152_v14 = vcombine.high %v4144_v42, %v4144_v42 }
 0x56f   : > { %v3416_v28 = vsel %vm3384_vm6, %v3383_v38, %v3073_v34  ;;  %v4120_v34 = vcombine.high %v3864_v43, %v3864_v43  ;;  %v3287_v33 = vsel %vm1606_vm11, %v3255_v51, %v9381_v26  ;;  %v3319_v16 = vsel %vm3318_vm0, %v3286_v50, %v2829_v41 }
 0x570   : > { %v2927_v31 = vpop.permute.xlu1 %2926  ;;  %v3449_v10 = vsel %vm3417_vm8, %v3416_v28, %v3163_v54  ;;  %v3320_v20 = vsel %vm3318_vm0, %v3287_v33, %v2831_v37  ;;  %v4135_v62 = vcombine.high %v4127_v27, %v4127_v27  ;;  %v4153_v47 = vcombine.high %v4151_v2, %v4151_v2 }
 0x571   : > { %v2925_v40 = vpop.permute.xlu0 %2924  ;;  %6043 = vmatmul.mubr.msk.f32.gmra.mrb[28].mxu1 %vm3466_vm10, %v3449_v10  ;;  %v4134_v63 = vrot.slane %v4120_v34, %v9177_v44  ;;  %v3353_v24 = vsel %vm3351_vm1, %v3320_v20, %v2927_v31 }
 0x572   : > { %v6020_v60 = vpop.f32.mrb[12].mxu1  ;;  %v3352_v52 = vsel %vm3351_vm1, %v3319_v16, %v2925_v40 }
 0x573   : > { %v3705_v59 = vadd.f32 %v6020_v60, %v9134_v56  ;;  %v3699_v4 = vpop.f32.mrb[13].mxu1  ;;  %v4136_v28 = vcombine.high %v4134_v63, %v4134_v63 }
 0x574   : > { %v3700_v5 = vadd.f32 %v9134_v56, %v3699_v4  ;;  %v3017_v8 = vpop.permute.xlu1 %3016 }
 0x575   : > { %vm3803_vm12 = vcmp.ge.f32.partialorder %v3705_v59, 0.0  ;;  %v3835_v61 = vmul.f32 0.01, %v3705_v59  ;;  %v3015_v57 = vpop.permute.xlu0 %3014  ;;  %v3386_v17 = vsel %vm3384_vm6, %v3353_v24, %v3017_v8 }
 0x576   : > { %vm3802_vm13 = vcmp.ge.f32.partialorder %v3700_v5, 0.0  ;;  %v3834_v11 = vmul.f32 0.01, %v3700_v5  ;;  %v3385_v36 = vsel %vm3384_vm6, %v3352_v52, %v3015_v57 }
 0x577   : > { %v3867_v58 = vsel %vm3803_vm12, %v3705_v59, %v3835_v61 }
 0x578   : > { %v4171_v54 = vcombine.high %v3867_v58, %v3867_v58  ;;  %v4178_v53 = vrot.slane %v3867_v58, %v9177_v44  ;;  %v3866_v26 = vsel %vm3802_vm13, %v3700_v5, %v3834_v11  ;;  %v3107_v22 = vpop.permute.xlu1 %3106 }
 0x579   : > { %v4154_v48 = vcombine.high %v3866_v26, %v3866_v26  ;;  %v4161_v41 = vrot.slane %v3866_v26, %v9177_v44  ;;  %v3419_v29 = vsel %vm3417_vm8, %v3386_v17, %v3107_v22  ;;  %v3105_v3 = vpop.permute.xlu0 %3104 }
 0x57a   : > { %v4185_v12 = vrot.slane %v4171_v54, %v9177_v44  ;;  %v4186_v15 = vcombine.high %v4178_v53, %v4178_v53  ;;  %v4616_v49 = vmax.f32 %v4144_v42, %v4178_v53  ;;  %v3418_v13 = vsel %vm3417_vm8, %v3385_v36, %v3105_v3 }
 0x57b   : > { %v4168_v32 = vrot.slane %v4154_v48, %v9177_v44  ;;  %v4169_v21 = vcombine.high %v4161_v41, %v4161_v41  ;;  %v4612_v39 = vmax.f32 %v4127_v27, %v4161_v41  ;;  %5997 = vmatprep.mubr.msk.f32.mxu0 %vm3466_vm10, %v3418_v13 }
 0x57c   : > { %v4187_v37 = vcombine.high %v4185_v12, %v4185_v12  ;;  %v4617_v9 = vmax.f32 %v4152_v14, %v4186_v15  ;;  %v4618_v38 = vmax.f32 %v4151_v2, %v4185_v12  ;;  %5998 = vmatmul.mubr.msk.f32.vlgmr.msra.gmra.mrb[32].mxu0 %vm3466_vm10, %v3419_v29  ;;  %v5796_v42 = vrot.slane %v4616_v49, 9 }
 0x57d   : > { %v4170_v46 = vcombine.high %v4168_v32, %v4168_v32  ;;  %v4613_v43 = vmax.f32 %v4135_v62, %v4169_v21  ;;  %v4614_v31 = vmax.f32 %v4134_v63, %v4168_v32  ;;  %v5792_v19 = vrot.slane %v4612_v39, 9 }
 0x57e   : > { %v4619_v10 = vmax.f32 %v4153_v47, %v4187_v37  ;;  %v5797_v40 = vrot.slane %v4617_v9, 9  ;;  %v5798_v34 = vrot.slane %v4618_v38, 9  ;;  %v4936_v8 = vmax.f32 %v4616_v49, %v5796_v42 }
 0x57f   : > { %v4615_v60 = vmax.f32 %v4136_v28, %v4170_v46  ;;  %v5793_v51 = vrot.slane %v4613_v43, 9  ;;  %v5794_v27 = vrot.slane %v4614_v31, 9  ;;  %v4932_v33 = vmax.f32 %v4612_v39, %v5792_v19 }
 0x580   : > { %v5799_v59 = vrot.slane %v4619_v10, 9  ;;  %v4937_v4 = vmax.f32 %v4617_v9, %v5797_v40  ;;  %v4938_v16 = vmax.f32 %v4618_v38, %v5798_v34 }
 0x581   : > { %v5795_v50 = vrot.slane %v4615_v60, 9  ;;  %v4933_v5 = vmax.f32 %v4613_v43, %v5793_v51  ;;  %v4934_v24 = vmax.f32 %v4614_v31, %v5794_v27 }
 0x582   : > { %v4939_v2 = vmax.f32 %v4619_v10, %v5799_v59  ;;  %v5142_v14 = vrot.slane %v4937_v4, 7 }
 0x583   : > { %v4935_v61 = vmax.f32 %v4615_v60, %v5795_v50  ;;  %v5128_v57 = vrot.slane %v4933_v5, 7 }
 0x584   : > { %v5143_v20 = vsel %vm5041_vm15, %v5142_v14, %v4936_v8  ;;  %v5149_v11 = vrot.slane %v4939_v2, 7 }
 0x585   : > { %v5144_v63 = vsel %vm5043_vm3, %v5142_v14, %v5143_v20  ;;  %v5129_v52 = vsel %vm5041_vm15, %v5128_v57, %v4932_v33  ;;  %v5135_v58 = vrot.slane %v4935_v61, 7 }
 0x586   : > { %v5150_v54 = vsel %vm5041_vm15, %v5149_v11, %v4938_v16  ;;  %v5130_v53 = vsel %vm5043_vm3, %v5128_v57, %v5129_v52  ;;  %v5145_v26 = vsel %vm5045_vm5, %v5142_v14, %v5144_v63 }
 0x587   : > { %v5151_v17 = vsel %vm5043_vm3, %v5149_v11, %v5150_v54  ;;  %v5136_v22 = vsel %vm5041_vm15, %v5135_v58, %v4934_v24  ;;  %v5131_v48 = vsel %vm5045_vm5, %v5128_v57, %v5130_v53  ;;  %v9466_v41 = vsel %vm5047_vm2, %v5142_v14, %v5145_v26 }
 0x588   : > { %v5137_v36 = vsel %vm5043_vm3, %v5135_v58, %v5136_v22  ;;  %v9470_v29 = vsel %vm5047_vm2, %v5128_v57, %v5131_v48  ;;  %v5379_v3 = vcombine.low %v9350_v7, %v9466_v41  ;;  %v5152_v12 = vsel %vm5045_vm5, %v5149_v11, %v5151_v17 }
 0x589   : > { %v5307_v15 = vcombine.low %v9354_v1, %v9470_v29  ;;  %v5138_v49 = vsel %vm5045_vm5, %v5135_v58, %v5137_v36  ;;  %v9479_v13 = vsel %vm5047_vm2, %v5149_v11, %v5152_v12 }
 0x58a   : > { %v9482_v62 = vsel %vm5047_vm2, %v5135_v58, %v5138_v49  ;;  %v5415_v32 = vcombine.low %v9359_v55, %v9479_v13 }
 0x58b   : > { %v5343_v21 = vcombine.low %v9362_v0, %v9482_v62 }
 0x58e   : > { %v6023_v39 = vpop.f32.mrb[14].mxu1 }
 0x58f   : > { %v3709_v47 = vpop.f32.mrb[15].mxu1  ;;  %v3715_v37 = vadd.f32 %v6023_v39, %v9134_v56 }
 0x590   : > { %v3710_v9 = vadd.f32 %v9134_v56, %v3709_v47 }
 0x591   : > { %v3837_v38 = vmul.f32 0.01, %v3715_v37  ;;  %vm3805_vm10 = vcmp.ge.f32.partialorder %v3715_v37, 0.0 }
 0x592   : > { %v3836_v28 = vmul.f32 0.01, %v3710_v9  ;;  %vm3804_vm14 = vcmp.ge.f32.partialorder %v3710_v9, 0.0 }
 0x593   : > { %v3869_v46 = vsel %vm3805_vm10, %v3715_v37, %v3837_v38 }
 0x594   : > { %v3868_v43 = vsel %vm3804_vm14, %v3710_v9, %v3836_v28  ;;  %v4205_v40 = vcombine.high %v3869_v46, %v3869_v46  ;;  %v4212_v34 = vrot.slane %v3869_v46, %v9177_v44 }
 0x595   : > { %v4188_v19 = vcombine.high %v3868_v43, %v3868_v43  ;;  %v4195_v4 = vrot.slane %v3868_v43, %v9177_v44 }
 0x596   : > { %v4219_v50 = vrot.slane %v4205_v40, %v9177_v44  ;;  %v4220_v61 = vcombine.high %v4212_v34, %v4212_v34 }
 0x597   : > { %v4202_v14 = vrot.slane %v4188_v19, %v9177_v44  ;;  %v4203_v11 = vcombine.high %v4195_v4, %v4195_v4 }
 0x598   : > { %v4221_v58 = vcombine.high %v4219_v50, %v4219_v50 }
 0x599   : > { %v4204_v17 = vcombine.high %v4202_v14, %v4202_v14 }
 0x5aa   : > { %v6026_v31 = vpop.f32.mrb[16].mxu1 }
 0x5ab   : > { %v3725_v10 = vadd.f32 %v6026_v31, %v9134_v56  ;;  %v3719_v42 = vpop.f32.mrb[17].mxu1 }
 0x5ac   : > { %v3720_v60 = vadd.f32 %v9134_v56, %v3719_v42 }
 0x5ad   : > { %vm3807_vm12 = vcmp.ge.f32.partialorder %v3725_v10, 0.0  ;;  %v3839_v51 = vmul.f32 0.01, %v3725_v10 }
 0x5ae   : > { %vm3806_vm13 = vcmp.ge.f32.partialorder %v3720_v60, 0.0  ;;  %v3838_v59 = vmul.f32 0.01, %v3720_v60 }
 0x5af   : > { %v3871_v27 = vsel %vm3807_vm12, %v3725_v10, %v3839_v51 }
 0x5b0   : > { %v4239_v5 = vcombine.high %v3871_v27, %v3871_v27  ;;  %v4246_v8 = vrot.slane %v3871_v27, %v9177_v44  ;;  %v3870_v2 = vsel %vm3806_vm13, %v3720_v60, %v3838_v59 }
 0x5b1   : > { %v4222_v33 = vcombine.high %v3870_v2, %v3870_v2  ;;  %v4229_v56 = vrot.slane %v3870_v2, %v9177_v44 }
 0x5b2   : > { %v4253_v57 = vrot.slane %v4239_v5, %v9177_v44  ;;  %v4254_v16 = vcombine.high %v4246_v8, %v4246_v8  ;;  %v4624_v20 = vmax.f32 %v4212_v34, %v4246_v8 }
 0x5b3   : > { %v4236_v63 = vrot.slane %v4222_v33, %v9177_v44  ;;  %v4237_v24 = vcombine.high %v4229_v56, %v4229_v56  ;;  %v4620_v52 = vmax.f32 %v4195_v4, %v4229_v56 }
 0x5b4   : > { %v4255_v54 = vcombine.high %v4253_v57, %v4253_v57  ;;  %v4625_v53 = vmax.f32 %v4220_v61, %v4254_v16  ;;  %v4626_v26 = vmax.f32 %v4219_v50, %v4253_v57  ;;  %v5804_v49 = vrot.slane %v4624_v20, 9 }
 0x5b5   : > { %v4238_v22 = vcombine.high %v4236_v63, %v4236_v63  ;;  %v4621_v48 = vmax.f32 %v4203_v11, %v4237_v24  ;;  %v4622_v36 = vmax.f32 %v4202_v14, %v4236_v63  ;;  %v5800_v37 = vrot.slane %v4620_v52, 9 }
 0x5b6   : > { %v4627_v12 = vmax.f32 %v4221_v58, %v4255_v54  ;;  %v5805_v39 = vrot.slane %v4625_v53, 9  ;;  %v5806_v38 = vrot.slane %v4626_v26, 9  ;;  %v4944_v42 = vmax.f32 %v4624_v20, %v5804_v49 }
 0x5b7   : > { %v4623_v47 = vmax.f32 %v4204_v17, %v4238_v22  ;;  %v5801_v9 = vrot.slane %v4621_v48, 9  ;;  %v5802_v43 = vrot.slane %v4622_v36, 9  ;;  %v4940_v19 = vmax.f32 %v4620_v52, %v5800_v37  ;;  %v9527_v17 = vld [vmem:[%s9839_s4] ss:$0 sm:$0xff] }
 0x5b8   : > { %v5807_v28 = vrot.slane %v4627_v12, 9  ;;  %v4945_v46 = vmax.f32 %v4625_v53, %v5805_v39  ;;  %v4946_v59 = vmax.f32 %v4626_v26, %v5806_v38 }
 0x5b9   : > { %v5803_v31 = vrot.slane %v4623_v47, 9  ;;  %v4941_v10 = vmax.f32 %v4621_v48, %v5801_v9  ;;  %v4942_v5 = vmax.f32 %v4622_v36, %v5802_v43 }
 0x5ba   : > { %v4947_v40 = vmax.f32 %v4627_v12, %v5807_v28  ;;  %v5170_v60 = vrot.slane %v4945_v46, 7 }
 0x5bb   : > { %v4943_v51 = vmax.f32 %v4623_v47, %v5803_v31  ;;  %v5156_v34 = vrot.slane %v4941_v10, 7 }
 0x5bc   : > { %v5171_v4 = vsel %vm5041_vm15, %v5170_v60, %v4944_v42  ;;  %v5177_v27 = vrot.slane %v4947_v40, 7 }
 0x5bd   : > { %v5172_v50 = vsel %vm5043_vm3, %v5170_v60, %v5171_v4  ;;  %v5157_v8 = vsel %vm5041_vm15, %v5156_v34, %v4940_v19  ;;  %v5163_v2 = vrot.slane %v4943_v51, 7 }
 0x5be   : > { %v5178_v14 = vsel %vm5041_vm15, %v5177_v27, %v4946_v59  ;;  %v5158_v33 = vsel %vm5043_vm3, %v5156_v34, %v5157_v8  ;;  %v5173_v56 = vsel %vm5045_vm5, %v5170_v60, %v5172_v50 }
 0x5bf   : > { %v5179_v61 = vsel %vm5043_vm3, %v5177_v27, %v5178_v14  ;;  %v5164_v57 = vsel %vm5041_vm15, %v5163_v2, %v4942_v5  ;;  %v5159_v16 = vsel %vm5045_vm5, %v5156_v34, %v5158_v33  ;;  %v9510_v20 = vsel %vm5047_vm2, %v5170_v60, %v5173_v56 }
 0x5c0   : > { %v5165_v11 = vsel %vm5043_vm3, %v5163_v2, %v5164_v57  ;;  %v9514_v63 = vsel %vm5047_vm2, %v5156_v34, %v5159_v16  ;;  %v5180_v24 = vsel %vm5045_vm5, %v5177_v27, %v5179_v61 }
 0x5c1   : > { %v5166_v52 = vsel %vm5045_vm5, %v5163_v2, %v5165_v11  ;;  %v9519_v58 = vsel %vm5047_vm2, %v5177_v27, %v5180_v24 }
 0x5c2   : > { %v9522_v54 = vsel %vm5047_vm2, %v5163_v2, %v5166_v52 }
 0x5c6   : > { %v6029_v53 = vpop.f32.mrb[18].mxu1 }
 0x5c7   : > { %v3729_v26 = vpop.f32.mrb[19].mxu1  ;;  %v3735_v22 = vadd.f32 %v9527_v17, %v6029_v53 }
 0x5c8   : > { %v3730_v48 = vadd.f32 %v9527_v17, %v3729_v26 }
 0x5c9   : > { %v3841_v36 = vmul.f32 0.01, %v3735_v22  ;;  %vm3809_vm10 = vcmp.ge.f32.partialorder %v3735_v22, 0.0 }
 0x5ca   : > { %v3840_v12 = vmul.f32 0.01, %v3730_v48  ;;  %vm3808_vm14 = vcmp.ge.f32.partialorder %v3730_v48, 0.0 }
 0x5cb   : > { %v3873_v49 = vsel %vm3809_vm10, %v3735_v22, %v3841_v36 }
 0x5cc   : > { %v3872_v39 = vsel %vm3808_vm14, %v3730_v48, %v3840_v12  ;;  %v4273_v38 = vcombine.high %v3873_v49, %v3873_v49  ;;  %v4280_v31 = vrot.slane %v3873_v49, %v9177_v44 }
 0x5cd   : > { %v4256_v46 = vcombine.high %v3872_v39, %v3872_v39  ;;  %v4263_v42 = vrot.slane %v3872_v39, %v9177_v44 }
 0x5ce   : > { %v4287_v60 = vrot.slane %v4273_v38, %v9177_v44  ;;  %v4288_v50 = vcombine.high %v4280_v31, %v4280_v31 }
 0x5cf   : > { %v4270_v59 = vrot.slane %v4256_v46, %v9177_v44  ;;  %v4271_v14 = vcombine.high %v4263_v42, %v4263_v42 }
 0x5d0   : > { %v4289_v57 = vcombine.high %v4287_v60, %v4287_v60 }
 0x5d1   : > { %v4272_v52 = vcombine.high %v4270_v59, %v4270_v59 }
 0x5e2   : > { %v6032_v47 = vpop.f32.mrb[20].mxu1 }
 0x5e3   : > { %v3745_v37 = vadd.f32 %v9527_v17, %v6032_v47  ;;  %v3739_v9 = vpop.f32.mrb[21].mxu1 }
 0x5e4   : > { %v3740_v28 = vadd.f32 %v9527_v17, %v3739_v9 }
 0x5e5   : > { %vm3811_vm12 = vcmp.ge.f32.partialorder %v3745_v37, 0.0  ;;  %v3843_v43 = vmul.f32 0.01, %v3745_v37 }
 0x5e6   : > { %vm3810_vm13 = vcmp.ge.f32.partialorder %v3740_v28, 0.0  ;;  %v3842_v10 = vmul.f32 0.01, %v3740_v28 }
 0x5e7   : > { %v3875_v40 = vsel %vm3811_vm12, %v3745_v37, %v3843_v43 }
 0x5e8   : > { %v4307_v19 = vcombine.high %v3875_v40, %v3875_v40  ;;  %v4314_v51 = vrot.slane %v3875_v40, %v9177_v44  ;;  %v3874_v34 = vsel %vm3810_vm13, %v3740_v28, %v3842_v10 }
 0x5e9   : > { %v4290_v4 = vcombine.high %v3874_v34, %v3874_v34  ;;  %v4297_v27 = vrot.slane %v3874_v34, %v9177_v44 }
 0x5ea   : > { %v4321_v5 = vrot.slane %v4307_v19, %v9177_v44  ;;  %v4322_v8 = vcombine.high %v4314_v51, %v4314_v51  ;;  %v4632_v2 = vmax.f32 %v4280_v31, %v4314_v51 }
 0x5eb   : > { %v4304_v33 = vrot.slane %v4290_v4, %v9177_v44  ;;  %v4305_v56 = vcombine.high %v4297_v27, %v4297_v27  ;;  %v4628_v61 = vmax.f32 %v4263_v42, %v4297_v27 }
 0x5ec   : > { %v4323_v16 = vcombine.high %v4321_v5, %v4321_v5  ;;  %v4633_v11 = vmax.f32 %v4288_v50, %v4322_v8  ;;  %v4634_v24 = vmax.f32 %v4287_v60, %v4321_v5  ;;  %v5812_v36 = vrot.slane %v4632_v2, 9 }
 0x5ed   : > { %v4306_v53 = vcombine.high %v4304_v33, %v4304_v33  ;;  %v4629_v26 = vmax.f32 %v4271_v14, %v4305_v56  ;;  %v4630_v22 = vmax.f32 %v4270_v59, %v4304_v33  ;;  %v5808_v39 = vrot.slane %v4628_v61, 9 }
 0x5ee   : > { %v4635_v48 = vmax.f32 %v4289_v57, %v4323_v16  ;;  %v5813_v12 = vrot.slane %v4633_v11, 9  ;;  %v5814_v37 = vrot.slane %v4634_v24, 9  ;;  %v4952_v31 = vmax.f32 %v4632_v2, %v5812_v36 }
 0x5ef   : > { %v4631_v49 = vmax.f32 %v4272_v52, %v4306_v53  ;;  %v5809_v47 = vrot.slane %v4629_v26, 9  ;;  %v5810_v28 = vrot.slane %v4630_v22, 9  ;;  %v4948_v40 = vmax.f32 %v4628_v61, %v5808_v39 }
 0x5f0   : > { %v5815_v9 = vrot.slane %v4635_v48, 9  ;;  %v4953_v38 = vmax.f32 %v4633_v11, %v5813_v12  ;;  %v4954_v51 = vmax.f32 %v4634_v24, %v5814_v37 }
 0x5f1   : > { %v5811_v46 = vrot.slane %v4631_v49, 9  ;;  %v4949_v43 = vmax.f32 %v4629_v26, %v5809_v47  ;;  %v4950_v27 = vmax.f32 %v4630_v22, %v5810_v28 }
 0x5f2   : > { %v4955_v10 = vmax.f32 %v4635_v48, %v5815_v9  ;;  %v5198_v42 = vrot.slane %v4953_v38, 7 }
 0x5f3   : > { %v4951_v60 = vmax.f32 %v4631_v49, %v5811_v46  ;;  %v5184_v19 = vrot.slane %v4949_v43, 7 }
 0x5f4   : > { %v5199_v34 = vsel %vm5041_vm15, %v5198_v42, %v4952_v31  ;;  %v5205_v59 = vrot.slane %v4955_v10, 7 }
 0x5f5   : > { %v5200_v4 = vsel %vm5043_vm3, %v5198_v42, %v5199_v34  ;;  %v5185_v50 = vsel %vm5041_vm15, %v5184_v19, %v4948_v40  ;;  %v5191_v5 = vrot.slane %v4951_v60, 7 }
 0x5f6   : > { %v5206_v8 = vsel %vm5041_vm15, %v5205_v59, %v4954_v51  ;;  %v5186_v14 = vsel %vm5043_vm3, %v5184_v19, %v5185_v50  ;;  %v5201_v2 = vsel %vm5045_vm5, %v5198_v42, %v5200_v4 }
 0x5f7   : > { %v5207_v33 = vsel %vm5043_vm3, %v5205_v59, %v5206_v8  ;;  %v5192_v56 = vsel %vm5041_vm15, %v5191_v5, %v4950_v27  ;;  %v5187_v61 = vsel %vm5045_vm5, %v5184_v19, %v5186_v14  ;;  %v9551_v57 = vsel %vm5047_vm2, %v5198_v42, %v5201_v2 }
 0x5f8   : > { %v5193_v16 = vsel %vm5043_vm3, %v5191_v5, %v5192_v56  ;;  %v9555_v11 = vsel %vm5047_vm2, %v5184_v19, %v5187_v61  ;;  %v5388_v24 = vcombine.low %v9510_v20, %v9551_v57  ;;  %v5208_v52 = vsel %vm5045_vm5, %v5205_v59, %v5207_v33 }
 0x5f9   : > { %v5316_v53 = vcombine.low %v9514_v63, %v9555_v11  ;;  %v5194_v26 = vsel %vm5045_vm5, %v5191_v5, %v5193_v16  ;;  %v9564_v22 = vsel %vm5047_vm2, %v5205_v59, %v5208_v52 }
 0x5fa   : > { %v9567_v48 = vsel %vm5047_vm2, %v5191_v5, %v5194_v26 }
 0x5fb   : > { %v5352_v49 = vcombine.low %v9522_v54, %v9567_v48 }
 0x5fe   : > { %v6035_v12 = vpop.f32.mrb[22].mxu1 }
 0x5ff   : > { %v3749_v39 = vpop.f32.mrb[23].mxu1  ;;  %v3755_v47 = vadd.f32 %v9527_v17, %v6035_v12 }
 0x600   : > { %v3750_v37 = vadd.f32 %v9527_v17, %v3749_v39 }
 0x601   : > { %v3845_v9 = vmul.f32 0.01, %v3755_v47  ;;  %vm3813_vm10 = vcmp.ge.f32.partialorder %v3755_v47, 0.0 }
 0x602   : > { %v3844_v38 = vmul.f32 0.01, %v3750_v37  ;;  %vm3812_vm14 = vcmp.ge.f32.partialorder %v3750_v37, 0.0 }
 0x603   : > { %v3877_v28 = vsel %vm3813_vm10, %v3755_v47, %v3845_v9 }
 0x604   : > { %v3876_v46 = vsel %vm3812_vm14, %v3750_v37, %v3844_v38  ;;  %v4341_v42 = vcombine.high %v3877_v28, %v3877_v28  ;;  %v4348_v51 = vrot.slane %v3877_v28, %v9177_v44 }
 0x605   : > { %v4324_v60 = vcombine.high %v3876_v46, %v3876_v46  ;;  %v4331_v59 = vrot.slane %v3876_v46, %v9177_v44 }
 0x606   : > { %v4355_v27 = vrot.slane %v4341_v42, %v9177_v44  ;;  %v4356_v56 = vcombine.high %v4348_v51, %v4348_v51 }
 0x607   : > { %v4338_v14 = vrot.slane %v4324_v60, %v9177_v44  ;;  %v4339_v26 = vcombine.high %v4331_v59, %v4331_v59 }
 0x608   : > { %v4357_v37 = vcombine.high %v4355_v27, %v4355_v27 }
 0x609   : > { %v4340_v46 = vcombine.high %v4338_v14, %v4338_v14 }
 0x61a   : > { %v6038_v43 = vpop.f32.mrb[24].mxu1 }
 0x61b   : > { %v3765_v31 = vadd.f32 %v9527_v17, %v6038_v43  ;;  %v3759_v10 = vpop.f32.mrb[25].mxu1 }
 0x61c   : > { %v3760_v40 = vadd.f32 %v9527_v17, %v3759_v10 }
 0x61d   : > { %vm3815_vm12 = vcmp.ge.f32.partialorder %v3765_v31, 0.0  ;;  %v3847_v19 = vmul.f32 0.01, %v3765_v31 }
 0x61e   : > { %vm3814_vm13 = vcmp.ge.f32.partialorder %v3760_v40, 0.0  ;;  %v3846_v34 = vmul.f32 0.01, %v3760_v40 }
 0x61f   : > { %v3879_v4 = vsel %vm3815_vm12, %v3765_v31, %v3847_v19 }
 0x620   : > { %v4375_v50 = vcombine.high %v3879_v4, %v3879_v4  ;;  %v4382_v5 = vrot.slane %v3879_v4, %v9177_v44  ;;  %v3878_v8 = vsel %vm3814_vm13, %v3760_v40, %v3846_v34 }
 0x621   : > { %v4358_v2 = vcombine.high %v3878_v8, %v3878_v8  ;;  %v4365_v33 = vrot.slane %v3878_v8, %v9177_v44 }
 0x622   : > { %v4389_v61 = vrot.slane %v4375_v50, %v9177_v44  ;;  %v4390_v16 = vcombine.high %v4382_v5, %v4382_v5  ;;  %v4640_v52 = vmax.f32 %v4348_v51, %v4382_v5 }
 0x623   : > { %v4372_v12 = vrot.slane %v4358_v2, %v9177_v44  ;;  %v4373_v39 = vcombine.high %v4365_v33, %v4365_v33  ;;  %v4636_v47 = vmax.f32 %v4331_v59, %v4365_v33 }
 0x624   : > { %v4391_v9 = vcombine.high %v4389_v61, %v4389_v61  ;;  %v4641_v38 = vmax.f32 %v4356_v56, %v4390_v16  ;;  %v4642_v28 = vmax.f32 %v4355_v27, %v4389_v61  ;;  %v5820_v40 = vrot.slane %v4640_v52, 9 }
 0x625   : > { %v4374_v43 = vcombine.high %v4372_v12, %v4372_v12  ;;  %v4637_v31 = vmax.f32 %v4339_v26, %v4373_v39  ;;  %v4638_v10 = vmax.f32 %v4338_v14, %v4372_v12  ;;  %v5816_v34 = vrot.slane %v4636_v47, 9 }
 0x626   : > { %v4643_v42 = vmax.f32 %v4357_v37, %v4391_v9  ;;  %v5821_v60 = vrot.slane %v4641_v38, 9  ;;  %v5822_v51 = vrot.slane %v4642_v28, 9  ;;  %v4960_v33 = vmax.f32 %v4640_v52, %v5820_v40 }
 0x627   : > { %v4639_v19 = vmax.f32 %v4340_v46, %v4374_v43  ;;  %v5817_v4 = vrot.slane %v4637_v31, 9  ;;  %v5818_v8 = vrot.slane %v4638_v10, 9  ;;  %v4956_v27 = vmax.f32 %v4636_v47, %v5816_v34 }
 0x628   : > { %v5823_v50 = vrot.slane %v4643_v42, 9  ;;  %v4961_v5 = vmax.f32 %v4641_v38, %v5821_v60  ;;  %v4962_v26 = vmax.f32 %v4642_v28, %v5822_v51  ;;  %v3645_v38 = vadd.f32 %v9527_v17, %v9045_v35 }
 0x629   : > { %v5819_v2 = vrot.slane %v4639_v19, 9  ;;  %v4957_v59 = vmax.f32 %v4637_v31, %v5817_v4  ;;  %v4958_v37 = vmax.f32 %v4638_v10, %v5818_v8 }
 0x62a   : > { %v4963_v36 = vmax.f32 %v4643_v42, %v5823_v50  ;;  %v5226_v56 = vrot.slane %v4961_v5, 7  ;;  %v3640_v42 = vadd.f32 %v9527_v17, %v9050_v18  ;;  %v3823_v51 = vmul.f32 0.01, %v3645_v38 }
 0x62b   : > { %v4959_v61 = vmax.f32 %v4639_v19, %v5819_v2  ;;  %v5212_v16 = vrot.slane %v4957_v59, 7  ;;  %vm3791_vm10 = vcmp.ge.f32.partialorder %v3645_v38, 0.0  ;;  %v6123_v5 = vmov 1934713408  }
 0x62c   : > { %v5227_v14 = vsel %vm5041_vm15, %v5226_v56, %v4960_v33  ;;  %v5233_v12 = vrot.slane %v4963_v36, 7  ;;  %v3822_v50 = vmul.f32 0.01, %v3640_v42  ;;  %vm3790_vm14 = vcmp.ge.f32.partialorder %v3640_v42, 0.0 }
 0x62d   : > { %v5228_v39 = vsel %vm5043_vm3, %v5226_v56, %v5227_v14  ;;  %v5213_v9 = vsel %vm5041_vm15, %v5212_v16, %v4956_v27  ;;  %v5219_v46 = vrot.slane %v4959_v61, 7  ;;  %v3855_v18 = vsel %vm3791_vm10, %v3645_v38, %v3823_v51 }
 0x62e   : > { %v5234_v52 = vsel %vm5041_vm15, %v5233_v12, %v4962_v26  ;;  %v5214_v43 = vsel %vm5043_vm3, %v5212_v16, %v5213_v9  ;;  %v5229_v47 = vsel %vm5045_vm5, %v5226_v56, %v5228_v39  ;;  %v5300_v8 = vunpack.c.l.s4 %v6123_v5 }
 0x62f   : > { %v5235_v28 = vsel %vm5043_vm3, %v5233_v12, %v5234_v52  ;;  %v5220_v31 = vsel %vm5041_vm15, %v5219_v46, %v4958_v37  ;;  %v5215_v36 = vsel %vm5045_vm5, %v5212_v16, %v5214_v43  ;;  %v9597_v10 = vsel %vm5047_vm2, %v5226_v56, %v5229_v47 }
 0x630   : > { %v5221_v35 = vsel %vm5043_vm3, %v5219_v46, %v5220_v31  ;;  %v9603_v40 = vsel %vm5047_vm2, %v5212_v16, %v5215_v36  ;;  %v5236_v60 = vsel %vm5045_vm5, %v5233_v12, %v5235_v28  ;;  %v3854_v2 = vsel %vm3790_vm14, %v3640_v42, %v3822_v50 }
 0x631   : > { %v5222_v19 = vsel %vm5045_vm5, %v5219_v46, %v5221_v35  ;;  %v9608_v34 = vsel %vm5047_vm2, %v5233_v12, %v5236_v60  ;;  %v3967_v59 = vcombine.high %v3855_v18, %v3855_v18  ;;  %v3950_v56 = vcombine.high %v3854_v2, %v3854_v2 }
 0x632   : > { %v9611_v4 = vsel %vm5047_vm2, %v5219_v46, %v5222_v19  ;;  %v5301_v16 = vunpack.c.0.s8 %v5300_v8  ;;  %v9616_v14 = vrot.slane %v3855_v18, %v9177_v44  ;;  %v9622_v37 = vrot.slane %v3854_v2, %v9177_v44 }
 0x633   : > { %v9619_v39 = vrot.slane %v3967_v59, %v9177_v44  ;;  %v9625_v46 = vrot.slane %v3950_v56, %v9177_v44 }
 0x634   : > { %v9628_v52 = vsub.s32 %v5301_v16, %v9157_v6  ;;  %v3982_v47 = vcombine.high %v9616_v14, %v9616_v14  ;;  %v3965_v42 = vcombine.high %v9622_v37, %v9622_v37 }
 0x635   : > { %v3983_v36 = vcombine.high %v9619_v39, %v9619_v39  ;;  %v3966_v6 = vcombine.high %v9625_v46, %v9625_v46 }
 0x636   : > { %v9644_v50 = vrot.slane %v5307_v15, %v9628_v52  ;;  %v9650_v18 = vrot.slane %v5379_v3, %v9628_v52  ;;  %v9659_v1 = vrot.slane %v5415_v32, %v9628_v52  ;;  %v9666_v29 = vrot.slane %v5343_v21, %v9628_v52 }
 0x637   : > { %v9672_v3 = vrot.slane %v5388_v24, %v9628_v52  ;;  %v9679_v32 = vrot.slane %v5316_v53, %v9628_v52 }
 0x63d   : > { %v6041_v33 = vpop.f32.mrb[26].mxu1 }
 0x63e   : > { %v3775_v27 = vadd.f32 %v9527_v17, %v6041_v33  ;;  %v3769_v61 = vpop.f32.mrb[27].mxu1 }
 0x63f   : > { %v3770_v26 = vadd.f32 %v9527_v17, %v3769_v61 }
 0x640   : > { %vm3817_vm12 = vcmp.ge.f32.partialorder %v3775_v27, 0.0  ;;  %v3849_v12 = vmul.f32 0.01, %v3775_v27 }
 0x641   : > { %vm3816_vm13 = vcmp.ge.f32.partialorder %v3770_v26, 0.0  ;;  %v3848_v9 = vmul.f32 0.01, %v3770_v26 }
 0x642   : > { %v3881_v38 = vsel %vm3817_vm12, %v3775_v27, %v3849_v12 }
 0x643   : > { %v3880_v43 = vsel %vm3816_vm13, %v3770_v26, %v3848_v9  ;;  %v4409_v28 = vcombine.high %v3881_v38, %v3881_v38  ;;  %v4416_v5 = vrot.slane %v3881_v38, %v9177_v44 }
 0x644   : > { %v6044_v31 = vpop.f32.mrb[28].mxu1  ;;  %v4392_v35 = vcombine.high %v3880_v43, %v3880_v43  ;;  %v4399_v8 = vrot.slane %v3880_v43, %v9177_v44 }
 0x645   : > { %v3785_v60 = vadd.f32 %v9527_v17, %v6044_v31  ;;  %v3779_v19 = vpop.f32.mrb[29].mxu1  ;;  %v4423_v59 = vrot.slane %v4409_v28, %v9177_v44  ;;  %v4424_v56 = vcombine.high %v4416_v5, %v4416_v5 }
 0x646   : > { %v3780_v51 = vadd.f32 %v9527_v17, %v3779_v19  ;;  %v4406_v7 = vrot.slane %v4392_v35, %v9177_v44  ;;  %v4407_v0 = vcombine.high %v4399_v8, %v4399_v8 }
 0x647   : > { %vm3819_vm10 = vcmp.ge.f32.partialorder %v3785_v60, 0.0  ;;  %v3851_v2 = vmul.f32 0.01, %v3785_v60  ;;  %v4425_v27 = vcombine.high %v4423_v59, %v4423_v59 }
 0x648   : > { %vm3818_vm14 = vcmp.ge.f32.partialorder %v3780_v51, 0.0  ;;  %v3850_v33 = vmul.f32 0.01, %v3780_v51  ;;  %v4408_v61 = vcombine.high %v4406_v7, %v4406_v7 }
 0x649   : > { %v3883_v41 = vsel %vm3819_vm10, %v3785_v60, %v3851_v2 }
 0x64a   : > { %v4443_v15 = vcombine.high %v3883_v41, %v3883_v41  ;;  %v4450_v55 = vrot.slane %v3883_v41, %v9177_v44  ;;  %v3882_v13 = vsel %vm3818_vm14, %v3780_v51, %v3850_v33 }
 0x64b   : > { %v4426_v62 = vcombine.high %v3882_v13, %v3882_v13  ;;  %v4433_v21 = vrot.slane %v3882_v13, %v9177_v44 }
 0x64c   : > { %v4457_v20 = vrot.slane %v4443_v15, %v9177_v44  ;;  %v4458_v57 = vcombine.high %v4450_v55, %v4450_v55  ;;  %v4648_v24 = vmax.f32 %v4416_v5, %v4450_v55  ;;  %v9688_v5 = vrot.slane %v5352_v49, %v9628_v52 }
 0x64d   : > { %v4440_v16 = vrot.slane %v4426_v62, %v9177_v44  ;;  %v4441_v26 = vcombine.high %v4433_v21, %v4433_v21  ;;  %v4644_v12 = vmax.f32 %v4399_v8, %v4433_v21 }
 0x64e   : > { %v4459_v9 = vcombine.high %v4457_v20, %v4457_v20  ;;  %v4649_v38 = vmax.f32 %v4424_v56, %v4458_v57  ;;  %v4650_v63 = vmax.f32 %v4423_v59, %v4457_v20  ;;  %v5828_v11 = vrot.slane %v4648_v24, 9 }
 0x64f   : > { %v4442_v53 = vcombine.high %v4440_v16, %v4440_v16  ;;  %v4645_v43 = vmax.f32 %v4407_v0, %v4441_v26  ;;  %v4646_v28 = vmax.f32 %v4406_v7, %v4440_v16  ;;  %v5824_v31 = vrot.slane %v4644_v12, 9  ;;  %v5999_v35 = vpop.f32.mrb[32].mxu0 }
 0x650   : > { %v4651_v60 = vmax.f32 %v4425_v27, %v4459_v9  ;;  %v5829_v19 = vrot.slane %v4649_v38, 9  ;;  %v5830_v51 = vrot.slane %v4650_v63, 9  ;;  %v3629_v2 = vpop.f32.mrb[33].mxu0  ;;  %v4968_v8 = vmax.f32 %v4648_v24, %v5828_v11 }
 0x651   : > { %v4647_v33 = vmax.f32 %v4408_v61, %v4442_v53  ;;  %v5825_v41 = vrot.slane %v4645_v43, 9  ;;  %v5826_v59 = vrot.slane %v4646_v28, 9  ;;  %v4964_v13 = vmax.f32 %v4644_v12, %v5824_v31 }
 0x652   : > { %v5831_v15 = vrot.slane %v4651_v60, 9  ;;  %v4969_v55 = vmax.f32 %v4649_v38, %v5829_v19  ;;  %v3635_v7 = vadd.f32 %v9527_v17, %v5999_v35  ;;  %v4970_v56 = vmax.f32 %v4650_v63, %v5830_v51 }
 0x653   : > { %v5827_v0 = vrot.slane %v4647_v33, 9  ;;  %v4965_v62 = vmax.f32 %v4645_v43, %v5825_v41  ;;  %v3630_v21 = vadd.f32 %v9527_v17, %v3629_v2  ;;  %v4966_v16 = vmax.f32 %v4646_v28, %v5826_v59 }
 0x654   : > { %v4971_v27 = vmax.f32 %v4651_v60, %v5831_v15  ;;  %v9692_v20 = vrot.slane %v4969_v55, 7  ;;  %vm3789_vm12 = vcmp.ge.f32.partialorder %v3635_v7, 0.0  ;;  %v3821_v54 = vmul.f32 0.01, %v3635_v7 }
 0x655   : > { %v4967_v48 = vmax.f32 %v4647_v33, %v5827_v0  ;;  %v5240_v49 = vrot.slane %v4965_v62, 7  ;;  %vm3788_vm13 = vcmp.ge.f32.partialorder %v3630_v21, 0.0  ;;  %v3820_v57 = vmul.f32 0.01, %v3630_v21 }
 0x656   : > { %v5255_v24 = vsel %vm5041_vm15, %v9692_v20, %v4968_v8  ;;  %v9696_v61 = vrot.slane %v4971_v27, 7  ;;  %v3853_v26 = vsel %vm3789_vm12, %v3635_v7, %v3821_v54 }
 0x657   : > { %v5256_v12 = vsel %vm5043_vm3, %v9692_v20, %v5255_v24  ;;  %v5241_v17 = vsel %vm5041_vm15, %v5240_v49, %v4964_v13  ;;  %v5247_v9 = vrot.slane %v4967_v48, 7  ;;  %v3933_v38 = vcombine.high %v3853_v26, %v3853_v26 }
 0x658   : > { %v5262_v63 = vsel %vm5041_vm15, %v9696_v61, %v4970_v56  ;;  %v5242_v11 = vsel %vm5043_vm3, %v5240_v49, %v5241_v17  ;;  %v3940_v53 = vrot.slane %v3853_v26, %v9177_v44  ;;  %v3852_v43 = vsel %vm3788_vm13, %v3630_v21, %v3820_v57 }
 0x659   : > { %v9707_v31 = vsel %vm5043_vm3, %v9696_v61, %v5262_v63  ;;  %v5248_v28 = vsel %vm5041_vm15, %v5247_v9, %v4966_v16  ;;  %v3947_v35 = vrot.slane %v3933_v38, %v9177_v44  ;;  %v3916_v60 = vcombine.high %v3852_v43, %v3852_v43 }
 0x65a   : > { %v5249_v19 = vsel %vm5043_vm3, %v5247_v9, %v5248_v28  ;;  %v3948_v51 = vcombine.high %v3940_v53, %v3940_v53  ;;  %v4592_v2 = vmax.f32 %v3940_v53, %v9616_v14  ;;  %v3923_v8 = vrot.slane %v3852_v43, %v9177_v44 }
 0x65b   : > { %v3949_v33 = vcombine.high %v3947_v35, %v3947_v35  ;;  %v4594_v41 = vmax.f32 %v3947_v35, %v9619_v39  ;;  %v3930_v59 = vrot.slane %v3916_v60, %v9177_v44  ;;  %v5243_v15 = vsel %vm5045_vm5, %v5240_v49, %v5242_v11 }
 0x65c   : > { %v4593_v55 = vmax.f32 %v3948_v51, %v3982_v47  ;;  %v5772_v13 = vrot.slane %v4592_v2, 9  ;;  %v3931_v7 = vcombine.high %v3923_v8, %v3923_v8  ;;  %v4588_v56 = vmax.f32 %v3923_v8, %v9622_v37 }
 0x65d   : > { %v4595_v0 = vmax.f32 %v3949_v33, %v3983_v36  ;;  %v5774_v62 = vrot.slane %v4594_v41, 9  ;;  %v3932_v21 = vcombine.high %v3930_v59, %v3930_v59  ;;  %v4590_v27 = vmax.f32 %v3930_v59, %v9625_v46 }
 0x65e   : > { %v5773_v54 = vrot.slane %v4593_v55, 9  ;;  %v4912_v48 = vmax.f32 %v4592_v2, %v5772_v13  ;;  %v4589_v57 = vmax.f32 %v3931_v7, %v3965_v42  ;;  %v5768_v14 = vrot.slane %v4588_v56, 9 }
 0x65f   : > { %v5775_v47 = vrot.slane %v4595_v0, 9  ;;  %v4914_v24 = vmax.f32 %v4594_v41, %v5774_v62  ;;  %v4591_v16 = vmax.f32 %v3932_v21, %v3966_v6  ;;  %v5770_v26 = vrot.slane %v4590_v27, 9 }
 0x660   : > { %v4913_v39 = vmax.f32 %v4593_v55, %v5773_v54  ;;  %v5769_v36 = vrot.slane %v4589_v57, 9  ;;  %v4908_v17 = vmax.f32 %v4588_v56, %v5768_v14  ;;  %v5244_v38 = vsel %vm5047_vm2, %v5240_v49, %v5243_v15 }
 0x661   : > { %v4915_v63 = vmax.f32 %v4595_v0, %v5775_v47  ;;  %v5771_v11 = vrot.slane %v4591_v16, 9  ;;  %v4910_v53 = vmax.f32 %v4590_v27, %v5770_v26  ;;  %v5325_v43 = vcombine.low %v9603_v40, %v5244_v38 }
 0x662   : > { %v5058_v37 = vrot.slane %v4913_v39, 7  ;;  %v4909_v42 = vmax.f32 %v4589_v57, %v5769_v36  ;;  %v5250_v28 = vsel %vm5045_vm5, %v5247_v9, %v5249_v19  ;;  %v5257_v35 = vsel %vm5045_vm5, %v9692_v20, %v5256_v12 }
 0x663   : > { %v5065_v46 = vrot.slane %v4915_v63, 7  ;;  %v4911_v6 = vmax.f32 %v4591_v16, %v5771_v11  ;;  %v9737_v60 = vrot.slane %v5325_v43, %v9628_v52  ;;  %v5251_v51 = vsel %vm5047_vm2, %v5247_v9, %v5250_v28 }
 0x664   : > { %v5059_v49 = vsel %vm5041_vm15, %v5058_v37, %v4912_v48  ;;  %v5040_v2 = vrot.slane %v4909_v42, 7  ;;  %v5361_v8 = vcombine.low %v9611_v4, %v5251_v51  ;;  %v5258_v40 = vsel %vm5047_vm2, %v9692_v20, %v5257_v35 }
 0x665   : > { %v5060_v19 = vsel %vm5043_vm3, %v5058_v37, %v5059_v49  ;;  %v5066_v33 = vsel %vm5041_vm15, %v5065_v46, %v4914_v24  ;;  %v5051_v12 = vrot.slane %v4911_v6, 7  ;;  %v5833_v41 = vcombine.high %v9679_v32, %v9737_v60 }
 0x666   : > { %v5067_v59 = vsel %vm5043_vm3, %v5065_v46, %v5066_v33  ;;  %v5042_v9 = vsel %vm5041_vm15, %v5040_v2, %v4908_v17  ;;  %v5368_v15 = vrot.slane %v5361_v8, %v9628_v52  ;;  %v5061_v55 = vsel %vm5045_vm5, %v5058_v37, %v5060_v19 }
 0x667   : > { %v5044_v4 = vsel %vm5043_vm3, %v5040_v2, %v5042_v9  ;;  %v5052_v20 = vsel %vm5041_vm15, %v5051_v12, %v4910_v53  ;;  %v5483_v13 = vrot.slane %v5833_v41, %v9177_v44  ;;  %v5062_v7 = vsel %vm5047_vm2, %v5058_v37, %v5061_v55 }
 0x668   : > { %v5053_v56 = vsel %vm5043_vm3, %v5051_v12, %v5052_v20  ;;  %v5046_v0 = vsel %vm5045_vm5, %v5040_v2, %v5044_v4  ;;  %v5493_v62 = vcombine.low %v9688_v5, %v5368_v15  ;;  %v5835_v21 = vcombine.high %v9688_v5, %v5368_v15 }
 0x669   : > { %v5048_v27 = vsel %vm5047_vm2, %v5040_v2, %v5046_v0  ;;  %v5054_v54 = vsel %vm5045_vm5, %v5051_v12, %v5053_v56  ;;  %v5370_v48 = vcombine.low %v5062_v7, %v9228_v30  ;;  %v5397_v57 = vcombine.low %v9597_v10, %v5258_v40 }
 0x66a   : > { %v5298_v14 = vcombine.low %v5048_v27, %v9232_v25  ;;  %v5055_v47 = vsel %vm5047_vm2, %v5051_v12, %v5054_v54  ;;  %v5507_v24 = vrot.slane %v5493_v62, %v9177_v44  ;;  %v5531_v16 = vrot.slane %v5835_v21, %v9177_v44 }
 0x66b   : > { %v5334_v26 = vcombine.low %v5055_v47, %v9243_v45  ;;  %v5377_v5 = vrot.slane %v5370_v48, %v9628_v52  ;;  %v5404_v39 = vrot.slane %v5397_v57, %v9628_v52  ;;  %v5068_v36 = vsel %vm5045_vm5, %v5065_v46, %v5067_v59 }
 0x66c   : > { %v5305_v30 = vrot.slane %v5298_v14, %v9628_v52  ;;  %v5069_v10 = vsel %vm5047_vm2, %v5065_v46, %v5068_v36  ;;  %v5264_v25 = vsel %vm5045_vm5, %v9696_v61, %v9707_v31  ;;  %v5447_v17 = vcombine.low %v9679_v32, %v9737_v60 }
 0x66d   : > { %v5341_v38 = vrot.slane %v5334_v26, %v9628_v52  ;;  %v5540_v45 = vcombine.low %v5377_v5, %v9650_v18  ;;  %v5541_v63 = vcombine.low %v9672_v3, %v5404_v39  ;;  %v5836_v11 = vcombine.high %v5377_v5, %v9650_v18 }
 0x66e   : > { %v5832_v53 = vcombine.high %v5305_v30, %v9644_v50  ;;  %v5837_v43 = vcombine.high %v9672_v3, %v5404_v39  ;;  %v5265_v37 = vsel %vm5047_vm2, %v9696_v61, %v5264_v25  ;;  %v5406_v31 = vcombine.low %v5069_v10, %v9237_v23 }
 0x66f   : > { %v5492_v42 = vcombine.low %v5341_v38, %v9666_v29  ;;  %v5834_v32 = vcombine.high %v5341_v38, %v9666_v29  ;;  %v5548_v28 = vrot.slane %v5540_v45, %v9177_v44  ;;  %v5555_v35 = vrot.slane %v5541_v63, %v9177_v44 }
 0x670   : > { %v5476_v46 = vrot.slane %v5832_v53, %v9177_v44  ;;  %v5572_v18 = vrot.slane %v5836_v11, %v9177_v44  ;;  %v5579_v6 = vrot.slane %v5837_v43, %v9177_v44  ;;  %v5413_v3 = vrot.slane %v5406_v31, %v9628_v52 }
 0x671   : > { %v5500_v61 = vrot.slane %v5492_v42, %v9177_v44  ;;  %v5524_v23 = vrot.slane %v5834_v32, %v9177_v44  ;;  %v5556_v60 = vcombine.low %v5548_v28, %v5555_v35  ;;  %v5433_v51 = vcombine.low %v9608_v34, %v5265_v37 }
 0x672   : > { %v5484_v29 = vcombine.low %v5476_v46, %v5483_v13  ;;  %v5580_v49 = vcombine.low %v5572_v18, %v5579_v6  ;;  %v5588_v2 = vcombine.low %v5413_v3, %v9659_v1  ;;  %v5838_v8 = vcombine.high %v5413_v3, %v9659_v1 }
 0x673   : > { %v5508_v40 = vcombine.low %v5500_v61, %v5507_v24  ;;  %v5532_v19 = vcombine.low %v5524_v23, %v5531_v16  ;;  %v10484_v33 = vcombine.low %v9519_v58, %v9564_v22  ;;  %v5440_v41 = vrot.slane %v5433_v51, %v9628_v52 }
 0x674   : > { %5485 = vrot.lane.b32.xlu0 %v5484_v29, %s6111_s25  ;;  %v5446_v59 = vcombine.low %v5305_v30, %v9644_v50  ;;  %v5596_v9 = vrot.slane %v5588_v2, %v9177_v44  ;;  %v5620_v1 = vrot.slane %v5838_v8, %v9177_v44  ;;  %v5461_v55 = vrot.slane %v5447_v17, %v9177_v44  ;;  %s5700_s25 = sshll.u32 %s10486_s19, 3 }
 0x675   : > { %v5431_v12 = vrot.slane %v10484_v33, %v9628_v52  ;;  %5509 = vrot.lane.b32.xlu1 %v5508_v40, %s6113_s27 }
 0x676   : > { %v5454_v4 = vrot.slane %v5446_v59, %v9177_v44 }
 0x677   : > { %v5589_v34 = vcombine.low %v5431_v12, %v5440_v41  ;;  %v5839_v15 = vcombine.high %v5431_v12, %v5440_v41 }
 0x678   : > { %5533 = vrot.lane.b32.xlu0 %v5532_v19, %s6115_s14  ;;  %v5462_v52 = vcombine.low %v5454_v4, %v5461_v55 }
 0x679   : > { %v5603_v58 = vrot.slane %v5589_v34, %v9177_v44  ;;  %v5627_v22 = vrot.slane %v5839_v15, %v9177_v44  ;;  %5557 = vrot.lane.b32.xlu1 %v5556_v60, %s6117_s16  ;;  %s222_s16 = scalar_lea.vmem %s9840_s5, %s5700_s25 }
 0x67b   : > { %v5604_v50 = vcombine.low %v5596_v9, %v5603_v58  ;;  %v5628_v20 = vcombine.low %v5620_v1, %v5627_v22 }
 0x67c   : > { %5581 = vrot.lane.b32.xlu0 %v5580_v49, %s6118_s6 }
 0x67d   : > { %5605 = vrot.lane.b32.xlu1 %v5604_v50, %s6119_s17 }
 0x680   : > { %5629 = vrot.lane.b32.xlu0 %v5628_v20, %s6120_s20 }
 0x6e6   : > { %v5486_v13 = vpop.permute.xlu0 %5485 }
 0x6e7   : > { %v5632_v7 = vsel %vm1410_vm4, %v5462_v52, %v5486_v13  ;;  %v5510_v56 = vpop.permute.xlu1 %5509 }
 0x6e8   : > { %v5633_v44 = vsel %vm1474_vm7, %v5632_v7, %v5510_v56 }
 0x6ea   : > { %v5534_v0 = vpop.permute.xlu0 %5533 }
 0x6eb   : > { %v5634_v62 = vsel %vm1540_vm9, %v5633_v44, %v5534_v0  ;;  %v5558_v21 = vpop.permute.xlu1 %5557 }
 0x6ec   : > { %v5635_v27 = vsel %vm1606_vm11, %v5634_v62, %v5558_v21 }
 0x6ee   : > { %v5582_v54 = vpop.permute.xlu0 %5581 }
 0x6ef   : > { %v5636_v48 = vsel %vm3318_vm0, %v5635_v27, %v5582_v54  ;;  %v5606_v57 = vpop.permute.xlu1 %5605 }
 0x6f0   : > { %v5637_v14 = vsel %vm3351_vm1, %v5636_v48, %v5606_v57 }
 0x6f2   : > { %v5630_v47 = vpop.permute.xlu0 %5629 }
 0x6f3   : > { %v5638_v24 = vsel %vm3384_vm6, %v5637_v14, %v5630_v47 }
 0x6f4   : > { %5639 = vst.msk [vmem:[%s222_s16] sm:$0xff] %vm3417_vm8, %v5638_v24 }
 0x6f5 PF: > { %s15_s18 = sadd.s32 1, %s6108_s18  }
 0x6f6   : > { %p12_p4 = scmp.ge.s32.totalorder %s15_s18, 4  }
 0x6f8   :  { %14 = sbr.rel (!%p12_p4) target bundleno = 1 (0x1), region = 70 }

</bundles_post_ra>
